<compile_context>
chip_gen: v5e
topology: v5e:2x2
jax: 0.10.0
libtpu: 0.0.40
codegen_flags: <defaults>
</compile_context>

<pallas_src>
import functools
import numpy as np

import jax
import jax.numpy as jnp
from jax.experimental import pallas as pl
from jax.experimental.pallas import tpu as pltpu


# ----------------------------------------------------------------------------- config
CFG = dict(
    embed_dim=32,
    image_resolution=16,
    vision_layers=2,
    vision_width=64,        # vision_heads = 64 // 64 = 1
    vision_patch_size=8,
    context_length=8,
    vocab_size=64,
    transformer_width=32,
    transformer_heads=2,
    transformer_layers=2,
)

LANE = 128   # lane tile
SUB = 8      # sublane tile

_VMEM = pltpu.MemorySpace.VMEM
_SMEM = pltpu.MemorySpace.SMEM


def _ceil_to(x, m):
    return ((x + m - 1) // m) * m


def _pad_axis(x, target, axis):
    pad = target - x.shape[axis]
    if pad <= 0:
        return x
    widths = [(0, 0)] * x.ndim
    widths[axis] = (0, pad)
    return jnp.pad(x, widths)


# ----------------------------------------------------------------------------- in-kernel helpers
def _lane_mask(d_pad, d_true):
    """(1, d_pad) f32 mask: 1.0 on real feature lanes, 0.0 on zero-padded lanes."""
    ids = jax.lax.broadcasted_iota(jnp.int32, (1, d_pad), 1)
    return (ids < d_true).astype(jnp.float32)


def _layernorm(x, g, b, d_true, lane_mask):
    """fp32 LayerNorm over the first d_true lanes (torch LayerNorm semantics).

    Padded lanes of x are zero; gamma/beta are zero-padded, so the output's padded
    lanes are exactly zero too.
    """
    inv_d = 1.0 / float(d_true)
    mu = jnp.sum(x, axis=-1, keepdims=True) * inv_d
    diff = (x - mu) * lane_mask
    var = jnp.sum(diff * diff, axis=-1, keepdims=True) * inv_d
    return diff * jax.lax.rsqrt(var + 1e-5) * g + b


def _attn_bias(seq_pad, seq_true, causal):
    """(seq_pad, seq_pad) additive bias: -1e30 on padded key columns (and above the
    diagonal when causal).  Built from iota; no mask input array needed."""
    col = jax.lax.broadcasted_iota(jnp.int32, (seq_pad, seq_pad), 1)
    neg = jnp.float32(-1e30)
    bias = jnp.where(col >= seq_true, neg, jnp.float32(0.0))
    if causal:
        row = jax.lax.broadcasted_iota(jnp.int32, (seq_pad, seq_pad), 0)
        bias = jnp.where(col > row, neg, bias)
    return bias


def _residual_block(x, w, *, n_head, dh_true, batch, seq_pad, d_true, lane_mask, bias):
    """One ResidualAttentionBlock (pre-LN MHA + pre-LN QuickGELU MLP) on (BS, Dp) f32."""
    (ln1w, ln1b, wq, wk, wv, bq, bk, bv, wo, bo,
     ln2w, ln2b, wfc, bfc, wpr, bpr) = w
    BS, Dp = x.shape
    scale = 1.0 / float(np.sqrt(dh_true))

    # --- multi-head self-attention (per-head weights: no lane slicing / concat) ---
    h = _layernorm(x, ln1w[...], ln1b[...], d_true, lane_mask)
    h16 = h.astype(jnp.bfloat16)                       # single bf16 cast of the LN output
    attn = jnp.zeros_like(x)
    for hh in range(n_head):                           # H <= 2 here, static loop
        q = jnp.dot(h16, wq[hh], preferred_element_type=jnp.float32) + bq[hh]
        k = jnp.dot(h16, wk[hh], preferred_element_type=jnp.float32) + bk[hh]
        v = jnp.dot(h16, wv[hh], preferred_element_type=jnp.float32) + bv[hh]
        q3 = q.astype(jnp.bfloat16).reshape(batch, seq_pad, -1)   # aligned sublane split
        k3 = k.astype(jnp.bfloat16).reshape(batch, seq_pad, -1)
        v3 = v.astype(jnp.bfloat16).reshape(batch, seq_pad, -1)
        s = jnp.einsum('bqd,bkd->bqk', q3, k3,
                       preferred_element_type=jnp.float32) * scale
        s = s + bias[None]
        s = s - jnp.max(s, axis=-1, keepdims=True)
        p = jnp.exp(s)
        p = p * pl.reciprocal(jnp.sum(p, axis=-1, keepdims=True), approx=True)
        oh = jnp.einsum('bqk,bkd->bqd', p.astype(jnp.bfloat16), v3,
                        preferred_element_type=jnp.float32)
        attn = attn + jnp.dot(oh.reshape(BS, -1).astype(jnp.bfloat16), wo[hh],
                              preferred_element_type=jnp.float32)
    x = x + attn + bo[...]

    # --- MLP with QuickGELU ---
    h2 = _layernorm(x, ln2w[...], ln2b[...], d_true, lane_mask)
    ff = jnp.dot(h2.astype(jnp.bfloat16), wfc[...],
                 preferred_element_type=jnp.float32) + bfc[...]
    ff = ff * jax.nn.sigmoid(1.702 * ff)
    ff = jnp.dot(ff.astype(jnp.bfloat16), wpr[...],
                 preferred_element_type=jnp.float32) + bpr[...]
    return x + ff


# ----------------------------------------------------------------------------- stack kernels
def _visual_stack_kernel(patches_ref, conv1_ref, base_ref, lnpre_w, lnpre_b,
                         ln1w, ln1b, wq, wk, wv, bq, bk, bv, wo, bo,
                         ln2w, ln2b, wfc, bfc, wpr, bpr,
                         lnpost_w, lnpost_b, proj_ref,
                         feat_ref, act_ref,
                         *, n_head, dh_true, d_true, seq_true, seq_pad, batch):
    d_pad = act_ref.shape[-1]
    mask = _lane_mask(d_pad, d_true)
    bias = _attn_bias(seq_pad, seq_true, causal=False)

    # Layer 0 init: conv1 patch matmul + (CLS + pos-emb) add + ln_pre, all in-kernel.
    @pl.when(pl.program_id(0) == 0)
    def _init():
        pf = jnp.dot(patches_ref[...].astype(jnp.bfloat16), conv1_ref[...],
                     preferred_element_type=jnp.float32)
        x0 = pf + base_ref[...]
        act_ref[...] = _layernorm(x0, lnpre_w[...], lnpre_b[...], d_true, mask)

    w = (ln1w, ln1b, wq, wk, wv, bq, bk, bv, wo, bo, ln2w, ln2b, wfc, bfc, wpr, bpr)
    x = _residual_block(act_ref[...], w, n_head=n_head, dh_true=dh_true, batch=batch,
                        seq_pad=seq_pad, d_true=d_true, lane_mask=mask, bias=bias)
    act_ref[...] = x

    # Last-layer epilogue: CLS extraction + ln_post + visual projection.
    @pl.when(pl.program_id(0) == pl.num_programs(0) - 1)
    def _fin():
        rows = [act_ref[pl.ds(b * seq_pad, 1), :] for b in range(batch)]
        cls = rows[0] if batch == 1 else jnp.concatenate(rows, axis=0)
        y = _layernorm(cls, lnpost_w[...], lnpost_b[...], d_true, mask)
        feat_ref[...] = jnp.dot(y.astype(jnp.bfloat16), proj_ref[...],
                                preferred_element_type=jnp.float32)


def _text_stack_kernel(x0_ref,
                       ln1w, ln1b, wq, wk, wv, bq, bk, bv, wo, bo,
                       ln2w, ln2b, wfc, bfc, wpr, bpr,
                       lnf_w, lnf_b, proj_ref,
                       out_ref, act_ref,
                       *, n_head, dh_true, d_true, seq_true, seq_pad, batch):
    d_pad = act_ref.shape[-1]
    mask = _lane_mask(d_pad, d_true)
    bias = _attn_bias(seq_pad, seq_true, causal=True)

    @pl.when(pl.program_id(0) == 0)
    def _init():
        act_ref[...] = x0_ref[...]

    w = (ln1w, ln1b, wq, wk, wv, bq, bk, bv, wo, bo, ln2w, ln2b, wfc, bfc, wpr, bpr)
    x = _residual_block(act_ref[...], w, n_head=n_head, dh_true=dh_true, batch=batch,
                        seq_pad=seq_pad, d_true=d_true, lane_mask=mask, bias=bias)
    act_ref[...] = x

    # Last-layer epilogue: ln_final + text projection on all positions
    # (EOT gather is a data-dependent row pick, done in the wrapper).
    @pl.when(pl.program_id(0) == pl.num_programs(0) - 1)
    def _fin():
        y = _layernorm(x, lnf_w[...], lnf_b[...], d_true, mask)
        out_ref[...] = jnp.dot(y.astype(jnp.bfloat16), proj_ref[...],
                               preferred_element_type=jnp.float32)


# ----------------------------------------------------------------------------- logits kernel
def _logits_kernel(scale_ref, img_ref, txt_ref, out_ref):
    img = img_ref[...]
    txt = txt_ref[...]
    # padded embed lanes are exactly zero, so norms / dots over the padded width are exact
    img = img * jax.lax.rsqrt(jnp.sum(img * img, axis=-1, keepdims=True))
    txt = txt * jax.lax.rsqrt(jnp.sum(txt * txt, axis=-1, keepdims=True))
    out_ref[...] = scale_ref[0] * jnp.einsum('ie,te->it', img, txt,
                                             preferred_element_type=jnp.float32)


# ----------------------------------------------------------------------------- spec helpers
def _const_spec(shape):
    nd = len(shape)
    return pl.BlockSpec(shape, lambda l, _nd=nd: (0,) * _nd)


def _stack_spec(w):
    if w.ndim == 4:
        return pl.BlockSpec((None,) + w.shape[1:], lambda l: (l, 0, 0, 0))
    return pl.BlockSpec((None,) + w.shape[1:], lambda l: (l, 0, 0))


_STACK_NAMES = ('ln1w', 'ln1b', 'wq', 'wk', 'wv', 'bq', 'bk', 'bv', 'wo', 'bo',
                'ln2w', 'ln2b', 'wfc', 'bfc', 'wpr', 'bpr')


def _stacked_args_specs(stack):
    args, specs = [], []
    for name in _STACK_NAMES:
        w = stack[name]
        args.append(w)
        specs.append(_stack_spec(w))
    return args, specs


# ----------------------------------------------------------------------------- params
def _init_block(key, d_model):
    ks = jax.random.split(key, 8)
    std_attn = d_model ** -0.5
    std_fc = (2 * d_model) ** -0.5
    return dict(
        ln1_w=jnp.ones((d_model,), jnp.float32),
        ln1_b=jnp.zeros((d_model,), jnp.float32),
        in_proj_w=std_attn * jax.random.normal(ks[0], (3 * d_model, d_model), jnp.float32),
        in_proj_b=0.01 * jax.random.normal(ks[1], (3 * d_model,), jnp.float32),
        out_proj_w=std_attn * jax.random.normal(ks[2], (d_model, d_model), jnp.float32),
        out_proj_b=0.01 * jax.random.normal(ks[3], (d_model,), jnp.float32),
        ln2_w=jnp.ones((d_model,), jnp.float32),
        ln2_b=jnp.zeros((d_model,), jnp.float32),
        fc_w=std_fc * jax.random.normal(ks[4], (4 * d_model, d_model), jnp.float32),
        fc_b=0.01 * jax.random.normal(ks[5], (4 * d_model,), jnp.float32),
        proj_w=std_fc * jax.random.normal(ks[6], (d_model, 4 * d_model), jnp.float32),
        proj_b=0.01 * jax.random.normal(ks[7], (d_model,), jnp.float32),
    )


def _pack_blocks(block_list, d_true, n_head, d_pad, dh_pad):
    """PyTorch-shaped per-layer params -> stacked, zero-padded, per-head-split kernel
    layout.  Matmul weights bf16; LN params / biases f32."""
    D = d_true
    H = n_head
    dh = D // H

    def pad2(a, r, c):
        return _pad_axis(_pad_axis(a, r, 0), c, 1)

    acc = {n: [] for n in _STACK_NAMES}
    for bp in block_list:
        Wqkv_t = bp['in_proj_w'].T              # (D, 3D); y = x @ Wqkv_t
        bqkv = bp['in_proj_b']
        Wo_t = bp['out_proj_w'].T               # (D_in, D_out)
        acc['ln1w'].append(_pad_axis(bp['ln1_w'].reshape(1, D), d_pad, 1))
        acc['ln1b'].append(_pad_axis(bp['ln1_b'].reshape(1, D), d_pad, 1))
        acc['wq'].append(jnp.stack(
            [pad2(Wqkv_t[:, h * dh:(h + 1) * dh], d_pad, dh_pad) for h in range(H)]))
        acc['wk'].append(jnp.stack(
            [pad2(Wqkv_t[:, D + h * dh:D + (h + 1) * dh], d_pad, dh_pad) for h in range(H)]))
        acc['wv'].append(jnp.stack(
            [pad2(Wqkv_t[:, 2 * D + h * dh:2 * D + (h + 1) * dh], d_pad, dh_pad)
             for h in range(H)]))
        acc['bq'].append(jnp.stack(
            [_pad_axis(bqkv[h * dh:(h + 1) * dh].reshape(1, dh), dh_pad, 1)
             for h in range(H)]))
        acc['bk'].append(jnp.stack(
            [_pad_axis(bqkv[D + h * dh:D + (h + 1) * dh].reshape(1, dh), dh_pad, 1)
             for h in range(H)]))
        acc['bv'].append(jnp.stack(
            [_pad_axis(bqkv[2 * D + h * dh:2 * D + (h + 1) * dh].reshape(1, dh), dh_pad, 1)
             for h in range(H)]))
        acc['wo'].append(jnp.stack(
            [pad2(Wo_t[h * dh:(h + 1) * dh, :], dh_pad, d_pad) for h in range(H)]))
        acc['bo'].append(_pad_axis(bp['out_proj_b'].reshape(1, D), d_pad, 1))
        acc['ln2w'].append(_pad_axis(bp['ln2_w'].reshape(1, D), d_pad, 1))
        acc['ln2b'].append(_pad_axis(bp['ln2_b'].reshape(1, D), d_pad, 1))
        acc['wfc'].append(_pad_axis(bp['fc_w'].T, d_pad, 0))          # (d_pad, 4D)
        acc['bfc'].append(bp['fc_b'].reshape(1, 4 * D))
        acc['wpr'].append(_pad_axis(bp['proj_w'].T, d_pad, 1))        # (4D, d_pad)
        acc['bpr'].append(_pad_axis(bp['proj_b'].reshape(1, D), d_pad, 1))

    out = {n: jnp.stack(v, axis=0) for n, v in acc.items()}
    for n in ('wq', 'wk', 'wv', 'wo', 'wfc', 'wpr'):
        out[n] = out[n].astype(jnp.bfloat16)
    return out


def init_params(key, cfg):
    E = cfg['embed_dim']
    Vw = cfg['vision_width']
    p = cfg['vision_patch_size']
    res = cfg['image_resolution']
    Tw = cfg['transformer_width']
    Lctx = cfg['context_length']
    n_patch = (res // p) ** 2
    S_true = n_patch + 1
    S_pad = _ceil_to(S_true, SUB)
    Dv_pad = _ceil_to(Vw, LANE)
    Dt_pad = _ceil_to(Tw, LANE)
    E_pad = _ceil_to(E, LANE)
    cpp = 3 * p * p
    cpp_pad = _ceil_to(cpp, LANE)
    n_head_v = max(Vw // 64, 1)
    n_head_t = cfg['transformer_heads']

    keys = jax.random.split(key, 10)
    scale_v = Vw ** -0.5

    conv1_w = scale_v * jax.random.normal(keys[0], (Vw, 3, p, p), jnp.float32)
    conv1_mat = _pad_axis(_pad_axis(conv1_w.reshape(Vw, cpp).T, cpp_pad, 0),
                          Dv_pad, 1).astype(jnp.bfloat16)                     # (cpp_pad, Dv_pad)

    cls = scale_v * jax.random.normal(keys[1], (Vw,), jnp.float32)
    pos_v = scale_v * jax.random.normal(keys[2], (S_true, Vw), jnp.float32)
    base_row = _pad_axis(_pad_axis(pos_v, S_pad, 0), Dv_pad, 1)
    base_row = base_row.at[0, :Vw].add(cls)                                   # (S_pad, Dv_pad)

    params = dict(
        conv1_w_mat=conv1_mat,
        vis_base_row=base_row,
        ln_pre_w=_pad_axis(jnp.ones((1, Vw), jnp.float32), Dv_pad, 1),
        ln_pre_b=jnp.zeros((1, Dv_pad), jnp.float32),
        ln_post_w=_pad_axis(jnp.ones((1, Vw), jnp.float32), Dv_pad, 1),
        ln_post_b=jnp.zeros((1, Dv_pad), jnp.float32),
        visual_proj=_pad_axis(_pad_axis(
            scale_v * jax.random.normal(keys[3], (Vw, E), jnp.float32),
            Dv_pad, 0), E_pad, 1).astype(jnp.bfloat16),
        token_embedding_pad=_pad_axis(
            0.02 * jax.random.normal(keys[4], (cfg['vocab_size'], Tw), jnp.float32),
            Dt_pad, 1),
        text_pos_emb_pad=_pad_axis(
            0.01 * jax.random.normal(keys[5], (Lctx, Tw), jnp.float32), Dt_pad, 1),
        ln_final_w=_pad_axis(jnp.ones((1, Tw), jnp.float32), Dt_pad, 1),
        ln_final_b=jnp.zeros((1, Dt_pad), jnp.float32),
        text_projection=_pad_axis(_pad_axis(
            (Tw ** -0.5) * jax.random.normal(keys[6], (Tw, E), jnp.float32),
            Dt_pad, 0), E_pad, 1).astype(jnp.bfloat16),
        logit_scale=jnp.float32(np.log(1.0 / 0.07)),
    )

    vkeys = jax.random.split(keys[7], cfg['vision_layers'])
    params['visual_stack'] = _pack_blocks([_init_block(k, Vw) for k in vkeys],
                                          Vw, n_head_v, Dv_pad, LANE)
    tkeys = jax.random.split(keys[8], cfg['transformer_layers'])
    params['text_stack'] = _pack_blocks([_init_block(k, Tw) for k in tkeys],
                                        Tw, n_head_t, Dt_pad, LANE)
    return params


# ----------------------------------------------------------------------------- encoders
def encode_image(params, image, cfg):
    B, C, Hh, Ww = image.shape
    p = cfg['vision_patch_size']
    Vw = cfg['vision_width']
    E = cfg['embed_dim']
    L = cfg['vision_layers']
    nh, nw = Hh // p, Ww // p
    n_patch = nh * nw
    S_true = n_patch + 1
    S_pad = _ceil_to(S_true, SUB)
    D_pad = _ceil_to(Vw, LANE)
    E_pad = _ceil_to(E, LANE)
    cpp = C * p * p
    cpp_pad = _ceil_to(cpp, LANE)
    n_head = max(Vw // 64, 1)
    BS = B * S_pad

    # patch extraction (layout plumbing), rows laid out to match the padded token grid:
    # row 0 (CLS) and rows >= S_true are zero so they project to zero.
    patches = image.reshape(B, C, nh, p, nw, p).transpose(0, 2, 4, 1, 3, 5)
    patches = patches.reshape(B, n_patch, cpp)
    patches = jnp.pad(patches, ((0, 0), (1, S_pad - S_true), (0, cpp_pad - cpp)))
    patches = patches.reshape(BS, cpp_pad)

    base = jnp.broadcast_to(params['vis_base_row'][None], (B, S_pad, D_pad))
    base = base.reshape(BS, D_pad)

    head = [patches, params['conv1_w_mat'], base, params['ln_pre_w'], params['ln_pre_b']]
    args = list(head)
    specs = [_const_spec(a.shape) for a in head]
    largs, lspecs = _stacked_args_specs(params['visual_stack'])
    args += largs
    specs += lspecs
    tail = [params['ln_post_w'], params['ln_post_b'], params['visual_proj']]
    args += tail
    specs += [_const_spec(a.shape) for a in tail]

    kernel = functools.partial(_visual_stack_kernel, n_head=n_head, dh_true=Vw // n_head,
                               d_true=Vw, seq_true=S_true, seq_pad=S_pad, batch=B)
    feat = pl.pallas_call(
        kernel,
        grid=(L,),
        in_specs=specs,
        out_specs=pl.BlockSpec((B, E_pad), lambda l: (0, 0)),
        out_shape=jax.ShapeDtypeStruct((B, E_pad), jnp.float32),
        scratch_shapes=[pltpu.VMEM((BS, D_pad), jnp.float32)],
        compiler_params=pltpu.CompilerParams(dimension_semantics=("arbitrary",)),
    )(*args)
    return feat                                               # (B, E_pad), padded lanes == 0


def encode_text(params, text, cfg):
    B, Lctx = text.shape
    Tw = cfg['transformer_width']
    E = cfg['embed_dim']
    L = cfg['transformer_layers']
    n_head = cfg['transformer_heads']
    D_pad = _ceil_to(Tw, LANE)
    E_pad = _ceil_to(E, LANE)
    S_pad = _ceil_to(Lctx, SUB)
    BS = B * S_pad

    # token embedding gather + positional embedding (glue); emb_dropout=0 -> identity
    x0 = jnp.take(params['token_embedding_pad'], text, axis=0) + params['text_pos_emb_pad'][None]
    if S_pad > Lctx:
        x0 = jnp.pad(x0, ((0, 0), (0, S_pad - Lctx), (0, 0)))
    x0 = x0.reshape(BS, D_pad)

    args = [x0]
    specs = [_const_spec(x0.shape)]
    largs, lspecs = _stacked_args_specs(params['text_stack'])
    args += largs
    specs += lspecs
    tail = [params['ln_final_w'], params['ln_final_b'], params['text_projection']]
    args += tail
    specs += [_const_spec(a.shape) for a in tail]

    kernel = functools.partial(_text_stack_kernel, n_head=n_head, dh_true=Tw // n_head,
                               d_true=Tw, seq_true=Lctx, seq_pad=S_pad, batch=B)
    out = pl.pallas_call(
        kernel,
        grid=(L,),
        in_specs=specs,
        out_specs=pl.BlockSpec((BS, E_pad), lambda l: (0, 0)),
        out_shape=jax.ShapeDtypeStruct((BS, E_pad), jnp.float32),
        scratch_shapes=[pltpu.VMEM((BS, D_pad), jnp.float32)],
        compiler_params=pltpu.CompilerParams(dimension_semantics=("arbitrary",)),
    )(*args)

    out = out.reshape(B, S_pad, E_pad)
    eot = jnp.argmax(text, axis=-1)                           # same semantics as reference
    return out[jnp.arange(B), eot]                            # (B, E_pad)


def clip_forward(params, image, text, cfg=CFG):
    image_features = encode_image(params, image, cfg)
    text_features = encode_text(params, text, cfg)

    scale = jnp.exp(params['logit_scale']).reshape(1).astype(jnp.float32)
    logits_per_image = pl.pallas_call(
        _logits_kernel,
        in_specs=[pl.BlockSpec(memory_space=_SMEM),
                  pl.BlockSpec(memory_space=_VMEM),
                  pl.BlockSpec(memory_space=_VMEM)],
        out_specs=pl.BlockSpec(memory_space=_VMEM),
        out_shape=jax.ShapeDtypeStruct((image_features.shape[0], text_features.shape[0]),
                                       jnp.float32),
    )(scale, image_features, text_features)
    return logits_per_image, logits_per_image.T              # logits_per_text = li.T (wrapper)


# TODO(synk): drop_path / dropout / emb_dropout are identity here (p=0.0, eval mode) and the
#             joint space-time / TSM branches are disabled by config, so they are not
#             implemented in-kernel.

# ----------------------------------------------------------------------------- main
if __name__ == "__main__":
    params = init_params(jax.random.PRNGKey(0), CFG)

    kimg, ktxt = jax.random.split(jax.random.PRNGKey(0), 2)
    image = jax.random.normal(kimg, (2, 3, CFG['image_resolution'], CFG['image_resolution']),
                              jnp.float32)
    text = jax.random.randint(ktxt, (2, CFG['context_length']), 0, CFG['vocab_size'],
                              dtype=jnp.int32)

    logits_per_image, logits_per_text = jax.jit(clip_forward)(params, image, text)
    jax.block_until_ready((logits_per_image, logits_per_text))

    assert logits_per_image.shape == (2, 2) and logits_per_text.shape == (2, 2)
    assert bool(jnp.all(jnp.isfinite(logits_per_image)))
    assert bool(jnp.all(jnp.isfinite(logits_per_text)))
    print("KERNEL_OK")
</pallas_src>

<mosaic_0001>
module attributes {stable_mosaic.version = 11 : i64} {
  func.func @_visual_stack_kernel(%arg0: i32, %arg1: memref<16x256xf32, #tpu.memory_space<vmem>>, %arg2: memref<256x128xbf16, #tpu.memory_space<vmem>>, %arg3: memref<16x128xf32, #tpu.memory_space<vmem>>, %arg4: memref<1x128xf32, #tpu.memory_space<vmem>>, %arg5: memref<1x128xf32, #tpu.memory_space<vmem>>, %arg6: memref<1x1x128xf32, #tpu.memory_space<vmem>>, %arg7: memref<1x1x128xf32, #tpu.memory_space<vmem>>, %arg8: memref<1x1x128x128xbf16, #tpu.memory_space<vmem>>, %arg9: memref<1x1x128x128xbf16, #tpu.memory_space<vmem>>, %arg10: memref<1x1x128x128xbf16, #tpu.memory_space<vmem>>, %arg11: memref<1x1x1x128xf32, #tpu.memory_space<vmem>>, %arg12: memref<1x1x1x128xf32, #tpu.memory_space<vmem>>, %arg13: memref<1x1x1x128xf32, #tpu.memory_space<vmem>>, %arg14: memref<1x1x128x128xbf16, #tpu.memory_space<vmem>>, %arg15: memref<1x1x128xf32, #tpu.memory_space<vmem>>, %arg16: memref<1x1x128xf32, #tpu.memory_space<vmem>>, %arg17: memref<1x1x128xf32, #tpu.memory_space<vmem>>, %arg18: memref<1x128x256xbf16, #tpu.memory_space<vmem>>, %arg19: memref<1x1x256xf32, #tpu.memory_space<vmem>>, %arg20: memref<1x256x128xbf16, #tpu.memory_space<vmem>>, %arg21: memref<1x1x128xf32, #tpu.memory_space<vmem>>, %arg22: memref<1x128xf32, #tpu.memory_space<vmem>>, %arg23: memref<1x128xf32, #tpu.memory_space<vmem>>, %arg24: memref<128x128xbf16, #tpu.memory_space<vmem>>, %arg25: memref<2x128xf32, #tpu.memory_space<vmem>>, %arg26: memref<16x128xf32, #tpu.memory_space<vmem>>) attributes {dimension_semantics = [#tpu.dimension_semantics<arbitrary>], iteration_bounds = array<i64: 2>, scalar_prefetch = 0 : i64, scratch_operands = 1 : i64, tpu.core_type = #tpu.core_type<tc>, window_params = [{pipeline_mode = #tpu.pipeline_mode<synchronous>, transform_indices = @transform_0, window_bounds = array<i64: 16, 256>}, {pipeline_mode = #tpu.pipeline_mode<synchronous>, transform_indices = @transform_1, window_bounds = array<i64: 256, 128>}, {pipeline_mode = #tpu.pipeline_mode<synchronous>, transform_indices = @transform_2, window_bounds = array<i64: 16, 128>}, {pipeline_mode = #tpu.pipeline_mode<synchronous>, transform_indices = @transform_3, window_bounds = array<i64: 1, 128>}, {pipeline_mode = #tpu.pipeline_mode<synchronous>, transform_indices = @transform_4, window_bounds = array<i64: 1, 128>}, {transform_indices = @transform_5, window_bounds = array<i64: 1, 1, 128>}, {transform_indices = @transform_6, window_bounds = array<i64: 1, 1, 128>}, {transform_indices = @transform_7, window_bounds = array<i64: 1, 1, 128, 128>}, {transform_indices = @transform_8, window_bounds = array<i64: 1, 1, 128, 128>}, {transform_indices = @transform_9, window_bounds = array<i64: 1, 1, 128, 128>}, {transform_indices = @transform_10, window_bounds = array<i64: 1, 1, 1, 128>}, {transform_indices = @transform_11, window_bounds = array<i64: 1, 1, 1, 128>}, {transform_indices = @transform_12, window_bounds = array<i64: 1, 1, 1, 128>}, {transform_indices = @transform_13, window_bounds = array<i64: 1, 1, 128, 128>}, {transform_indices = @transform_14, window_bounds = array<i64: 1, 1, 128>}, {transform_indices = @transform_15, window_bounds = array<i64: 1, 1, 128>}, {transform_indices = @transform_16, window_bounds = array<i64: 1, 1, 128>}, {transform_indices = @transform_17, window_bounds = array<i64: 1, 128, 256>}, {transform_indices = @transform_18, window_bounds = array<i64: 1, 1, 256>}, {transform_indices = @transform_19, window_bounds = array<i64: 1, 256, 128>}, {transform_indices = @transform_20, window_bounds = array<i64: 1, 1, 128>}, {pipeline_mode = #tpu.pipeline_mode<synchronous>, transform_indices = @transform_21, window_bounds = array<i64: 1, 128>}, {pipeline_mode = #tpu.pipeline_mode<synchronous>, transform_indices = @transform_22, window_bounds = array<i64: 1, 128>}, {pipeline_mode = #tpu.pipeline_mode<synchronous>, transform_indices = @transform_23, window_bounds = array<i64: 128, 128>}, {pipeline_mode = #tpu.pipeline_mode<synchronous>, transform_indices = @transform_24, window_bounds = array<i64: 2, 128>}]} {
    %0 = tpu.iota {dimensions = array<i32: 1>} : vector<1x128xi32>
    %c64_i32 = arith.constant 64 : i32
    %1 = vector.broadcast %c64_i32 : i32 to vector<1x128xi32>
    %2 = arith.cmpi slt, %0, %1 : vector<1x128xi32>
    %3 = arith.extui %2 : vector<1x128xi1> to vector<1x128xi32>
    %4 = arith.sitofp %3 : vector<1x128xi32> to vector<1x128xf32>
    %5 = tpu.iota {dimensions = array<i32: 1>} : vector<8x8xi32>
    %c5_i32 = arith.constant 5 : i32
    %6 = vector.broadcast %c5_i32 : i32 to vector<8x8xi32>
    %7 = arith.cmpi sge, %5, %6 : vector<8x8xi32>
    %cst = arith.constant -1.000000e+30 : f32
    %cst_0 = arith.constant 0.000000e+00 : f32
    %8 = vector.broadcast %cst : f32 to vector<8x8xf32>
    %9 = vector.broadcast %cst_0 : f32 to vector<8x8xf32>
    %10 = arith.select %7, %8, %9 : vector<8x8xi1>, vector<8x8xf32>
    %c0_i32 = arith.constant 0 : i32
    %11 = arith.cmpi eq, %arg0, %c0_i32 : i32
    %12 = arith.extui %11 : i1 to i32
    %c0_i32_1 = arith.constant 0 : i32
    %13 = arith.cmpi ne, %12, %c0_i32_1 : i32
    scf.if %13 {
      %c0_85 = arith.constant 0 : index
      %c0_86 = arith.constant 0 : index
      %154 = vector.load %arg1[%c0_85, %c0_86] : memref<16x256xf32, #tpu.memory_space<vmem>>, vector<16x256xf32>
      %155 = arith.truncf %154 : vector<16x256xf32> to vector<16x256xbf16>
      %c0_87 = arith.constant 0 : index
      %c0_88 = arith.constant 0 : index
      %156 = vector.load %arg2[%c0_87, %c0_88] : memref<256x128xbf16, #tpu.memory_space<vmem>>, vector<256x128xbf16>
      %cst_89 = arith.constant dense<0.000000e+00> : vector<16x128xf32>
      %157 = tpu.matmul %155, %156, %cst_89 {dimension_numbers = #tpu.dot_dimension_numbers<[1], [0], [0], [1], [0, 0, 1, 1], [], []>} : vector<16x256xbf16>, vector<256x128xbf16>, vector<16x128xf32> -> vector<16x128xf32>
      %c0_90 = arith.constant 0 : index
      %c0_91 = arith.constant 0 : index
      %158 = vector.load %arg3[%c0_90, %c0_91] : memref<16x128xf32, #tpu.memory_space<vmem>>, vector<16x128xf32>
      %159 = arith.addf %157, %158 : vector<16x128xf32>
      %c0_92 = arith.constant 0 : index
      %c0_93 = arith.constant 0 : index
      %160 = vector.load %arg4[%c0_92, %c0_93] : memref<1x128xf32, #tpu.memory_space<vmem>>, vector<1x128xf32>
      %c0_94 = arith.constant 0 : index
      %c0_95 = arith.constant 0 : index
      %161 = vector.load %arg5[%c0_94, %c0_95] : memref<1x128xf32, #tpu.memory_space<vmem>>, vector<1x128xf32>
      %cst_96 = arith.constant dense<0.000000e+00> : vector<16xf32>
      %162 = vector.multi_reduction <add>, %159, %cst_96 [1] : vector<16x128xf32> to vector<16xf32>
      %163 = vector.shape_cast %162 : vector<16xf32> to vector<16x1xf32>
      %cst_97 = arith.constant 1.562500e-02 : f32
      %164 = vector.broadcast %cst_97 : f32 to vector<16x1xf32>
      %165 = arith.mulf %163, %164 : vector<16x1xf32>
      %166 = vector.broadcast %165 : vector<16x1xf32> to vector<16x128xf32>
      %167 = arith.subf %159, %166 : vector<16x128xf32>
      %168 = vector.broadcast %4 : vector<1x128xf32> to vector<16x128xf32>
      %169 = arith.mulf %167, %168 : vector<16x128xf32>
      %170 = arith.mulf %169, %169 : vector<16x128xf32>
      %cst_98 = arith.constant dense<0.000000e+00> : vector<16xf32>
      %171 = vector.multi_reduction <add>, %170, %cst_98 [1] : vector<16x128xf32> to vector<16xf32>
      %172 = vector.shape_cast %171 : vector<16xf32> to vector<16x1xf32>
      %cst_99 = arith.constant 1.562500e-02 : f32
      %173 = vector.broadcast %cst_99 : f32 to vector<16x1xf32>
      %174 = arith.mulf %172, %173 : vector<16x1xf32>
      %cst_100 = arith.constant 9.99999974E-6 : f32
      %175 = vector.broadcast %cst_100 : f32 to vector<16x1xf32>
      %176 = arith.addf %174, %175 : vector<16x1xf32>
      %177 = math.rsqrt %176 : vector<16x1xf32>
      %178 = vector.broadcast %177 : vector<16x1xf32> to vector<16x128xf32>
      %179 = arith.mulf %169, %178 : vector<16x128xf32>
      %180 = vector.broadcast %160 : vector<1x128xf32> to vector<16x128xf32>
      %181 = arith.mulf %179, %180 : vector<16x128xf32>
      %182 = vector.broadcast %161 : vector<1x128xf32> to vector<16x128xf32>
      %183 = arith.addf %181, %182 : vector<16x128xf32>
      %c0_101 = arith.constant 0 : index
      %c0_102 = arith.constant 0 : index
      %184 = vector.load %arg26[%c0_101, %c0_102] : memref<16x128xf32, #tpu.memory_space<vmem>>, vector<16x128xf32>
      tpu.vector_store %arg26[%c0_101, %c0_102], %183 {strides = array<i32>} : memref<16x128xf32, #tpu.memory_space<vmem>>, vector<16x128xf32>,
    } else {
    }
    %c0 = arith.constant 0 : index
    %c0_2 = arith.constant 0 : index
    %14 = vector.load %arg26[%c0, %c0_2] : memref<16x128xf32, #tpu.memory_space<vmem>>, vector<16x128xf32>
    %c0_3 = arith.constant 0 : index
    %c0_4 = arith.constant 0 : index
    %c0_5 = arith.constant 0 : index
    %15 = vector.load %arg6[%c0_3, %c0_4, %c0_5] : memref<1x1x128xf32, #tpu.memory_space<vmem>>, vector<1x1x128xf32>
    %16 = vector.shape_cast %15 : vector<1x1x128xf32> to vector<1x128xf32>
    %c0_6 = arith.constant 0 : index
    %c0_7 = arith.constant 0 : index
    %c0_8 = arith.constant 0 : index
    %17 = vector.load %arg7[%c0_6, %c0_7, %c0_8] : memref<1x1x128xf32, #tpu.memory_space<vmem>>, vector<1x1x128xf32>
    %18 = vector.shape_cast %17 : vector<1x1x128xf32> to vector<1x128xf32>
    %cst_9 = arith.constant dense<0.000000e+00> : vector<16xf32>
    %19 = vector.multi_reduction <add>, %14, %cst_9 [1] : vector<16x128xf32> to vector<16xf32>
    %20 = vector.shape_cast %19 : vector<16xf32> to vector<16x1xf32>
    %cst_10 = arith.constant 1.562500e-02 : f32
    %21 = vector.broadcast %cst_10 : f32 to vector<16x1xf32>
    %22 = arith.mulf %20, %21 : vector<16x1xf32>
    %23 = vector.broadcast %22 : vector<16x1xf32> to vector<16x128xf32>
    %24 = arith.subf %14, %23 : vector<16x128xf32>
    %25 = vector.broadcast %4 : vector<1x128xf32> to vector<16x128xf32>
    %26 = arith.mulf %24, %25 : vector<16x128xf32>
    %27 = arith.mulf %26, %26 : vector<16x128xf32>
    %cst_11 = arith.constant dense<0.000000e+00> : vector<16xf32>
    %28 = vector.multi_reduction <add>, %27, %cst_11 [1] : vector<16x128xf32> to vector<16xf32>
    %29 = vector.shape_cast %28 : vector<16xf32> to vector<16x1xf32>
    %cst_12 = arith.constant 1.562500e-02 : f32
    %30 = vector.broadcast %cst_12 : f32 to vector<16x1xf32>
    %31 = arith.mulf %29, %30 : vector<16x1xf32>
    %cst_13 = arith.constant 9.99999974E-6 : f32
    %32 = vector.broadcast %cst_13 : f32 to vector<16x1xf32>
    %33 = arith.addf %31, %32 : vector<16x1xf32>
    %34 = math.rsqrt %33 : vector<16x1xf32>
    %35 = vector.broadcast %34 : vector<16x1xf32> to vector<16x128xf32>
    %36 = arith.mulf %26, %35 : vector<16x128xf32>
    %37 = vector.broadcast %16 : vector<1x128xf32> to vector<16x128xf32>
    %38 = arith.mulf %36, %37 : vector<16x128xf32>
    %39 = vector.broadcast %18 : vector<1x128xf32> to vector<16x128xf32>
    %40 = arith.addf %38, %39 : vector<16x128xf32>
    %41 = arith.truncf %40 : vector<16x128xf32> to vector<16x128xbf16>
    %cst_14 = arith.constant 0.000000e+00 : f32
    %42 = vector.broadcast %cst_14 : f32 to vector<16x128xf32>
    %c0_15 = arith.constant 0 : index
    %c0_16 = arith.constant 0 : index
    %c0_17 = arith.constant 0 : index
    %c0_18 = arith.constant 0 : index
    %43 = vector.load %arg8[%c0_15, %c0_16, %c0_17, %c0_18] : memref<1x1x128x128xbf16, #tpu.memory_space<vmem>>, vector<1x1x128x128xbf16>
    %44 = vector.shape_cast %43 : vector<1x1x128x128xbf16> to vector<128x128xbf16>
    %cst_19 = arith.constant dense<0.000000e+00> : vector<16x128xf32>
    %45 = tpu.matmul %41, %44, %cst_19 {dimension_numbers = #tpu.dot_dimension_numbers<[1], [0], [0], [1], [0, 0, 1, 1], [], []>} : vector<16x128xbf16>, vector<128x128xbf16>, vector<16x128xf32> -> vector<16x128xf32>
    %c0_20 = arith.constant 0 : index
    %c0_21 = arith.constant 0 : index
    %c0_22 = arith.constant 0 : index
    %c0_23 = arith.constant 0 : index
    %46 = vector.load %arg11[%c0_20, %c0_21, %c0_22, %c0_23] : memref<1x1x1x128xf32, #tpu.memory_space<vmem>>, vector<1x1x1x128xf32>
    %47 = vector.shape_cast %46 : vector<1x1x1x128xf32> to vector<1x128xf32>
    %48 = vector.broadcast %47 : vector<1x128xf32> to vector<16x128xf32>
    %49 = arith.addf %45, %48 : vector<16x128xf32>
    %c0_24 = arith.constant 0 : index
    %c0_25 = arith.constant 0 : index
    %c0_26 = arith.constant 0 : index
    %c0_27 = arith.constant 0 : index
    %50 = vector.load %arg9[%c0_24, %c0_25, %c0_26, %c0_27] : memref<1x1x128x128xbf16, #tpu.memory_space<vmem>>, vector<1x1x128x128xbf16>
    %51 = vector.shape_cast %50 : vector<1x1x128x128xbf16> to vector<128x128xbf16>
    %cst_28 = arith.constant dense<0.000000e+00> : vector<16x128xf32>
    %52 = tpu.matmul %41, %51, %cst_28 {dimension_numbers = #tpu.dot_dimension_numbers<[1], [0], [0], [1], [0, 0, 1, 1], [], []>} : vector<16x128xbf16>, vector<128x128xbf16>, vector<16x128xf32> -> vector<16x128xf32>
    %c0_29 = arith.constant 0 : index
    %c0_30 = arith.constant 0 : index
    %c0_31 = arith.constant 0 : index
    %c0_32 = arith.constant 0 : index
    %53 = vector.load %arg12[%c0_29, %c0_30, %c0_31, %c0_32] : memref<1x1x1x128xf32, #tpu.memory_space<vmem>>, vector<1x1x1x128xf32>
    %54 = vector.shape_cast %53 : vector<1x1x1x128xf32> to vector<1x128xf32>
    %55 = vector.broadcast %54 : vector<1x128xf32> to vector<16x128xf32>
    %56 = arith.addf %52, %55 : vector<16x128xf32>
    %c0_33 = arith.constant 0 : index
    %c0_34 = arith.constant 0 : index
    %c0_35 = arith.constant 0 : index
    %c0_36 = arith.constant 0 : index
    %57 = vector.load %arg10[%c0_33, %c0_34, %c0_35, %c0_36] : memref<1x1x128x128xbf16, #tpu.memory_space<vmem>>, vector<1x1x128x128xbf16>
    %58 = vector.shape_cast %57 : vector<1x1x128x128xbf16> to vector<128x128xbf16>
    %cst_37 = arith.constant dense<0.000000e+00> : vector<16x128xf32>
    %59 = tpu.matmul %41, %58, %cst_37 {dimension_numbers = #tpu.dot_dimension_numbers<[1], [0], [0], [1], [0, 0, 1, 1], [], []>} : vector<16x128xbf16>, vector<128x128xbf16>, vector<16x128xf32> -> vector<16x128xf32>
    %c0_38 = arith.constant 0 : index
    %c0_39 = arith.constant 0 : index
    %c0_40 = arith.constant 0 : index
    %c0_41 = arith.constant 0 : index
    %60 = vector.load %arg13[%c0_38, %c0_39, %c0_40, %c0_41] : memref<1x1x1x128xf32, #tpu.memory_space<vmem>>, vector<1x1x1x128xf32>
    %61 = vector.shape_cast %60 : vector<1x1x1x128xf32> to vector<1x128xf32>
    %62 = vector.broadcast %61 : vector<1x128xf32> to vector<16x128xf32>
    %63 = arith.addf %59, %62 : vector<16x128xf32>
    %64 = arith.truncf %49 : vector<16x128xf32> to vector<16x128xbf16>
    %65 = vector.shape_cast %64 : vector<16x128xbf16> to vector<2x8x128xbf16>
    %66 = arith.truncf %56 : vector<16x128xf32> to vector<16x128xbf16>
    %67 = vector.shape_cast %66 : vector<16x128xbf16> to vector<2x8x128xbf16>
    %68 = arith.truncf %63 : vector<16x128xf32> to vector<16x128xbf16>
    %69 = vector.shape_cast %68 : vector<16x128xbf16> to vector<2x8x128xbf16>
    "tpu.trace_start"() <{level = 10 : i32, message = "bqd,bkd->bqk"}> : () -> ()
    %cst_42 = arith.constant dense<0.000000e+00> : vector<2x8x8xf32>
    %70 = tpu.matmul %65, %67, %cst_42 {dimension_numbers = #tpu.dot_dimension_numbers<[2], [2], [1], [1], [0, 0, 0, 1, 1, 1], [0], [0]>} : vector<2x8x128xbf16>, vector<2x8x128xbf16>, vector<2x8x8xf32> -> vector<2x8x8xf32>
    "tpu.trace_stop"() : () -> ()
    %cst_43 = arith.constant 1.250000e-01 : f32
    %71 = vector.broadcast %cst_43 : f32 to vector<2x8x8xf32>
    %72 = arith.mulf %70, %71 : vector<2x8x8xf32>
    %73 = vector.shape_cast %10 : vector<8x8xf32> to vector<1x8x8xf32>
    %74 = vector.broadcast %73 : vector<1x8x8xf32> to vector<2x8x8xf32>
    %75 = arith.addf %72, %74 : vector<2x8x8xf32>
    %cst_44 = arith.constant dense<0xFF800000> : vector<2x8xf32>
    %76 = vector.multi_reduction <maximumf>, %75, %cst_44 [2] : vector<2x8x8xf32> to vector<2x8xf32>
    %77 = vector.shape_cast %76 : vector<2x8xf32> to vector<2x8x1xf32>
    %78 = vector.broadcast %77 : vector<2x8x1xf32> to vector<2x8x8xf32>
    %79 = arith.subf %75, %78 : vector<2x8x8xf32>
    %80 = math.exp %79 : vector<2x8x8xf32>
    %cst_45 = arith.constant dense<0.000000e+00> : vector<2x8xf32>
    %81 = vector.multi_reduction <add>, %80, %cst_45 [2] : vector<2x8x8xf32> to vector<2x8xf32>
    %82 = vector.shape_cast %81 : vector<2x8xf32> to vector<2x8x1xf32>
    %83 = tpu.reciprocal %82 {approx = true} : vector<2x8x1xf32> -> vector<2x8x1xf32>
    %84 = vector.broadcast %83 : vector<2x8x1xf32> to vector<2x8x8xf32>
    %85 = arith.mulf %80, %84 : vector<2x8x8xf32>
    %86 = arith.truncf %85 : vector<2x8x8xf32> to vector<2x8x8xbf16>
    "tpu.trace_start"() <{level = 10 : i32, message = "bqk,bkd->bqd"}> : () -> ()
    %cst_46 = arith.constant dense<0.000000e+00> : vector<2x8x128xf32>
    %87 = tpu.matmul %86, %69, %cst_46 {dimension_numbers = #tpu.dot_dimension_numbers<[2], [1], [1], [2], [0, 0, 0, 1, 1, 2], [0], [0]>} : vector<2x8x8xbf16>, vector<2x8x128xbf16>, vector<2x8x128xf32> -> vector<2x8x128xf32>
    "tpu.trace_stop"() : () -> ()
    %88 = vector.shape_cast %87 : vector<2x8x128xf32> to vector<16x128xf32>
    %89 = arith.truncf %88 : vector<16x128xf32> to vector<16x128xbf16>
    %c0_47 = arith.constant 0 : index
    %c0_48 = arith.constant 0 : index
    %c0_49 = arith.constant 0 : index
    %c0_50 = arith.constant 0 : index
    %90 = vector.load %arg14[%c0_47, %c0_48, %c0_49, %c0_50] : memref<1x1x128x128xbf16, #tpu.memory_space<vmem>>, vector<1x1x128x128xbf16>
    %91 = vector.shape_cast %90 : vector<1x1x128x128xbf16> to vector<128x128xbf16>
    %cst_51 = arith.constant dense<0.000000e+00> : vector<16x128xf32>
    %92 = tpu.matmul %89, %91, %cst_51 {dimension_numbers = #tpu.dot_dimension_numbers<[1], [0], [0], [1], [0, 0, 1, 1], [], []>} : vector<16x128xbf16>, vector<128x128xbf16>, vector<16x128xf32> -> vector<16x128xf32>
    %93 = arith.addf %42, %92 : vector<16x128xf32>
    %94 = arith.addf %14, %93 : vector<16x128xf32>
    %c0_52 = arith.constant 0 : index
    %c0_53 = arith.constant 0 : index
    %c0_54 = arith.constant 0 : index
    %95 = vector.load %arg15[%c0_52, %c0_53, %c0_54] : memref<1x1x128xf32, #tpu.memory_space<vmem>>, vector<1x1x128xf32>
    %96 = vector.shape_cast %95 : vector<1x1x128xf32> to vector<1x128xf32>
    %97 = vector.broadcast %96 : vector<1x128xf32> to vector<16x128xf32>
    %98 = arith.addf %94, %97 : vector<16x128xf32>
    %c0_55 = arith.constant 0 : index
    %c0_56 = arith.constant 0 : index
    %c0_57 = arith.constant 0 : index
    %99 = vector.load %arg16[%c0_55, %c0_56, %c0_57] : memref<1x1x128xf32, #tpu.memory_space<vmem>>, vector<1x1x128xf32>
    %100 = vector.shape_cast %99 : vector<1x1x128xf32> to vector<1x128xf32>
    %c0_58 = arith.constant 0 : index
    %c0_59 = arith.constant 0 : index
    %c0_60 = arith.constant 0 : index
    %101 = vector.load %arg17[%c0_58, %c0_59, %c0_60] : memref<1x1x128xf32, #tpu.memory_space<vmem>>, vector<1x1x128xf32>
    %102 = vector.shape_cast %101 : vector<1x1x128xf32> to vector<1x128xf32>
    %cst_61 = arith.constant dense<0.000000e+00> : vector<16xf32>
    %103 = vector.multi_reduction <add>, %98, %cst_61 [1] : vector<16x128xf32> to vector<16xf32>
    %104 = vector.shape_cast %103 : vector<16xf32> to vector<16x1xf32>
    %cst_62 = arith.constant 1.562500e-02 : f32
    %105 = vector.broadcast %cst_62 : f32 to vector<16x1xf32>
    %106 = arith.mulf %104, %105 : vector<16x1xf32>
    %107 = vector.broadcast %106 : vector<16x1xf32> to vector<16x128xf32>
    %108 = arith.subf %98, %107 : vector<16x128xf32>
    %109 = vector.broadcast %4 : vector<1x128xf32> to vector<16x128xf32>
    %110 = arith.mulf %108, %109 : vector<16x128xf32>
    %111 = arith.mulf %110, %110 : vector<16x128xf32>
    %cst_63 = arith.constant dense<0.000000e+00> : vector<16xf32>
    %112 = vector.multi_reduction <add>, %111, %cst_63 [1] : vector<16x128xf32> to vector<16xf32>
    %113 = vector.shape_cast %112 : vector<16xf32> to vector<16x1xf32>
    %cst_64 = arith.constant 1.562500e-02 : f32
    %114 = vector.broadcast %cst_64 : f32 to vector<16x1xf32>
    %115 = arith.mulf %113, %114 : vector<16x1xf32>
    %cst_65 = arith.constant 9.99999974E-6 : f32
    %116 = vector.broadcast %cst_65 : f32 to vector<16x1xf32>
    %117 = arith.addf %115, %116 : vector<16x1xf32>
    %118 = math.rsqrt %117 : vector<16x1xf32>
    %119 = vector.broadcast %118 : vector<16x1xf32> to vector<16x128xf32>
    %120 = arith.mulf %110, %119 : vector<16x128xf32>
    %121 = vector.broadcast %100 : vector<1x128xf32> to vector<16x128xf32>
    %122 = arith.mulf %120, %121 : vector<16x128xf32>
    %123 = vector.broadcast %102 : vector<1x128xf32> to vector<16x128xf32>
    %124 = arith.addf %122, %123 : vector<16x128xf32>
    %125 = arith.truncf %124 : vector<16x128xf32> to vector<16x128xbf16>
    %c0_66 = arith.constant 0 : index
    %c0_67 = arith.constant 0 : index
    %c0_68 = arith.constant 0 : index
    %126 = vector.load %arg18[%c0_66, %c0_67, %c0_68] : memref<1x128x256xbf16, #tpu.memory_space<vmem>>, vector<1x128x256xbf16>
    %127 = vector.shape_cast %126 : vector<1x128x256xbf16> to vector<128x256xbf16>
    %cst_69 = arith.constant dense<0.000000e+00> : vector<16x256xf32>
    %128 = tpu.matmul %125, %127, %cst_69 {dimension_numbers = #tpu.dot_dimension_numbers<[1], [0], [0], [1], [0, 0, 1, 1], [], []>} : vector<16x128xbf16>, vector<128x256xbf16>, vector<16x256xf32> -> vector<16x256xf32>
    %c0_70 = arith.constant 0 : index
    %c0_71 = arith.constant 0 : index
    %c0_72 = arith.constant 0 : index
    %129 = vector.load %arg19[%c0_70, %c0_71, %c0_72] : memref<1x1x256xf32, #tpu.memory_space<vmem>>, vector<1x1x256xf32>
    %130 = vector.shape_cast %129 : vector<1x1x256xf32> to vector<1x256xf32>
    %131 = vector.broadcast %130 : vector<1x256xf32> to vector<16x256xf32>
    %132 = arith.addf %128, %131 : vector<16x256xf32>
    %cst_73 = arith.constant 1.702000e+00 : f32
    %133 = vector.broadcast %cst_73 : f32 to vector<16x256xf32>
    %134 = arith.mulf %133, %132 : vector<16x256xf32>
    %135 = arith.negf %134 : vector<16x256xf32>
    %136 = math.exp %135 : vector<16x256xf32>
    %cst_74 = arith.constant 1.000000e+00 : f32
    %137 = vector.broadcast %cst_74 : f32 to vector<16x256xf32>
    %138 = arith.addf %137, %136 : vector<16x256xf32>
    %139 = arith.divf %137, %138 : vector<16x256xf32>
    %140 = arith.mulf %132, %139 : vector<16x256xf32>
    %141 = arith.truncf %140 : vector<16x256xf32> to vector<16x256xbf16>
    %c0_75 = arith.constant 0 : index
    %c0_76 = arith.constant 0 : index
    %c0_77 = arith.constant 0 : index
    %142 = vector.load %arg20[%c0_75, %c0_76, %c0_77] : memref<1x256x128xbf16, #tpu.memory_space<vmem>>, vector<1x256x128xbf16>
    %143 = vector.shape_cast %142 : vector<1x256x128xbf16> to vector<256x128xbf16>
    %cst_78 = arith.constant dense<0.000000e+00> : vector<16x128xf32>
    %144 = tpu.matmul %141, %143, %cst_78 {dimension_numbers = #tpu.dot_dimension_numbers<[1], [0], [0], [1], [0, 0, 1, 1], [], []>} : vector<16x256xbf16>, vector<256x128xbf16>, vector<16x128xf32> -> vector<16x128xf32>
    %c0_79 = arith.constant 0 : index
    %c0_80 = arith.constant 0 : index
    %c0_81 = arith.constant 0 : index
    %145 = vector.load %arg21[%c0_79, %c0_80, %c0_81] : memref<1x1x128xf32, #tpu.memory_space<vmem>>, vector<1x1x128xf32>
    %146 = vector.shape_cast %145 : vector<1x1x128xf32> to vector<1x128xf32>
    %147 = vector.broadcast %146 : vector<1x128xf32> to vector<16x128xf32>
    %148 = arith.addf %144, %147 : vector<16x128xf32>
    %149 = arith.addf %98, %148 : vector<16x128xf32>
    %c0_82 = arith.constant 0 : index
    %c0_83 = arith.constant 0 : index
    %150 = vector.load %arg26[%c0_82, %c0_83] : memref<16x128xf32, #tpu.memory_space<vmem>>, vector<16x128xf32>
    tpu.vector_store %arg26[%c0_82, %c0_83], %149 {strides = array<i32>} : memref<16x128xf32, #tpu.memory_space<vmem>>, vector<16x128xf32>,
    %c1_i32 = arith.constant 1 : i32
    %151 = arith.cmpi eq, %arg0, %c1_i32 : i32
    %152 = arith.extui %151 : i1 to i32
    %c0_i32_84 = arith.constant 0 : i32
    %153 = arith.cmpi ne, %152, %c0_i32_84 : i32
    scf.if %153 {
      %c0_85 = arith.constant 0 : index
      %c0_86 = arith.constant 0 : index
      %154 = vector.load %arg26[%c0_85, %c0_86] : memref<16x128xf32, #tpu.memory_space<vmem>>, vector<1x128xf32>
      %c8 = arith.constant 8 : index
      %c0_87 = arith.constant 0 : index
      %155 = vector.load %arg26[%c8, %c0_87] : memref<16x128xf32, #tpu.memory_space<vmem>>, vector<1x128xf32>
      %156 = tpu.concatenate %154, %155 in 0 : vector<1x128xf32>, vector<1x128xf32> -> vector<2x128xf32>
      %c0_88 = arith.constant 0 : index
      %c0_89 = arith.constant 0 : index
      %157 = vector.load %arg22[%c0_88, %c0_89] : memref<1x128xf32, #tpu.memory_space<vmem>>, vector<1x128xf32>
      %c0_90 = arith.constant 0 : index
      %c0_91 = arith.constant 0 : index
      %158 = vector.load %arg23[%c0_90, %c0_91] : memref<1x128xf32, #tpu.memory_space<vmem>>, vector<1x128xf32>
      %cst_92 = arith.constant dense<0.000000e+00> : vector<2xf32>
      %159 = vector.multi_reduction <add>, %156, %cst_92 [1] : vector<2x128xf32> to vector<2xf32>
      %160 = vector.shape_cast %159 : vector<2xf32> to vector<2x1xf32>
      %cst_93 = arith.constant 1.562500e-02 : f32
      %161 = vector.broadcast %cst_93 : f32 to vector<2x1xf32>
      %162 = arith.mulf %160, %161 : vector<2x1xf32>
      %163 = vector.broadcast %162 : vector<2x1xf32> to vector<2x128xf32>
      %164 = arith.subf %156, %163 : vector<2x128xf32>
      %165 = vector.broadcast %4 : vector<1x128xf32> to vector<2x128xf32>
      %166 = arith.mulf %164, %165 : vector<2x128xf32>
      %167 = arith.mulf %166, %166 : vector<2x128xf32>
      %cst_94 = arith.constant dense<0.000000e+00> : vector<2xf32>
      %168 = vector.multi_reduction <add>, %167, %cst_94 [1] : vector<2x128xf32> to vector<2xf32>
      %169 = vector.shape_cast %168 : vector<2xf32> to vector<2x1xf32>
      %cst_95 = arith.constant 1.562500e-02 : f32
      %170 = vector.broadcast %cst_95 : f32 to vector<2x1xf32>
      %171 = arith.mulf %169, %170 : vector<2x1xf32>
      %cst_96 = arith.constant 9.99999974E-6 : f32
      %172 = vector.broadcast %cst_96 : f32 to vector<2x1xf32>
      %173 = arith.addf %171, %172 : vector<2x1xf32>
      %174 = math.rsqrt %173 : vector<2x1xf32>
      %175 = vector.broadcast %174 : vector<2x1xf32> to vector<2x128xf32>
      %176 = arith.mulf %166, %175 : vector<2x128xf32>
      %177 = vector.broadcast %157 : vector<1x128xf32> to vector<2x128xf32>
      %178 = arith.mulf %176, %177 : vector<2x128xf32>
      %179 = vector.broadcast %158 : vector<1x128xf32> to vector<2x128xf32>
      %180 = arith.addf %178, %179 : vector<2x128xf32>
      %181 = arith.truncf %180 : vector<2x128xf32> to vector<2x128xbf16>
      %c0_97 = arith.constant 0 : index
      %c0_98 = arith.constant 0 : index
      %182 = vector.load %arg24[%c0_97, %c0_98] : memref<128x128xbf16, #tpu.memory_space<vmem>>, vector<128x128xbf16>
      %cst_99 = arith.constant dense<0.000000e+00> : vector<2x128xf32>
      %183 = tpu.matmul %181, %182, %cst_99 {dimension_numbers = #tpu.dot_dimension_numbers<[1], [0], [0], [1], [0, 0, 1, 1], [], []>} : vector<2x128xbf16>, vector<128x128xbf16>, vector<2x128xf32> -> vector<2x128xf32>
      %c0_100 = arith.constant 0 : index
      %c0_101 = arith.constant 0 : index
      %184 = vector.load %arg25[%c0_100, %c0_101] : memref<2x128xf32, #tpu.memory_space<vmem>>, vector<2x128xf32>
      tpu.vector_store %arg25[%c0_100, %c0_101], %183 {strides = array<i32>} : memref<2x128xf32, #tpu.memory_space<vmem>>, vector<2x128xf32>,
    } else {
    }
    return
  }
  func.func @transform_0(%arg0: i32) -> (i32, i32) {
    %c0_i32 = arith.constant 0 : i32
    %c0_i32_0 = arith.constant 0 : i32
    %c0_i32_1 = arith.constant 0 : i32
    return %c0_i32, %c0_i32_0 : i32, i32
  }
  func.func @transform_1(%arg0: i32) -> (i32, i32) {
    %c0_i32 = arith.constant 0 : i32
    %c0_i32_0 = arith.constant 0 : i32
    %c0_i32_1 = arith.constant 0 : i32
    return %c0_i32, %c0_i32_0 : i32, i32
  }
  func.func @transform_2(%arg0: i32) -> (i32, i32) {
    %c0_i32 = arith.constant 0 : i32
    %c0_i32_0 = arith.constant 0 : i32
    %c0_i32_1 = arith.constant 0 : i32
    return %c0_i32, %c0_i32_0 : i32, i32
  }
  func.func @transform_3(%arg0: i32) -> (i32, i32) {
    %c0_i32 = arith.constant 0 : i32
    %c0_i32_0 = arith.constant 0 : i32
    %c0_i32_1 = arith.constant 0 : i32
    return %c0_i32, %c0_i32_0 : i32, i32
  }
  func.func @transform_4(%arg0: i32) -> (i32, i32) {
    %c0_i32 = arith.constant 0 : i32
    %c0_i32_0 = arith.constant 0 : i32
    %c0_i32_1 = arith.constant 0 : i32
    return %c0_i32, %c0_i32_0 : i32, i32
  }
  func.func @transform_5(%arg0: i32) -> (i32, i32, i32) {
    %c0_i32 = arith.constant 0 : i32
    %c0_i32_0 = arith.constant 0 : i32
    %c0_i32_1 = arith.constant 0 : i32
    return %arg0, %c0_i32, %c0_i32_0 : i32, i32, i32
  }
  func.func @transform_6(%arg0: i32) -> (i32, i32, i32) {
    %c0_i32 = arith.constant 0 : i32
    %c0_i32_0 = arith.constant 0 : i32
    %c0_i32_1 = arith.constant 0 : i32
    return %arg0, %c0_i32, %c0_i32_0 : i32, i32, i32
  }
  func.func @transform_7(%arg0: i32) -> (i32, i32, i32, i32) {
    %c0_i32 = arith.constant 0 : i32
    %c0_i32_0 = arith.constant 0 : i32
    %c0_i32_1 = arith.constant 0 : i32
    %c0_i32_2 = arith.constant 0 : i32
    return %arg0, %c0_i32, %c0_i32_0, %c0_i32_1 : i32, i32, i32, i32
  }
  func.func @transform_8(%arg0: i32) -> (i32, i32, i32, i32) {
    %c0_i32 = arith.constant 0 : i32
    %c0_i32_0 = arith.constant 0 : i32
    %c0_i32_1 = arith.constant 0 : i32
    %c0_i32_2 = arith.constant 0 : i32
    return %arg0, %c0_i32, %c0_i32_0, %c0_i32_1 : i32, i32, i32, i32
  }
  func.func @transform_9(%arg0: i32) -> (i32, i32, i32, i32) {
    %c0_i32 = arith.constant 0 : i32
    %c0_i32_0 = arith.constant 0 : i32
    %c0_i32_1 = arith.constant 0 : i32
    %c0_i32_2 = arith.constant 0 : i32
    return %arg0, %c0_i32, %c0_i32_0, %c0_i32_1 : i32, i32, i32, i32
  }
  func.func @transform_10(%arg0: i32) -> (i32, i32, i32, i32) {
    %c0_i32 = arith.constant 0 : i32
    %c0_i32_0 = arith.constant 0 : i32
    %c0_i32_1 = arith.constant 0 : i32
    %c0_i32_2 = arith.constant 0 : i32
    return %arg0, %c0_i32, %c0_i32_0, %c0_i32_1 : i32, i32, i32, i32
  }
  func.func @transform_11(%arg0: i32) -> (i32, i32, i32, i32) {
    %c0_i32 = arith.constant 0 : i32
    %c0_i32_0 = arith.constant 0 : i32
    %c0_i32_1 = arith.constant 0 : i32
    %c0_i32_2 = arith.constant 0 : i32
    return %arg0, %c0_i32, %c0_i32_0, %c0_i32_1 : i32, i32, i32, i32
  }
  func.func @transform_12(%arg0: i32) -> (i32, i32, i32, i32) {
    %c0_i32 = arith.constant 0 : i32
    %c0_i32_0 = arith.constant 0 : i32
    %c0_i32_1 = arith.constant 0 : i32
    %c0_i32_2 = arith.constant 0 : i32
    return %arg0, %c0_i32, %c0_i32_0, %c0_i32_1 : i32, i32, i32, i32
  }
  func.func @transform_13(%arg0: i32) -> (i32, i32, i32, i32) {
    %c0_i32 = arith.constant 0 : i32
    %c0_i32_0 = arith.constant 0 : i32
    %c0_i32_1 = arith.constant 0 : i32
    %c0_i32_2 = arith.constant 0 : i32
    return %arg0, %c0_i32, %c0_i32_0, %c0_i32_1 : i32, i32, i32, i32
  }
  func.func @transform_14(%arg0: i32) -> (i32, i32, i32) {
    %c0_i32 = arith.constant 0 : i32
    %c0_i32_0 = arith.constant 0 : i32
    %c0_i32_1 = arith.constant 0 : i32
    return %arg0, %c0_i32, %c0_i32_0 : i32, i32, i32
  }
  func.func @transform_15(%arg0: i32) -> (i32, i32, i32) {
    %c0_i32 = arith.constant 0 : i32
    %c0_i32_0 = arith.constant 0 : i32
    %c0_i32_1 = arith.constant 0 : i32
    return %arg0, %c0_i32, %c0_i32_0 : i32, i32, i32
  }
  func.func @transform_16(%arg0: i32) -> (i32, i32, i32) {
    %c0_i32 = arith.constant 0 : i32
    %c0_i32_0 = arith.constant 0 : i32
    %c0_i32_1 = arith.constant 0 : i32
    return %arg0, %c0_i32, %c0_i32_0 : i32, i32, i32
  }
  func.func @transform_17(%arg0: i32) -> (i32, i32, i32) {
    %c0_i32 = arith.constant 0 : i32
    %c0_i32_0 = arith.constant 0 : i32
    %c0_i32_1 = arith.constant 0 : i32
    return %arg0, %c0_i32, %c0_i32_0 : i32, i32, i32
  }
  func.func @transform_18(%arg0: i32) -> (i32, i32, i32) {
    %c0_i32 = arith.constant 0 : i32
    %c0_i32_0 = arith.constant 0 : i32
    %c0_i32_1 = arith.constant 0 : i32
    return %arg0, %c0_i32, %c0_i32_0 : i32, i32, i32
  }
  func.func @transform_19(%arg0: i32) -> (i32, i32, i32) {
    %c0_i32 = arith.constant 0 : i32
    %c0_i32_0 = arith.constant 0 : i32
    %c0_i32_1 = arith.constant 0 : i32
    return %arg0, %c0_i32, %c0_i32_0 : i32, i32, i32
  }
  func.func @transform_20(%arg0: i32) -> (i32, i32, i32) {
    %c0_i32 = arith.constant 0 : i32
    %c0_i32_0 = arith.constant 0 : i32
    %c0_i32_1 = arith.constant 0 : i32
    return %arg0, %c0_i32, %c0_i32_0 : i32, i32, i32
  }
  func.func @transform_21(%arg0: i32) -> (i32, i32) {
    %c0_i32 = arith.constant 0 : i32
    %c0_i32_0 = arith.constant 0 : i32
    %c0_i32_1 = arith.constant 0 : i32
    return %c0_i32, %c0_i32_0 : i32, i32
  }
  func.func @transform_22(%arg0: i32) -> (i32, i32) {
    %c0_i32 = arith.constant 0 : i32
    %c0_i32_0 = arith.constant 0 : i32
    %c0_i32_1 = arith.constant 0 : i32
    return %c0_i32, %c0_i32_0 : i32, i32
  }
  func.func @transform_23(%arg0: i32) -> (i32, i32) {
    %c0_i32 = arith.constant 0 : i32
    %c0_i32_0 = arith.constant 0 : i32
    %c0_i32_1 = arith.constant 0 : i32
    return %c0_i32, %c0_i32_0 : i32, i32
  }
  func.func @transform_24(%arg0: i32) -> (i32, i32) {
    %c0_i32 = arith.constant 0 : i32
    %c0_i32_0 = arith.constant 0 : i32
    %c0_i32_1 = arith.constant 0 : i32
    return %c0_i32, %c0_i32_0 : i32, i32
  }
}

module attributes {stable_mosaic.version = 11 : i64} {
  func.func @_text_stack_kernel(%arg0: i32, %arg1: memref<16x128xf32, #tpu.memory_space<vmem>>, %arg2: memref<1x1x128xf32, #tpu.memory_space<vmem>>, %arg3: memref<1x1x128xf32, #tpu.memory_space<vmem>>, %arg4: memref<1x2x128x128xbf16, #tpu.memory_space<vmem>>, %arg5: memref<1x2x128x128xbf16, #tpu.memory_space<vmem>>, %arg6: memref<1x2x128x128xbf16, #tpu.memory_space<vmem>>, %arg7: memref<1x2x1x128xf32, #tpu.memory_space<vmem>>, %arg8: memref<1x2x1x128xf32, #tpu.memory_space<vmem>>, %arg9: memref<1x2x1x128xf32, #tpu.memory_space<vmem>>, %arg10: memref<1x2x128x128xbf16, #tpu.memory_space<vmem>>, %arg11: memref<1x1x128xf32, #tpu.memory_space<vmem>>, %arg12: memref<1x1x128xf32, #tpu.memory_space<vmem>>, %arg13: memref<1x1x128xf32, #tpu.memory_space<vmem>>, %arg14: memref<1x128x128xbf16, #tpu.memory_space<vmem>>, %arg15: memref<1x1x128xf32, #tpu.memory_space<vmem>>, %arg16: memref<1x128x128xbf16, #tpu.memory_space<vmem>>, %arg17: memref<1x1x128xf32, #tpu.memory_space<vmem>>, %arg18: memref<1x128xf32, #tpu.memory_space<vmem>>, %arg19: memref<1x128xf32, #tpu.memory_space<vmem>>, %arg20: memref<128x128xbf16, #tpu.memory_space<vmem>>, %arg21: memref<16x128xf32, #tpu.memory_space<vmem>>, %arg22: memref<16x128xf32, #tpu.memory_space<vmem>>) attributes {dimension_semantics = [#tpu.dimension_semantics<arbitrary>], iteration_bounds = array<i64: 2>, scalar_prefetch = 0 : i64, scratch_operands = 1 : i64, tpu.core_type = #tpu.core_type<tc>, window_params = [{pipeline_mode = #tpu.pipeline_mode<synchronous>, transform_indices = @transform_0, window_bounds = array<i64: 16, 128>}, {transform_indices = @transform_1, window_bounds = array<i64: 1, 1, 128>}, {transform_indices = @transform_2, window_bounds = array<i64: 1, 1, 128>}, {transform_indices = @transform_3, window_bounds = array<i64: 1, 2, 128, 128>}, {transform_indices = @transform_4, window_bounds = array<i64: 1, 2, 128, 128>}, {transform_indices = @transform_5, window_bounds = array<i64: 1, 2, 128, 128>}, {transform_indices = @transform_6, window_bounds = array<i64: 1, 2, 1, 128>}, {transform_indices = @transform_7, window_bounds = array<i64: 1, 2, 1, 128>}, {transform_indices = @transform_8, window_bounds = array<i64: 1, 2, 1, 128>}, {transform_indices = @transform_9, window_bounds = array<i64: 1, 2, 128, 128>}, {transform_indices = @transform_10, window_bounds = array<i64: 1, 1, 128>}, {transform_indices = @transform_11, window_bounds = array<i64: 1, 1, 128>}, {transform_indices = @transform_12, window_bounds = array<i64: 1, 1, 128>}, {transform_indices = @transform_13, window_bounds = array<i64: 1, 128, 128>}, {transform_indices = @transform_14, window_bounds = array<i64: 1, 1, 128>}, {transform_indices = @transform_15, window_bounds = array<i64: 1, 128, 128>}, {transform_indices = @transform_16, window_bounds = array<i64: 1, 1, 128>}, {pipeline_mode = #tpu.pipeline_mode<synchronous>, transform_indices = @transform_17, window_bounds = array<i64: 1, 128>}, {pipeline_mode = #tpu.pipeline_mode<synchronous>, transform_indices = @transform_18, window_bounds = array<i64: 1, 128>}, {pipeline_mode = #tpu.pipeline_mode<synchronous>, transform_indices = @transform_19, window_bounds = array<i64: 128, 128>}, {pipeline_mode = #tpu.pipeline_mode<synchronous>, transform_indices = @transform_20, window_bounds = array<i64: 16, 128>}]} {
    %0 = tpu.iota {dimensions = array<i32: 1>} : vector<1x128xi32>
    %c32_i32 = arith.constant 32 : i32
    %1 = vector.broadcast %c32_i32 : i32 to vector<1x128xi32>
    %2 = arith.cmpi slt, %0, %1 : vector<1x128xi32>
    %3 = arith.extui %2 : vector<1x128xi1> to vector<1x128xi32>
    %4 = arith.sitofp %3 : vector<1x128xi32> to vector<1x128xf32>
    %5 = tpu.iota {dimensions = array<i32: 1>} : vector<8x8xi32>
    %c8_i32 = arith.constant 8 : i32
    %6 = vector.broadcast %c8_i32 : i32 to vector<8x8xi32>
    %7 = arith.cmpi sge, %5, %6 : vector<8x8xi32>
    %cst = arith.constant -1.000000e+30 : f32
    %cst_0 = arith.constant 0.000000e+00 : f32
    %8 = vector.broadcast %cst : f32 to vector<8x8xf32>
    %9 = vector.broadcast %cst_0 : f32 to vector<8x8xf32>
    %10 = arith.select %7, %8, %9 : vector<8x8xi1>, vector<8x8xf32>
    %11 = tpu.iota {dimensions = array<i32: 0>} : vector<8x8xi32>
    %12 = arith.cmpi sgt, %5, %11 : vector<8x8xi32>
    %cst_1 = arith.constant -1.000000e+30 : f32
    %13 = vector.broadcast %cst_1 : f32 to vector<8x8xf32>
    %14 = arith.select %12, %13, %10 : vector<8x8xi1>, vector<8x8xf32>
    %c0_i32 = arith.constant 0 : i32
    %15 = arith.cmpi eq, %arg0, %c0_i32 : i32
    %16 = arith.extui %15 : i1 to i32
    %c0_i32_2 = arith.constant 0 : i32
    %17 = arith.cmpi ne, %16, %c0_i32_2 : i32
    scf.if %17 {
      %c0_122 = arith.constant 0 : index
      %c0_123 = arith.constant 0 : index
      %209 = vector.load %arg1[%c0_122, %c0_123] : memref<16x128xf32, #tpu.memory_space<vmem>>, vector<16x128xf32>
      %c0_124 = arith.constant 0 : index
      %c0_125 = arith.constant 0 : index
      %210 = vector.load %arg22[%c0_124, %c0_125] : memref<16x128xf32, #tpu.memory_space<vmem>>, vector<16x128xf32>
      tpu.vector_store %arg22[%c0_124, %c0_125], %209 {strides = array<i32>} : memref<16x128xf32, #tpu.memory_space<vmem>>, vector<16x128xf32>,
    } else {
    }
    %c0 = arith.constant 0 : index
    %c0_3 = arith.constant 0 : index
    %18 = vector.load %arg22[%c0, %c0_3] : memref<16x128xf32, #tpu.memory_space<vmem>>, vector<16x128xf32>
    %c0_4 = arith.constant 0 : index
    %c0_5 = arith.constant 0 : index
    %c0_6 = arith.constant 0 : index
    %19 = vector.load %arg2[%c0_4, %c0_5, %c0_6] : memref<1x1x128xf32, #tpu.memory_space<vmem>>, vector<1x1x128xf32>
    %20 = vector.shape_cast %19 : vector<1x1x128xf32> to vector<1x128xf32>
    %c0_7 = arith.constant 0 : index
    %c0_8 = arith.constant 0 : index
    %c0_9 = arith.constant 0 : index
    %21 = vector.load %arg3[%c0_7, %c0_8, %c0_9] : memref<1x1x128xf32, #tpu.memory_space<vmem>>, vector<1x1x128xf32>
    %22 = vector.shape_cast %21 : vector<1x1x128xf32> to vector<1x128xf32>
    %cst_10 = arith.constant dense<0.000000e+00> : vector<16xf32>
    %23 = vector.multi_reduction <add>, %18, %cst_10 [1] : vector<16x128xf32> to vector<16xf32>
    %24 = vector.shape_cast %23 : vector<16xf32> to vector<16x1xf32>
    %cst_11 = arith.constant 3.125000e-02 : f32
    %25 = vector.broadcast %cst_11 : f32 to vector<16x1xf32>
    %26 = arith.mulf %24, %25 : vector<16x1xf32>
    %27 = vector.broadcast %26 : vector<16x1xf32> to vector<16x128xf32>
    %28 = arith.subf %18, %27 : vector<16x128xf32>
    %29 = vector.broadcast %4 : vector<1x128xf32> to vector<16x128xf32>
    %30 = arith.mulf %28, %29 : vector<16x128xf32>
    %31 = arith.mulf %30, %30 : vector<16x128xf32>
    %cst_12 = arith.constant dense<0.000000e+00> : vector<16xf32>
    %32 = vector.multi_reduction <add>, %31, %cst_12 [1] : vector<16x128xf32> to vector<16xf32>
    %33 = vector.shape_cast %32 : vector<16xf32> to vector<16x1xf32>
    %cst_13 = arith.constant 3.125000e-02 : f32
    %34 = vector.broadcast %cst_13 : f32 to vector<16x1xf32>
    %35 = arith.mulf %33, %34 : vector<16x1xf32>
    %cst_14 = arith.constant 9.99999974E-6 : f32
    %36 = vector.broadcast %cst_14 : f32 to vector<16x1xf32>
    %37 = arith.addf %35, %36 : vector<16x1xf32>
    %38 = math.rsqrt %37 : vector<16x1xf32>
    %39 = vector.broadcast %38 : vector<16x1xf32> to vector<16x128xf32>
    %40 = arith.mulf %30, %39 : vector<16x128xf32>
    %41 = vector.broadcast %20 : vector<1x128xf32> to vector<16x128xf32>
    %42 = arith.mulf %40, %41 : vector<16x128xf32>
    %43 = vector.broadcast %22 : vector<1x128xf32> to vector<16x128xf32>
    %44 = arith.addf %42, %43 : vector<16x128xf32>
    %45 = arith.truncf %44 : vector<16x128xf32> to vector<16x128xbf16>
    %cst_15 = arith.constant 0.000000e+00 : f32
    %46 = vector.broadcast %cst_15 : f32 to vector<16x128xf32>
    %c0_16 = arith.constant 0 : index
    %c0_17 = arith.constant 0 : index
    %c0_18 = arith.constant 0 : index
    %c0_19 = arith.constant 0 : index
    %47 = vector.load %arg4[%c0_16, %c0_17, %c0_18, %c0_19] : memref<1x2x128x128xbf16, #tpu.memory_space<vmem>>, vector<1x1x128x128xbf16>
    %48 = vector.shape_cast %47 : vector<1x1x128x128xbf16> to vector<128x128xbf16>
    %cst_20 = arith.constant dense<0.000000e+00> : vector<16x128xf32>
    %49 = tpu.matmul %45, %48, %cst_20 {dimension_numbers = #tpu.dot_dimension_numbers<[1], [0], [0], [1], [0, 0, 1, 1], [], []>} : vector<16x128xbf16>, vector<128x128xbf16>, vector<16x128xf32> -> vector<16x128xf32>
    %c0_21 = arith.constant 0 : index
    %c0_22 = arith.constant 0 : index
    %c0_23 = arith.constant 0 : index
    %c0_24 = arith.constant 0 : index
    %50 = vector.load %arg7[%c0_21, %c0_22, %c0_23, %c0_24] : memref<1x2x1x128xf32, #tpu.memory_space<vmem>>, vector<1x1x1x128xf32>
    %51 = vector.shape_cast %50 : vector<1x1x1x128xf32> to vector<1x128xf32>
    %52 = vector.broadcast %51 : vector<1x128xf32> to vector<16x128xf32>
    %53 = arith.addf %49, %52 : vector<16x128xf32>
    %c0_25 = arith.constant 0 : index
    %c0_26 = arith.constant 0 : index
    %c0_27 = arith.constant 0 : index
    %c0_28 = arith.constant 0 : index
    %54 = vector.load %arg5[%c0_25, %c0_26, %c0_27, %c0_28] : memref<1x2x128x128xbf16, #tpu.memory_space<vmem>>, vector<1x1x128x128xbf16>
    %55 = vector.shape_cast %54 : vector<1x1x128x128xbf16> to vector<128x128xbf16>
    %cst_29 = arith.constant dense<0.000000e+00> : vector<16x128xf32>
    %56 = tpu.matmul %45, %55, %cst_29 {dimension_numbers = #tpu.dot_dimension_numbers<[1], [0], [0], [1], [0, 0, 1, 1], [], []>} : vector<16x128xbf16>, vector<128x128xbf16>, vector<16x128xf32> -> vector<16x128xf32>
    %c0_30 = arith.constant 0 : index
    %c0_31 = arith.constant 0 : index
    %c0_32 = arith.constant 0 : index
    %c0_33 = arith.constant 0 : index
    %57 = vector.load %arg8[%c0_30, %c0_31, %c0_32, %c0_33] : memref<1x2x1x128xf32, #tpu.memory_space<vmem>>, vector<1x1x1x128xf32>
    %58 = vector.shape_cast %57 : vector<1x1x1x128xf32> to vector<1x128xf32>
    %59 = vector.broadcast %58 : vector<1x128xf32> to vector<16x128xf32>
    %60 = arith.addf %56, %59 : vector<16x128xf32>
    %c0_34 = arith.constant 0 : index
    %c0_35 = arith.constant 0 : index
    %c0_36 = arith.constant 0 : index
    %c0_37 = arith.constant 0 : index
    %61 = vector.load %arg6[%c0_34, %c0_35, %c0_36, %c0_37] : memref<1x2x128x128xbf16, #tpu.memory_space<vmem>>, vector<1x1x128x128xbf16>
    %62 = vector.shape_cast %61 : vector<1x1x128x128xbf16> to vector<128x128xbf16>
    %cst_38 = arith.constant dense<0.000000e+00> : vector<16x128xf32>
    %63 = tpu.matmul %45, %62, %cst_38 {dimension_numbers = #tpu.dot_dimension_numbers<[1], [0], [0], [1], [0, 0, 1, 1], [], []>} : vector<16x128xbf16>, vector<128x128xbf16>, vector<16x128xf32> -> vector<16x128xf32>
    %c0_39 = arith.constant 0 : index
    %c0_40 = arith.constant 0 : index
    %c0_41 = arith.constant 0 : index
    %c0_42 = arith.constant 0 : index
    %64 = vector.load %arg9[%c0_39, %c0_40, %c0_41, %c0_42] : memref<1x2x1x128xf32, #tpu.memory_space<vmem>>, vector<1x1x1x128xf32>
    %65 = vector.shape_cast %64 : vector<1x1x1x128xf32> to vector<1x128xf32>
    %66 = vector.broadcast %65 : vector<1x128xf32> to vector<16x128xf32>
    %67 = arith.addf %63, %66 : vector<16x128xf32>
    %68 = arith.truncf %53 : vector<16x128xf32> to vector<16x128xbf16>
    %69 = vector.shape_cast %68 : vector<16x128xbf16> to vector<2x8x128xbf16>
    %70 = arith.truncf %60 : vector<16x128xf32> to vector<16x128xbf16>
    %71 = vector.shape_cast %70 : vector<16x128xbf16> to vector<2x8x128xbf16>
    %72 = arith.truncf %67 : vector<16x128xf32> to vector<16x128xbf16>
    %73 = vector.shape_cast %72 : vector<16x128xbf16> to vector<2x8x128xbf16>
    "tpu.trace_start"() <{level = 10 : i32, message = "bqd,bkd->bqk"}> : () -> ()
    %cst_43 = arith.constant dense<0.000000e+00> : vector<2x8x8xf32>
    %74 = tpu.matmul %69, %71, %cst_43 {dimension_numbers = #tpu.dot_dimension_numbers<[2], [2], [1], [1], [0, 0, 0, 1, 1, 1], [0], [0]>} : vector<2x8x128xbf16>, vector<2x8x128xbf16>, vector<2x8x8xf32> -> vector<2x8x8xf32>
    "tpu.trace_stop"() : () -> ()
    %cst_44 = arith.constant 2.500000e-01 : f32
    %75 = vector.broadcast %cst_44 : f32 to vector<2x8x8xf32>
    %76 = arith.mulf %74, %75 : vector<2x8x8xf32>
    %77 = vector.shape_cast %14 : vector<8x8xf32> to vector<1x8x8xf32>
    %78 = vector.broadcast %77 : vector<1x8x8xf32> to vector<2x8x8xf32>
    %79 = arith.addf %76, %78 : vector<2x8x8xf32>
    %cst_45 = arith.constant dense<0xFF800000> : vector<2x8xf32>
    %80 = vector.multi_reduction <maximumf>, %79, %cst_45 [2] : vector<2x8x8xf32> to vector<2x8xf32>
    %81 = vector.shape_cast %80 : vector<2x8xf32> to vector<2x8x1xf32>
    %82 = vector.broadcast %81 : vector<2x8x1xf32> to vector<2x8x8xf32>
    %83 = arith.subf %79, %82 : vector<2x8x8xf32>
    %84 = math.exp %83 : vector<2x8x8xf32>
    %cst_46 = arith.constant dense<0.000000e+00> : vector<2x8xf32>
    %85 = vector.multi_reduction <add>, %84, %cst_46 [2] : vector<2x8x8xf32> to vector<2x8xf32>
    %86 = vector.shape_cast %85 : vector<2x8xf32> to vector<2x8x1xf32>
    %87 = tpu.reciprocal %86 {approx = true} : vector<2x8x1xf32> -> vector<2x8x1xf32>
    %88 = vector.broadcast %87 : vector<2x8x1xf32> to vector<2x8x8xf32>
    %89 = arith.mulf %84, %88 : vector<2x8x8xf32>
    %90 = arith.truncf %89 : vector<2x8x8xf32> to vector<2x8x8xbf16>
    "tpu.trace_start"() <{level = 10 : i32, message = "bqk,bkd->bqd"}> : () -> ()
    %cst_47 = arith.constant dense<0.000000e+00> : vector<2x8x128xf32>
    %91 = tpu.matmul %90, %73, %cst_47 {dimension_numbers = #tpu.dot_dimension_numbers<[2], [1], [1], [2], [0, 0, 0, 1, 1, 2], [0], [0]>} : vector<2x8x8xbf16>, vector<2x8x128xbf16>, vector<2x8x128xf32> -> vector<2x8x128xf32>
    "tpu.trace_stop"() : () -> ()
    %92 = vector.shape_cast %91 : vector<2x8x128xf32> to vector<16x128xf32>
    %93 = arith.truncf %92 : vector<16x128xf32> to vector<16x128xbf16>
    %c0_48 = arith.constant 0 : index
    %c0_49 = arith.constant 0 : index
    %c0_50 = arith.constant 0 : index
    %c0_51 = arith.constant 0 : index
    %94 = vector.load %arg10[%c0_48, %c0_49, %c0_50, %c0_51] : memref<1x2x128x128xbf16, #tpu.memory_space<vmem>>, vector<1x1x128x128xbf16>
    %95 = vector.shape_cast %94 : vector<1x1x128x128xbf16> to vector<128x128xbf16>
    %cst_52 = arith.constant dense<0.000000e+00> : vector<16x128xf32>
    %96 = tpu.matmul %93, %95, %cst_52 {dimension_numbers = #tpu.dot_dimension_numbers<[1], [0], [0], [1], [0, 0, 1, 1], [], []>} : vector<16x128xbf16>, vector<128x128xbf16>, vector<16x128xf32> -> vector<16x128xf32>
    %97 = arith.addf %46, %96 : vector<16x128xf32>
    %c0_53 = arith.constant 0 : index
    %c1 = arith.constant 1 : index
    %c0_54 = arith.constant 0 : index
    %c0_55 = arith.constant 0 : index
    %98 = vector.load %arg4[%c0_53, %c1, %c0_54, %c0_55] : memref<1x2x128x128xbf16, #tpu.memory_space<vmem>>, vector<1x1x128x128xbf16>
    %99 = vector.shape_cast %98 : vector<1x1x128x128xbf16> to vector<128x128xbf16>
    %cst_56 = arith.constant dense<0.000000e+00> : vector<16x128xf32>
    %100 = tpu.matmul %45, %99, %cst_56 {dimension_numbers = #tpu.dot_dimension_numbers<[1], [0], [0], [1], [0, 0, 1, 1], [], []>} : vector<16x128xbf16>, vector<128x128xbf16>, vector<16x128xf32> -> vector<16x128xf32>
    %c0_57 = arith.constant 0 : index
    %c1_58 = arith.constant 1 : index
    %c0_59 = arith.constant 0 : index
    %c0_60 = arith.constant 0 : index
    %101 = vector.load %arg7[%c0_57, %c1_58, %c0_59, %c0_60] : memref<1x2x1x128xf32, #tpu.memory_space<vmem>>, vector<1x1x1x128xf32>
    %102 = vector.shape_cast %101 : vector<1x1x1x128xf32> to vector<1x128xf32>
    %103 = vector.broadcast %102 : vector<1x128xf32> to vector<16x128xf32>
    %104 = arith.addf %100, %103 : vector<16x128xf32>
    %c0_61 = arith.constant 0 : index
    %c1_62 = arith.constant 1 : index
    %c0_63 = arith.constant 0 : index
    %c0_64 = arith.constant 0 : index
    %105 = vector.load %arg5[%c0_61, %c1_62, %c0_63, %c0_64] : memref<1x2x128x128xbf16, #tpu.memory_space<vmem>>, vector<1x1x128x128xbf16>
    %106 = vector.shape_cast %105 : vector<1x1x128x128xbf16> to vector<128x128xbf16>
    %cst_65 = arith.constant dense<0.000000e+00> : vector<16x128xf32>
    %107 = tpu.matmul %45, %106, %cst_65 {dimension_numbers = #tpu.dot_dimension_numbers<[1], [0], [0], [1], [0, 0, 1, 1], [], []>} : vector<16x128xbf16>, vector<128x128xbf16>, vector<16x128xf32> -> vector<16x128xf32>
    %c0_66 = arith.constant 0 : index
    %c1_67 = arith.constant 1 : index
    %c0_68 = arith.constant 0 : index
    %c0_69 = arith.constant 0 : index
    %108 = vector.load %arg8[%c0_66, %c1_67, %c0_68, %c0_69] : memref<1x2x1x128xf32, #tpu.memory_space<vmem>>, vector<1x1x1x128xf32>
    %109 = vector.shape_cast %108 : vector<1x1x1x128xf32> to vector<1x128xf32>
    %110 = vector.broadcast %109 : vector<1x128xf32> to vector<16x128xf32>
    %111 = arith.addf %107, %110 : vector<16x128xf32>
    %c0_70 = arith.constant 0 : index
    %c1_71 = arith.constant 1 : index
    %c0_72 = arith.constant 0 : index
    %c0_73 = arith.constant 0 : index
    %112 = vector.load %arg6[%c0_70, %c1_71, %c0_72, %c0_73] : memref<1x2x128x128xbf16, #tpu.memory_space<vmem>>, vector<1x1x128x128xbf16>
    %113 = vector.shape_cast %112 : vector<1x1x128x128xbf16> to vector<128x128xbf16>
    %cst_74 = arith.constant dense<0.000000e+00> : vector<16x128xf32>
    %114 = tpu.matmul %45, %113, %cst_74 {dimension_numbers = #tpu.dot_dimension_numbers<[1], [0], [0], [1], [0, 0, 1, 1], [], []>} : vector<16x128xbf16>, vector<128x128xbf16>, vector<16x128xf32> -> vector<16x128xf32>
    %c0_75 = arith.constant 0 : index
    %c1_76 = arith.constant 1 : index
    %c0_77 = arith.constant 0 : index
    %c0_78 = arith.constant 0 : index
    %115 = vector.load %arg9[%c0_75, %c1_76, %c0_77, %c0_78] : memref<1x2x1x128xf32, #tpu.memory_space<vmem>>, vector<1x1x1x128xf32>
    %116 = vector.shape_cast %115 : vector<1x1x1x128xf32> to vector<1x128xf32>
    %117 = vector.broadcast %116 : vector<1x128xf32> to vector<16x128xf32>
    %118 = arith.addf %114, %117 : vector<16x128xf32>
    %119 = arith.truncf %104 : vector<16x128xf32> to vector<16x128xbf16>
    %120 = vector.shape_cast %119 : vector<16x128xbf16> to vector<2x8x128xbf16>
    %121 = arith.truncf %111 : vector<16x128xf32> to vector<16x128xbf16>
    %122 = vector.shape_cast %121 : vector<16x128xbf16> to vector<2x8x128xbf16>
    %123 = arith.truncf %118 : vector<16x128xf32> to vector<16x128xbf16>
    %124 = vector.shape_cast %123 : vector<16x128xbf16> to vector<2x8x128xbf16>
    "tpu.trace_start"() <{level = 10 : i32, message = "bqd,bkd->bqk"}> : () -> ()
    %cst_79 = arith.constant dense<0.000000e+00> : vector<2x8x8xf32>
    %125 = tpu.matmul %120, %122, %cst_79 {dimension_numbers = #tpu.dot_dimension_numbers<[2], [2], [1], [1], [0, 0, 0, 1, 1, 1], [0], [0]>} : vector<2x8x128xbf16>, vector<2x8x128xbf16>, vector<2x8x8xf32> -> vector<2x8x8xf32>
    "tpu.trace_stop"() : () -> ()
    %cst_80 = arith.constant 2.500000e-01 : f32
    %126 = vector.broadcast %cst_80 : f32 to vector<2x8x8xf32>
    %127 = arith.mulf %125, %126 : vector<2x8x8xf32>
    %128 = vector.shape_cast %14 : vector<8x8xf32> to vector<1x8x8xf32>
    %129 = vector.broadcast %128 : vector<1x8x8xf32> to vector<2x8x8xf32>
    %130 = arith.addf %127, %129 : vector<2x8x8xf32>
    %cst_81 = arith.constant dense<0xFF800000> : vector<2x8xf32>
    %131 = vector.multi_reduction <maximumf>, %130, %cst_81 [2] : vector<2x8x8xf32> to vector<2x8xf32>
    %132 = vector.shape_cast %131 : vector<2x8xf32> to vector<2x8x1xf32>
    %133 = vector.broadcast %132 : vector<2x8x1xf32> to vector<2x8x8xf32>
    %134 = arith.subf %130, %133 : vector<2x8x8xf32>
    %135 = math.exp %134 : vector<2x8x8xf32>
    %cst_82 = arith.constant dense<0.000000e+00> : vector<2x8xf32>
    %136 = vector.multi_reduction <add>, %135, %cst_82 [2] : vector<2x8x8xf32> to vector<2x8xf32>
    %137 = vector.shape_cast %136 : vector<2x8xf32> to vector<2x8x1xf32>
    %138 = tpu.reciprocal %137 {approx = true} : vector<2x8x1xf32> -> vector<2x8x1xf32>
    %139 = vector.broadcast %138 : vector<2x8x1xf32> to vector<2x8x8xf32>
    %140 = arith.mulf %135, %139 : vector<2x8x8xf32>
    %141 = arith.truncf %140 : vector<2x8x8xf32> to vector<2x8x8xbf16>
    "tpu.trace_start"() <{level = 10 : i32, message = "bqk,bkd->bqd"}> : () -> ()
    %cst_83 = arith.constant dense<0.000000e+00> : vector<2x8x128xf32>
    %142 = tpu.matmul %141, %124, %cst_83 {dimension_numbers = #tpu.dot_dimension_numbers<[2], [1], [1], [2], [0, 0, 0, 1, 1, 2], [0], [0]>} : vector<2x8x8xbf16>, vector<2x8x128xbf16>, vector<2x8x128xf32> -> vector<2x8x128xf32>
    "tpu.trace_stop"() : () -> ()
    %143 = vector.shape_cast %142 : vector<2x8x128xf32> to vector<16x128xf32>
    %144 = arith.truncf %143 : vector<16x128xf32> to vector<16x128xbf16>
    %c0_84 = arith.constant 0 : index
    %c1_85 = arith.constant 1 : index
    %c0_86 = arith.constant 0 : index
    %c0_87 = arith.constant 0 : index
    %145 = vector.load %arg10[%c0_84, %c1_85, %c0_86, %c0_87] : memref<1x2x128x128xbf16, #tpu.memory_space<vmem>>, vector<1x1x128x128xbf16>
    %146 = vector.shape_cast %145 : vector<1x1x128x128xbf16> to vector<128x128xbf16>
    %cst_88 = arith.constant dense<0.000000e+00> : vector<16x128xf32>
    %147 = tpu.matmul %144, %146, %cst_88 {dimension_numbers = #tpu.dot_dimension_numbers<[1], [0], [0], [1], [0, 0, 1, 1], [], []>} : vector<16x128xbf16>, vector<128x128xbf16>, vector<16x128xf32> -> vector<16x128xf32>
    %148 = arith.addf %97, %147 : vector<16x128xf32>
    %149 = arith.addf %18, %148 : vector<16x128xf32>
    %c0_89 = arith.constant 0 : index
    %c0_90 = arith.constant 0 : index
    %c0_91 = arith.constant 0 : index
    %150 = vector.load %arg11[%c0_89, %c0_90, %c0_91] : memref<1x1x128xf32, #tpu.memory_space<vmem>>, vector<1x1x128xf32>
    %151 = vector.shape_cast %150 : vector<1x1x128xf32> to vector<1x128xf32>
    %152 = vector.broadcast %151 : vector<1x128xf32> to vector<16x128xf32>
    %153 = arith.addf %149, %152 : vector<16x128xf32>
    %c0_92 = arith.constant 0 : index
    %c0_93 = arith.constant 0 : index
    %c0_94 = arith.constant 0 : index
    %154 = vector.load %arg12[%c0_92, %c0_93, %c0_94] : memref<1x1x128xf32, #tpu.memory_space<vmem>>, vector<1x1x128xf32>
    %155 = vector.shape_cast %154 : vector<1x1x128xf32> to vector<1x128xf32>
    %c0_95 = arith.constant 0 : index
    %c0_96 = arith.constant 0 : index
    %c0_97 = arith.constant 0 : index
    %156 = vector.load %arg13[%c0_95, %c0_96, %c0_97] : memref<1x1x128xf32, #tpu.memory_space<vmem>>, vector<1x1x128xf32>
    %157 = vector.shape_cast %156 : vector<1x1x128xf32> to vector<1x128xf32>
    %cst_98 = arith.constant dense<0.000000e+00> : vector<16xf32>
    %158 = vector.multi_reduction <add>, %153, %cst_98 [1] : vector<16x128xf32> to vector<16xf32>
    %159 = vector.shape_cast %158 : vector<16xf32> to vector<16x1xf32>
    %cst_99 = arith.constant 3.125000e-02 : f32
    %160 = vector.broadcast %cst_99 : f32 to vector<16x1xf32>
    %161 = arith.mulf %159, %160 : vector<16x1xf32>
    %162 = vector.broadcast %161 : vector<16x1xf32> to vector<16x128xf32>
    %163 = arith.subf %153, %162 : vector<16x128xf32>
    %164 = vector.broadcast %4 : vector<1x128xf32> to vector<16x128xf32>
    %165 = arith.mulf %163, %164 : vector<16x128xf32>
    %166 = arith.mulf %165, %165 : vector<16x128xf32>
    %cst_100 = arith.constant dense<0.000000e+00> : vector<16xf32>
    %167 = vector.multi_reduction <add>, %166, %cst_100 [1] : vector<16x128xf32> to vector<16xf32>
    %168 = vector.shape_cast %167 : vector<16xf32> to vector<16x1xf32>
    %cst_101 = arith.constant 3.125000e-02 : f32
    %169 = vector.broadcast %cst_101 : f32 to vector<16x1xf32>
    %170 = arith.mulf %168, %169 : vector<16x1xf32>
    %cst_102 = arith.constant 9.99999974E-6 : f32
    %171 = vector.broadcast %cst_102 : f32 to vector<16x1xf32>
    %172 = arith.addf %170, %171 : vector<16x1xf32>
    %173 = math.rsqrt %172 : vector<16x1xf32>
    %174 = vector.broadcast %173 : vector<16x1xf32> to vector<16x128xf32>
    %175 = arith.mulf %165, %174 : vector<16x128xf32>
    %176 = vector.broadcast %155 : vector<1x128xf32> to vector<16x128xf32>
    %177 = arith.mulf %175, %176 : vector<16x128xf32>
    %178 = vector.broadcast %157 : vector<1x128xf32> to vector<16x128xf32>
    %179 = arith.addf %177, %178 : vector<16x128xf32>
    %180 = arith.truncf %179 : vector<16x128xf32> to vector<16x128xbf16>
    %c0_103 = arith.constant 0 : index
    %c0_104 = arith.constant 0 : index
    %c0_105 = arith.constant 0 : index
    %181 = vector.load %arg14[%c0_103, %c0_104, %c0_105] : memref<1x128x128xbf16, #tpu.memory_space<vmem>>, vector<1x128x128xbf16>
    %182 = vector.shape_cast %181 : vector<1x128x128xbf16> to vector<128x128xbf16>
    %cst_106 = arith.constant dense<0.000000e+00> : vector<16x128xf32>
    %183 = tpu.matmul %180, %182, %cst_106 {dimension_numbers = #tpu.dot_dimension_numbers<[1], [0], [0], [1], [0, 0, 1, 1], [], []>} : vector<16x128xbf16>, vector<128x128xbf16>, vector<16x128xf32> -> vector<16x128xf32>
    %c0_107 = arith.constant 0 : index
    %c0_108 = arith.constant 0 : index
    %c0_109 = arith.constant 0 : index
    %184 = vector.load %arg15[%c0_107, %c0_108, %c0_109] : memref<1x1x128xf32, #tpu.memory_space<vmem>>, vector<1x1x128xf32>
    %185 = vector.shape_cast %184 : vector<1x1x128xf32> to vector<1x128xf32>
    %186 = vector.broadcast %185 : vector<1x128xf32> to vector<16x128xf32>
    %187 = arith.addf %183, %186 : vector<16x128xf32>
    %cst_110 = arith.constant 1.702000e+00 : f32
    %188 = vector.broadcast %cst_110 : f32 to vector<16x128xf32>
    %189 = arith.mulf %188, %187 : vector<16x128xf32>
    %190 = arith.negf %189 : vector<16x128xf32>
    %191 = math.exp %190 : vector<16x128xf32>
    %cst_111 = arith.constant 1.000000e+00 : f32
    %192 = vector.broadcast %cst_111 : f32 to vector<16x128xf32>
    %193 = arith.addf %192, %191 : vector<16x128xf32>
    %194 = arith.divf %192, %193 : vector<16x128xf32>
    %195 = arith.mulf %187, %194 : vector<16x128xf32>
    %196 = arith.truncf %195 : vector<16x128xf32> to vector<16x128xbf16>
    %c0_112 = arith.constant 0 : index
    %c0_113 = arith.constant 0 : index
    %c0_114 = arith.constant 0 : index
    %197 = vector.load %arg16[%c0_112, %c0_113, %c0_114] : memref<1x128x128xbf16, #tpu.memory_space<vmem>>, vector<1x128x128xbf16>
    %198 = vector.shape_cast %197 : vector<1x128x128xbf16> to vector<128x128xbf16>
    %cst_115 = arith.constant dense<0.000000e+00> : vector<16x128xf32>
    %199 = tpu.matmul %196, %198, %cst_115 {dimension_numbers = #tpu.dot_dimension_numbers<[1], [0], [0], [1], [0, 0, 1, 1], [], []>} : vector<16x128xbf16>, vector<128x128xbf16>, vector<16x128xf32> -> vector<16x128xf32>
    %c0_116 = arith.constant 0 : index
    %c0_117 = arith.constant 0 : index
    %c0_118 = arith.constant 0 : index
    %200 = vector.load %arg17[%c0_116, %c0_117, %c0_118] : memref<1x1x128xf32, #tpu.memory_space<vmem>>, vector<1x1x128xf32>
    %201 = vector.shape_cast %200 : vector<1x1x128xf32> to vector<1x128xf32>
    %202 = vector.broadcast %201 : vector<1x128xf32> to vector<16x128xf32>
    %203 = arith.addf %199, %202 : vector<16x128xf32>
    %204 = arith.addf %153, %203 : vector<16x128xf32>
    %c0_119 = arith.constant 0 : index
    %c0_120 = arith.constant 0 : index
    %205 = vector.load %arg22[%c0_119, %c0_120] : memref<16x128xf32, #tpu.memory_space<vmem>>, vector<16x128xf32>
    tpu.vector_store %arg22[%c0_119, %c0_120], %204 {strides = array<i32>} : memref<16x128xf32, #tpu.memory_space<vmem>>, vector<16x128xf32>,
    %c1_i32 = arith.constant 1 : i32
    %206 = arith.cmpi eq, %arg0, %c1_i32 : i32
    %207 = arith.extui %206 : i1 to i32
    %c0_i32_121 = arith.constant 0 : i32
    %208 = arith.cmpi ne, %207, %c0_i32_121 : i32
    scf.if %208 {
      %c0_122 = arith.constant 0 : index
      %c0_123 = arith.constant 0 : index
      %209 = vector.load %arg18[%c0_122, %c0_123] : memref<1x128xf32, #tpu.memory_space<vmem>>, vector<1x128xf32>
      %c0_124 = arith.constant 0 : index
      %c0_125 = arith.constant 0 : index
      %210 = vector.load %arg19[%c0_124, %c0_125] : memref<1x128xf32, #tpu.memory_space<vmem>>, vector<1x128xf32>
      %cst_126 = arith.constant dense<0.000000e+00> : vector<16xf32>
      %211 = vector.multi_reduction <add>, %204, %cst_126 [1] : vector<16x128xf32> to vector<16xf32>
      %212 = vector.shape_cast %211 : vector<16xf32> to vector<16x1xf32>
      %cst_127 = arith.constant 3.125000e-02 : f32
      %213 = vector.broadcast %cst_127 : f32 to vector<16x1xf32>
      %214 = arith.mulf %212, %213 : vector<16x1xf32>
      %215 = vector.broadcast %214 : vector<16x1xf32> to vector<16x128xf32>
      %216 = arith.subf %204, %215 : vector<16x128xf32>
      %217 = vector.broadcast %4 : vector<1x128xf32> to vector<16x128xf32>
      %218 = arith.mulf %216, %217 : vector<16x128xf32>
      %219 = arith.mulf %218, %218 : vector<16x128xf32>
      %cst_128 = arith.constant dense<0.000000e+00> : vector<16xf32>
      %220 = vector.multi_reduction <add>, %219, %cst_128 [1] : vector<16x128xf32> to vector<16xf32>
      %221 = vector.shape_cast %220 : vector<16xf32> to vector<16x1xf32>
      %cst_129 = arith.constant 3.125000e-02 : f32
      %222 = vector.broadcast %cst_129 : f32 to vector<16x1xf32>
      %223 = arith.mulf %221, %222 : vector<16x1xf32>
      %cst_130 = arith.constant 9.99999974E-6 : f32
      %224 = vector.broadcast %cst_130 : f32 to vector<16x1xf32>
      %225 = arith.addf %223, %224 : vector<16x1xf32>
      %226 = math.rsqrt %225 : vector<16x1xf32>
      %227 = vector.broadcast %226 : vector<16x1xf32> to vector<16x128xf32>
      %228 = arith.mulf %218, %227 : vector<16x128xf32>
      %229 = vector.broadcast %209 : vector<1x128xf32> to vector<16x128xf32>
      %230 = arith.mulf %228, %229 : vector<16x128xf32>
      %231 = vector.broadcast %210 : vector<1x128xf32> to vector<16x128xf32>
      %232 = arith.addf %230, %231 : vector<16x128xf32>
      %233 = arith.truncf %232 : vector<16x128xf32> to vector<16x128xbf16>
      %c0_131 = arith.constant 0 : index
      %c0_132 = arith.constant 0 : index
      %234 = vector.load %arg20[%c0_131, %c0_132] : memref<128x128xbf16, #tpu.memory_space<vmem>>, vector<128x128xbf16>
      %cst_133 = arith.constant dense<0.000000e+00> : vector<16x128xf32>
      %235 = tpu.matmul %233, %234, %cst_133 {dimension_numbers = #tpu.dot_dimension_numbers<[1], [0], [0], [1], [0, 0, 1, 1], [], []>} : vector<16x128xbf16>, vector<128x128xbf16>, vector<16x128xf32> -> vector<16x128xf32>
      %c0_134 = arith.constant 0 : index
      %c0_135 = arith.constant 0 : index
      %236 = vector.load %arg21[%c0_134, %c0_135] : memref<16x128xf32, #tpu.memory_space<vmem>>, vector<16x128xf32>
      tpu.vector_store %arg21[%c0_134, %c0_135], %235 {strides = array<i32>} : memref<16x128xf32, #tpu.memory_space<vmem>>, vector<16x128xf32>,
    } else {
    }
    return
  }
  func.func @transform_0(%arg0: i32) -> (i32, i32) {
    %c0_i32 = arith.constant 0 : i32
    %c0_i32_0 = arith.constant 0 : i32
    %c0_i32_1 = arith.constant 0 : i32
    return %c0_i32, %c0_i32_0 : i32, i32
  }
  func.func @transform_1(%arg0: i32) -> (i32, i32, i32) {
    %c0_i32 = arith.constant 0 : i32
    %c0_i32_0 = arith.constant 0 : i32
    %c0_i32_1 = arith.constant 0 : i32
    return %arg0, %c0_i32, %c0_i32_0 : i32, i32, i32
  }
  func.func @transform_2(%arg0: i32) -> (i32, i32, i32) {
    %c0_i32 = arith.constant 0 : i32
    %c0_i32_0 = arith.constant 0 : i32
    %c0_i32_1 = arith.constant 0 : i32
    return %arg0, %c0_i32, %c0_i32_0 : i32, i32, i32
  }
  func.func @transform_3(%arg0: i32) -> (i32, i32, i32, i32) {
    %c0_i32 = arith.constant 0 : i32
    %c0_i32_0 = arith.constant 0 : i32
    %c0_i32_1 = arith.constant 0 : i32
    %c0_i32_2 = arith.constant 0 : i32
    return %arg0, %c0_i32, %c0_i32_0, %c0_i32_1 : i32, i32, i32, i32
  }
  func.func @transform_4(%arg0: i32) -> (i32, i32, i32, i32) {
    %c0_i32 = arith.constant 0 : i32
    %c0_i32_0 = arith.constant 0 : i32
    %c0_i32_1 = arith.constant 0 : i32
    %c0_i32_2 = arith.constant 0 : i32
    return %arg0, %c0_i32, %c0_i32_0, %c0_i32_1 : i32, i32, i32, i32
  }
  func.func @transform_5(%arg0: i32) -> (i32, i32, i32, i32) {
    %c0_i32 = arith.constant 0 : i32
    %c0_i32_0 = arith.constant 0 : i32
    %c0_i32_1 = arith.constant 0 : i32
    %c0_i32_2 = arith.constant 0 : i32
    return %arg0, %c0_i32, %c0_i32_0, %c0_i32_1 : i32, i32, i32, i32
  }
  func.func @transform_6(%arg0: i32) -> (i32, i32, i32, i32) {
    %c0_i32 = arith.constant 0 : i32
    %c0_i32_0 = arith.constant 0 : i32
    %c0_i32_1 = arith.constant 0 : i32
    %c0_i32_2 = arith.constant 0 : i32
    return %arg0, %c0_i32, %c0_i32_0, %c0_i32_1 : i32, i32, i32, i32
  }
  func.func @transform_7(%arg0: i32) -> (i32, i32, i32, i32) {
    %c0_i32 = arith.constant 0 : i32
    %c0_i32_0 = arith.constant 0 : i32
    %c0_i32_1 = arith.constant 0 : i32
    %c0_i32_2 = arith.constant 0 : i32
    return %arg0, %c0_i32, %c0_i32_0, %c0_i32_1 : i32, i32, i32, i32
  }
  func.func @transform_8(%arg0: i32) -> (i32, i32, i32, i32) {
    %c0_i32 = arith.constant 0 : i32
    %c0_i32_0 = arith.constant 0 : i32
    %c0_i32_1 = arith.constant 0 : i32
    %c0_i32_2 = arith.constant 0 : i32
    return %arg0, %c0_i32, %c0_i32_0, %c0_i32_1 : i32, i32, i32, i32
  }
  func.func @transform_9(%arg0: i32) -> (i32, i32, i32, i32) {
    %c0_i32 = arith.constant 0 : i32
    %c0_i32_0 = arith.constant 0 : i32
    %c0_i32_1 = arith.constant 0 : i32
    %c0_i32_2 = arith.constant 0 : i32
    return %arg0, %c0_i32, %c0_i32_0, %c0_i32_1 : i32, i32, i32, i32
  }
  func.func @transform_10(%arg0: i32) -> (i32, i32, i32) {
    %c0_i32 = arith.constant 0 : i32
    %c0_i32_0 = arith.constant 0 : i32
    %c0_i32_1 = arith.constant 0 : i32
    return %arg0, %c0_i32, %c0_i32_0 : i32, i32, i32
  }
  func.func @transform_11(%arg0: i32) -> (i32, i32, i32) {
    %c0_i32 = arith.constant 0 : i32
    %c0_i32_0 = arith.constant 0 : i32
    %c0_i32_1 = arith.constant 0 : i32
    return %arg0, %c0_i32, %c0_i32_0 : i32, i32, i32
  }
  func.func @transform_12(%arg0: i32) -> (i32, i32, i32) {
    %c0_i32 = arith.constant 0 : i32
    %c0_i32_0 = arith.constant 0 : i32
    %c0_i32_1 = arith.constant 0 : i32
    return %arg0, %c0_i32, %c0_i32_0 : i32, i32, i32
  }
  func.func @transform_13(%arg0: i32) -> (i32, i32, i32) {
    %c0_i32 = arith.constant 0 : i32
    %c0_i32_0 = arith.constant 0 : i32
    %c0_i32_1 = arith.constant 0 : i32
    return %arg0, %c0_i32, %c0_i32_0 : i32, i32, i32
  }
  func.func @transform_14(%arg0: i32) -> (i32, i32, i32) {
    %c0_i32 = arith.constant 0 : i32
    %c0_i32_0 = arith.constant 0 : i32
    %c0_i32_1 = arith.constant 0 : i32
    return %arg0, %c0_i32, %c0_i32_0 : i32, i32, i32
  }
  func.func @transform_15(%arg0: i32) -> (i32, i32, i32) {
    %c0_i32 = arith.constant 0 : i32
    %c0_i32_0 = arith.constant 0 : i32
    %c0_i32_1 = arith.constant 0 : i32
    return %arg0, %c0_i32, %c0_i32_0 : i32, i32, i32
  }
  func.func @transform_16(%arg0: i32) -> (i32, i32, i32) {
    %c0_i32 = arith.constant 0 : i32
    %c0_i32_0 = arith.constant 0 : i32
    %c0_i32_1 = arith.constant 0 : i32
    return %arg0, %c0_i32, %c0_i32_0 : i32, i32, i32
  }
  func.func @transform_17(%arg0: i32) -> (i32, i32) {
    %c0_i32 = arith.constant 0 : i32
    %c0_i32_0 = arith.constant 0 : i32
    %c0_i32_1 = arith.constant 0 : i32
    return %c0_i32, %c0_i32_0 : i32, i32
  }
  func.func @transform_18(%arg0: i32) -> (i32, i32) {
    %c0_i32 = arith.constant 0 : i32
    %c0_i32_0 = arith.constant 0 : i32
    %c0_i32_1 = arith.constant 0 : i32
    return %c0_i32, %c0_i32_0 : i32, i32
  }
  func.func @transform_19(%arg0: i32) -> (i32, i32) {
    %c0_i32 = arith.constant 0 : i32
    %c0_i32_0 = arith.constant 0 : i32
    %c0_i32_1 = arith.constant 0 : i32
    return %c0_i32, %c0_i32_0 : i32, i32
  }
  func.func @transform_20(%arg0: i32) -> (i32, i32) {
    %c0_i32 = arith.constant 0 : i32
    %c0_i32_0 = arith.constant 0 : i32
    %c0_i32_1 = arith.constant 0 : i32
    return %c0_i32, %c0_i32_0 : i32, i32
  }
}

module attributes {stable_mosaic.version = 11 : i64} {
  func.func @_logits_kernel(%arg0: memref<1xf32, #tpu.memory_space<smem>>, %arg1: memref<2x128xf32, #tpu.memory_space<vmem>>, %arg2: memref<2x128xf32, #tpu.memory_space<vmem>>, %arg3: memref<2x2xf32, #tpu.memory_space<vmem>>) attributes {dimension_semantics = [], scalar_prefetch = 0 : i64, scratch_operands = 0 : i64, tpu.core_type = #tpu.core_type<tc>} {
    %c0 = arith.constant 0 : index
    %c0_0 = arith.constant 0 : index
    %0 = vector.load %arg1[%c0, %c0_0] : memref<2x128xf32, #tpu.memory_space<vmem>>, vector<2x128xf32>
    %c0_1 = arith.constant 0 : index
    %c0_2 = arith.constant 0 : index
    %1 = vector.load %arg2[%c0_1, %c0_2] : memref<2x128xf32, #tpu.memory_space<vmem>>, vector<2x128xf32>
    %2 = arith.mulf %0, %0 : vector<2x128xf32>
    %cst = arith.constant dense<0.000000e+00> : vector<2xf32>
    %3 = vector.multi_reduction <add>, %2, %cst [1] : vector<2x128xf32> to vector<2xf32>
    %4 = vector.shape_cast %3 : vector<2xf32> to vector<2x1xf32>
    %5 = math.rsqrt %4 : vector<2x1xf32>
    %6 = vector.broadcast %5 : vector<2x1xf32> to vector<2x128xf32>
    %7 = arith.mulf %0, %6 : vector<2x128xf32>
    %8 = arith.mulf %1, %1 : vector<2x128xf32>
    %cst_3 = arith.constant dense<0.000000e+00> : vector<2xf32>
    %9 = vector.multi_reduction <add>, %8, %cst_3 [1] : vector<2x128xf32> to vector<2xf32>
    %10 = vector.shape_cast %9 : vector<2xf32> to vector<2x1xf32>
    %11 = math.rsqrt %10 : vector<2x1xf32>
    %12 = vector.broadcast %11 : vector<2x1xf32> to vector<2x128xf32>
    %13 = arith.mulf %1, %12 : vector<2x128xf32>
    %c0_4 = arith.constant 0 : index
    %14 = memref.load %arg0[%c0_4] : memref<1xf32, #tpu.memory_space<smem>>
    "tpu.trace_start"() <{level = 10 : i32, message = "ie,te->it"}> : () -> ()
    %cst_5 = arith.constant dense<0.000000e+00> : vector<2x2xf32>
    %15 = tpu.matmul %7, %13, %cst_5 {dimension_numbers = #tpu.dot_dimension_numbers<[1], [1], [0], [0], [0, 0, 1, 0], [], []>} : vector<2x128xf32>, vector<2x128xf32>, vector<2x2xf32> -> vector<2x2xf32>
    "tpu.trace_stop"() : () -> ()
    %16 = vector.broadcast %14 : f32 to vector<2x2xf32>
    %17 = arith.mulf %16, %15 : vector<2x2xf32>
    %c0_6 = arith.constant 0 : index
    %c0_7 = arith.constant 0 : index
    %18 = vector.load %arg3[%c0_6, %c0_7] : memref<2x2xf32, #tpu.memory_space<vmem>>, vector<2x2xf32>
    tpu.vector_store %arg3[%c0_6, %c0_7], %17 {strides = array<i32>} : memref<2x2xf32, #tpu.memory_space<vmem>>, vector<2x2xf32>,
    return
  }
}

</mosaic_0001>

<bundles_post_ra>
// kernel: clip_forward.5
= control target key start
LH: loop header
LB: loop body
LE: loop exit
PB: predicated region body
PF: predicated region fallthrough
CT: control target
= control target key end

     0   :  { %vm18_vm0 = vcmask 1041408   ;;  %vm71_vm7 = vcmask 9216   ;;  %s113_s2 = inlined_call_operand.vmem [shape: f32[2,128], index: 2, kind: input, shape index: {}]   ;;  %s114_s1 = inlined_call_operand.vmem [shape: f32[2,128], index: 1, kind: input, shape index: {}]   ;;  %s115_s0 = inlined_call_operand.<no memory space> [shape: f32[1], index: 0, kind: input, shape index: {}]   ;;  %s116_s3 = inlined_call_operand.vmem [shape: f32[2,2], index: 3, kind: output, shape index: {}]  }
   0x1   :  { %v16_v0 = vld [vmem:[%s113_s2] sm:$0x3]  ;;  %v69_v24 = vstv %s115_s0 }
   0x2   :  { %v33_v1 = vmul.f32 %v16_v0, %v16_v0  ;;  %v15_v2 = vld [vmem:[%s114_s1] sm:$0x3] }
   0x3   :  { %v17_v4 = vmul.f32 %v15_v2, %v15_v2 }
   0x4   :  { %v34_v3 = vsel %vm18_vm0, %v33_v1, 0.0 }
   0x5   :  { %35 = vadd.xlane.f32.xlu0 %v34_v3  ;;  %v19_v5 = vsel %vm18_vm0, %v17_v4, 0.0 }
   0xd   :  { %20 = vadd.xlane.f32.xlu0 %v19_v5 }
  0x78   :  { %v36_v6 = vpop.xlane.xlu0 %35 }
  0x79   :  { %77 = vrsqrt.f32 %v36_v6  ;;  %vm43_vm2 = vweird.f32 %v36_v6 }
  0x7f   :  { %v78_v7 = vpop.eup %77 }
  0x80   :  { %v38_v8 = vmul.f32 %v78_v7, %v36_v6  ;;  %v21_v9 = vpop.xlane.xlu0 %20  ;;  %vm44_vm1 = vweird.f32 %v78_v7 }
  0x81   :  { %79 = vrsqrt.f32 %v21_v9  ;;  %vm45_vm3 = vmor %vm43_vm2, %vm44_vm1  ;;  %vm28_vm5 = vweird.f32 %v21_v9 }
  0x82   :  { %v39_v10 = vmul.f32 %v78_v7, %v38_v8 }
  0x84   :  { %v40_v11 = vmul.f32 0.5, %v39_v10 }
  0x86   :  { %v41_v12 = vsub.f32 1.5, %v40_v11 }
  0x87   :  { %v80_v13 = vpop.eup %79 }
  0x88   :  { %v23_v14 = vmul.f32 %v80_v13, %v21_v9  ;;  %v42_v15 = vmul.f32 %v78_v7, %v41_v12  ;;  %vm29_vm4 = vweird.f32 %v80_v13 }
  0x89   :  { %vm30_vm6 = vmor %vm28_vm5, %vm29_vm4 }
  0x8a   :  { %v24_v16 = vmul.f32 %v80_v13, %v23_v14  ;;  %v46_v17 = vsel %vm45_vm3, %v78_v7, %v42_v15 }
  0x8b   :  { %v47_v18 = vmul.f32 %v46_v17, %v16_v0 }
  0x8c   :  { %v25_v19 = vmul.f32 0.5, %v24_v16 }
  0x8d   :  { %64 = vmatpush.xpose.msra.mxu0 %v47_v18 }
  0x8e   :  { %v26_v20 = vsub.f32 1.5, %v25_v19 }
  0x90   :  { %v27_v21 = vmul.f32 %v80_v13, %v26_v20 }
  0x92   :  { %v31_v22 = vsel %vm30_vm6, %v80_v13, %v27_v21 }
  0x93   :  { %v32_v23 = vmul.f32 %v31_v22, %v15_v2 }
  0x95   :  { %65 = vmatmul.f32.vlgmr.msra.gmra.mxu0 %v32_v23 }
 0x112   :  { %v66_v25 = vpop.f32.mrf.mxu0 }
 0x113   :  { %v70_v26 = vmul.f32 %v69_v24, %v66_v25 }
 0x115   :  { %72 = vst.msk [vmem:[%s116_s3] sm:$0x3] %vm71_vm7, %v70_v26 }

// kernel: clip_forward.3
= control target key start
LH: loop header
LB: loop body
LE: loop exit
PB: predicated region body
PF: predicated region fallthrough
CT: control target
= control target key end

     0   :  { %s4065_s0 = inlined_call_operand.vmem [shape: f32[16,256], index: 0, kind: input, shape index: {}]   ;;  %s4066_s1 = inlined_call_operand.vmem [shape: bf16[256,128], index: 1, kind: input, shape index: {}]   ;;  %s4067_s2 = inlined_call_operand.vmem [shape: f32[16,128], index: 2, kind: input, shape index: {}]   ;;  %s4068_s3 = inlined_call_operand.vmem [shape: f32[1,128], index: 3, kind: input, shape index: {}]   ;;  %s4069_s4 = inlined_call_operand.vmem [shape: f32[1,128], index: 4, kind: input, shape index: {}]   ;;  %s4070_s5 = inlined_call_operand.vmem [shape: f32[2,1,128], index: 5, kind: input, shape index: {}]   ;;  %s4071_s6 = inlined_call_operand.vmem [shape: f32[2,1,128], index: 6, kind: input, shape index: {}]   ;;  %s4072_s7 = inlined_call_operand.hbm [shape: bf16[2,1,128,128], index: 7, kind: input, shape index: {}]   ;;  %s4073_s8 = inlined_call_operand.hbm [shape: bf16[2,1,128,128], index: 8, kind: input, shape index: {}]   ;;  %s4074_s9 = inlined_call_operand.hbm [shape: bf16[2,1,128,128], index: 9, kind: input, shape index: {}]   ;;  %s4075_s10 = inlined_call_operand.vmem [shape: f32[2,1,1,128], index: 10, kind: input, shape index: {}]   ;;  %s4076_s11 = inlined_call_operand.vmem [shape: f32[2,1,1,128], index: 11, kind: input, shape index: {}]   ;;  %s4077_s12 = inlined_call_operand.vmem [shape: f32[2,1,1,128], index: 12, kind: input, shape index: {}]   ;;  %s4078_s13 = inlined_call_operand.hbm [shape: bf16[2,1,128,128], index: 13, kind: input, shape index: {}]   ;;  %s4079_s14 = inlined_call_operand.vmem [shape: f32[2,1,128], index: 14, kind: input, shape index: {}]   ;;  %s4080_s15 = inlined_call_operand.vmem [shape: f32[2,1,128], index: 15, kind: input, shape index: {}]   ;;  %s4081_s16 = inlined_call_operand.vmem [shape: f32[2,1,128], index: 16, kind: input, shape index: {}]   ;;  %s4082_s17 = inlined_call_operand.vmem [shape: bf16[2,128,256], index: 17, kind: input, shape index: {}]   ;;  %s4083_s18 = inlined_call_operand.vmem [shape: f32[2,1,256], index: 18, kind: input, shape index: {}]   ;;  %s4084_s19 = inlined_call_operand.vmem [shape: bf16[2,256,128], index: 19, kind: input, shape index: {}]   ;;  %s4085_s20 = inlined_call_operand.vmem [shape: f32[2,1,128], index: 20, kind: input, shape index: {}]   ;;  %s4086_s21 = inlined_call_operand.vmem [shape: f32[1,128], index: 21, kind: input, shape index: {}]   ;;  %s4087_s22 = inlined_call_operand.vmem [shape: f32[1,128], index: 22, kind: input, shape index: {}]   ;;  %s4088_s23 = inlined_call_operand.hbm [shape: bf16[128,128], index: 23, kind: input, shape index: {}]   ;;  %s4089_s24 = inlined_call_operand.vmem [shape: f32[2,128], index: 24, kind: output, shape index: {}]  }
   0x1   :  { %4106 = sst [smem:[#allocation18_spill]] %s4065_s0 }
   0x2   :  { %4107 = sst [smem:[#allocation19_spill]] %s4066_s1 }
   0x3   :  { %4108 = sst [smem:[#allocation20_spill]] %s4067_s2 }
   0x4   :  { %4109 = sst [smem:[#allocation21_spill]] %s4068_s3 }
   0x5   :  { %4110 = sst [smem:[#allocation22_spill]] %s4069_s4 }
   0x6   :  { %4111 = sst [smem:[#allocation23_spill]] %s4070_s5 }
   0x7   :  { %4112 = sst [smem:[#allocation24_spill]] %s4071_s6 }
   0x8   :  { %4113 = sst [smem:[#allocation25_spill]] %s4072_s7 }
   0x9   :  { %4114 = sst [smem:[#allocation26_spill]] %s4073_s8 }
   0xa   :  { %4115 = sst [smem:[#allocation27_spill]] %s4074_s9 }
   0xb   :  { %4116 = sst [smem:[#allocation28_spill]] %s4078_s13 }
   0xc   :  { %4117 = sst [smem:[#allocation29_spill]] %s4080_s15 }
   0xd   :  { %4118 = sst [smem:[#allocation30_spill]] %s4081_s16 }
   0xe   :  { %4119 = sst [smem:[#allocation31_spill]] %s4082_s17 }
   0xf   :  { %4120 = sst [smem:[#allocation32_spill]] %s4083_s18 }
  0x10   :  { %4121 = sst [smem:[#allocation33_spill]] %s4084_s19 }
  0x11   :  { %4122 = sst [smem:[#allocation34_spill]] %s4085_s20 }
  0x12   :  { %4123 = sst [smem:[#allocation35_spill]] %s4086_s21 }
  0x13   :  { %4124 = sst [smem:[#allocation36_spill]] %s4087_s22 }
  0x14   :  { %4125 = sst [smem:[#allocation37_spill]] %s4088_s23 }
  0x15   :  { %4126 = sst [smem:[#allocation38_spill]] %s4089_s24 }
  0x16   :  { %29 = vsyncpa [#allocation4], 0 }
  0x17   :  { %31 = vsyncpa [#allocation4 + $0x1], 0 }
  0x18   :  { %32 = vsyncpa [#allocation6], 0 }
  0x19   :  { %34 = vsyncpa [#allocation6 + $0x1], 0 }
  0x1a   :  { %35 = vsyncpa [#allocation9], 0 }
  0x1b   :  { %37 = vsyncpa [#allocation9 + $0x1], 0  ;;  %s3509_s5 = smov 0   ;;  %s3511_s26 = smov 0  }
  0x1c   :  { %s3513_s27 = smov 0   ;;  %s3515_s28 = smov 0  }
  0x1d LB: > { %4127 = sst [smem:[#allocation15_spill]] %s3374_s27  ;;  %s3528_s6 = sadd.s32 4294967295, %s3378_s28   ;;  %s3378_s28 = sphi %s3515_s28, %s4174_s28   ;;  %s3374_s27 = sphi %s3513_s27, %s4176_s27   ;;  %s3370_s26 = sphi %s3511_s26, %s4178_s26   ;;  %s3366_s5 = sphi %s3509_s5, %s4177_s5  }
  0x1e   : > { %p220_p0 = scmp.ne.s32.totalorder %s3370_s26, %s3366_s5  ;;  %p221_p1 = scmp.eq.s32.totalorder %s3528_s6, 0 }
  0x1f   : > { %p2580_p2 = scmp.ge.s32.totalorder %s3378_s28, 1  ;;  %p653_p3 = scmp.lt.s32.totalorder %s3378_s28, 3 }
  0x20   : > { %p2581_p4 = scmp.ne.s32.totalorder %s3528_s6, 0  ;;  %p3537_p5 = por %p221_p1, %p220_p0 }
  0x21   : > { %s4129_s23 = sld [smem:[#allocation37_spill]]  ;;  %p3544_p6 = pnand %p2580_p2, %p653_p3 }
  0x22   : > { %s3380_s3 = smov [#allocation10]   ;;  %s3553_s8 = sadd.s32 1, %s3378_s28  }
  0x23   : > { %p3075_p7 = pneg %p3544_p6  ;;  %s687_s25 = sshll.u32 %s3380_s3, 4  ;;  %s688_s25 = int_to_ptr.vmem [resolvable:$true] %s687_s25 }
  0x24   : > { %4131 = sst [smem:[#allocation16_spill]] %s3553_s8  ;;  %s4095_s4 = smov 64  }
  0x25   : > { %p3076_p8 = pnand %p3075_p7, %p221_p1  ;;  %s4097_s1 = smov 4  }
  0x26   : > { %s204_s5 = ssub.s32 %s3378_s28, %s3553_s8  ;;  %s207_s29 = sadd.s32 1, %s3374_s27 }
  0x27   : > { %s685_s7 = sshll.u32 %s4129_s23, 4  ;;  %p205_p9 = scmp.eq.s32.totalorder %s204_s5, 0  ;;  %s686_s7 = int_to_ptr.hbm [resolvable:$true] %s685_s7 }
  0x28   : > { %3078 = dma.hbm_to_vmem [thread:$0]  (!%p3076_p8), %s686_s7, 1024, %s688_s25, [#allocation9], %s4095_s4, %s4095_s4, %s4097_s1  }
  0x29   : > { %p214_p10 = scmp.ne.s32.totalorder %s3374_s27, %s3370_s26  ;;  %p215_p11 = scmp.eq.s32.totalorder %s3378_s28, 0 }
  0x2a   : > { %p3093_p12 = scmp.lt.s32.totalorder %s3378_s28, 2  ;;  %s4101_s3 = sand.u32 1, %s3374_s27  }
  0x2b   : > { %s3566_s0 = scalar_select %p205_p9, %s3374_s27, %s207_s29  }
  0x2c   : > { %p216_p13 = por %p215_p11, %p214_p10  ;;  %s3571_s23 = sshll.u32 %s4101_s3, 6 }
  0x2d   : > { %4132 = sst [smem:[#allocation17_spill]] %s3566_s0  ;;  %s3574_s24 = sshll.u32 %s3378_s28, 6 }
  0x2e   : > { %p3576_p0 = pnand %p3093_p12, %p216_p13  ;;  %s4102_s25 = sand.u32 1, %s3378_s28  }
  0x2f   : > { %s4134_s29 = sld [smem:[#allocation26_spill]]  ;;  %s739_s8 = scalar_lea.vmem [#allocation5], %s3571_s23 }
  0x30   : > { %s747_s22 = sshll.u32 %s739_s8, 4  ;;  %s3588_s3 = scalar_lea.sflag [#allocation6], %s4102_s25  ;;  %s748_s22 = int_to_ptr.vmem [resolvable:$true] %s747_s22 }
  0x31   : > { %p3216_p3 = pneg %p3576_p0 }
  0x35   : > { %s744_s1 = scalar_lea.hbm %s4134_s29, %s3574_s24 }
  0x36   : > { %s745_s0 = sshll.u32 %s744_s1, 4  ;;  %s3219_s1 = scalar_lea.hbm %s4134_s29, 128  ;;  %s746_s0 = int_to_ptr.hbm [resolvable:$true] %s745_s0 }
  0x37   : > { %s3212_s21 = sshra.s32 %s746_s0, 4  ;;  %s3213_s21 = int_to_ptr.hbm [resolvable:$true] %s3212_s21 }
  0x38   : > { %s3214_s20 = scalar_lea.hbm %s3213_s21, 64  ;;  %p3220_p9 = scmp.lt.s32.totalorder %s3213_s21, %s4134_s29 }
  0x39   : > { %p3215_p2 = scmp.ne.s32.totalorder %s3213_s21, %s3214_s20  ;;  %p3221_p10 = scmp.lt.s32.totalorder %s3219_s1, %s3214_s20 }
  0x3b   : > { %p3217_p7 = pnand %p3216_p3, %p3215_p2  ;;  %p3222_p11 = por %p3221_p10, %p3220_p9 }
  0x3d   : > { %p3218_p8 = pneg %p3217_p7 }
  0x3f   : > { %p3223_p12 = pnand %p3222_p11, %p3218_p8 }
  0x41   : > { %3226 = shalt.err (!%p3223_p12)
}
  0x42   : > { %s4135_s25 = smov 4   ;;  %s4136_s18 = smov 64  }
  0x43   : > { %3085 = dma.hbm_to_vmem [thread:$0]  (!%p3576_p0), %s746_s0, 1024, %s748_s22, %s3588_s3, %s4136_s18, %s4136_s18, %s4135_s25  }
  0x44   : > { %s4137_s17 = sld [smem:[#allocation25_spill]]  ;;  %s717_s20 = scalar_lea.vmem [#allocation3], %s3571_s23 }
  0x45   : > { %s725_s1 = sshll.u32 %s717_s20, 4  ;;  %s4138_s8 = sand.u32 1, %s3374_s27   ;;  %s726_s1 = int_to_ptr.vmem [resolvable:$true] %s725_s1 }
  0x46   : > { %s714_s29 = scalar_lea.sflag [#allocation4], %s4138_s8 }
  0x4a   : > { %s722_s19 = scalar_lea.hbm %s4137_s17, %s3574_s24  ;;  %s3249_s4 = scalar_lea.hbm %s4137_s17, 128 }
  0x4b   : > { %s723_s21 = sshll.u32 %s722_s19, 4  ;;  %s724_s21 = int_to_ptr.hbm [resolvable:$true] %s723_s21 }
  0x4c   : > { %s3242_s16 = sshra.s32 %s724_s21, 4  ;;  %s3243_s16 = int_to_ptr.hbm [resolvable:$true] %s3242_s16 }
  0x4d   : > { %s3244_s15 = scalar_lea.hbm %s3243_s16, 64  ;;  %p3250_p8 = scmp.lt.s32.totalorder %s3243_s16, %s4137_s17 }
  0x4e   : > { %p3245_p13 = scmp.ne.s32.totalorder %s3243_s16, %s3244_s15  ;;  %p3251_p9 = scmp.lt.s32.totalorder %s3249_s4, %s3244_s15 }
  0x50   : > { %p3247_p2 = pnand %p3245_p13, %p3216_p3  ;;  %p3252_p10 = por %p3251_p9, %p3250_p8 }
  0x52   : > { %p3248_p7 = pneg %p3247_p2 }
  0x54   : > { %p3253_p11 = pnand %p3252_p10, %p3248_p7 }
  0x56   : > { %3256 = shalt.err (!%p3253_p11)
}
  0x57   : > { %3082 = dma.hbm_to_vmem [thread:$0]  (!%p3576_p0), %s724_s21, 1024, %s726_s1, %s714_s29, %s4136_s18, %s4136_s18, %s4135_s25  }
  0x58   : > { %s4139_s9 = sld [smem:[#allocation27_spill]]  ;;  %s761_s5 = scalar_lea.vmem [#allocation7], %s3571_s23 }
  0x59   : > { %s769_s16 = sshll.u32 %s761_s5, 4  ;;  %s770_s16 = int_to_ptr.vmem [resolvable:$true] %s769_s16 }
  0x5e   : > { %s766_s22 = scalar_lea.hbm %s4139_s9, %s3574_s24  ;;  %s3279_s29 = scalar_lea.hbm %s4139_s9, 128 }
  0x5f   : > { %s767_s0 = sshll.u32 %s766_s22, 4  ;;  %s768_s0 = int_to_ptr.hbm [resolvable:$true] %s767_s0 }
  0x60   : > { %s3272_s15 = sshra.s32 %s768_s0, 4  ;;  %s3273_s15 = int_to_ptr.hbm [resolvable:$true] %s3272_s15 }
  0x61   : > { %s3274_s4 = scalar_lea.hbm %s3273_s15, 64  ;;  %p3280_p7 = scmp.lt.s32.totalorder %s3273_s15, %s4139_s9 }
  0x62   : > { %p3275_p12 = scmp.ne.s32.totalorder %s3273_s15, %s3274_s4  ;;  %p3281_p8 = scmp.lt.s32.totalorder %s3279_s29, %s3274_s4 }
  0x64   : > { %p3277_p13 = pnand %p3275_p12, %p3216_p3  ;;  %p3282_p9 = por %p3281_p8, %p3280_p7 }
  0x66   : > { %p3278_p2 = pneg %p3277_p13 }
  0x68   : > { %p3283_p10 = pnand %p3282_p9, %p3278_p2 }
  0x6a   : > { %3286 = shalt.err (!%p3283_p10)
}
  0x6b   : > { %3088 = dma.hbm_to_vmem [thread:$0]  (!%p3576_p0), %s768_s0, 1024, %s770_s16, %s3588_s3, %s4136_s18, %s4136_s18, %s4135_s25  }
  0x6c   : > { %s4140_s13 = sld [smem:[#allocation28_spill]]  ;;  %s801_s5 = scalar_lea.vmem [#allocation8], %s3571_s23 }
  0x6d   : > { %s809_s15 = sshll.u32 %s801_s5, 4  ;;  %s4141_s4 = sand.u32 1, %s3378_s28   ;;  %s810_s15 = int_to_ptr.vmem [resolvable:$true] %s809_s15 }
  0x6e   : > { %s798_s19 = scalar_lea.sflag [#allocation9], %s4141_s4 }
  0x72   : > { %s806_s8 = scalar_lea.hbm %s4140_s13, %s3574_s24  ;;  %s3309_s16 = scalar_lea.hbm %s4140_s13, 128 }
  0x73   : > { %s807_s22 = sshll.u32 %s806_s8, 4  ;;  %s808_s22 = int_to_ptr.hbm [resolvable:$true] %s807_s22 }
  0x74   : > { %s3302_s29 = sshra.s32 %s808_s22, 4  ;;  %s3303_s29 = int_to_ptr.hbm [resolvable:$true] %s3302_s29 }
  0x75   : > { %s3304_s21 = scalar_lea.hbm %s3303_s29, 64  ;;  %p3310_p2 = scmp.lt.s32.totalorder %s3303_s29, %s4140_s13 }
  0x76   : > { %p3305_p11 = scmp.ne.s32.totalorder %s3303_s29, %s3304_s21  ;;  %p3311_p7 = scmp.lt.s32.totalorder %s3309_s16, %s3304_s21 }
  0x78   : > { %p3307_p12 = pnand %p3305_p11, %p3216_p3  ;;  %p3312_p8 = por %p3311_p7, %p3310_p2 }
  0x7a   : > { %p3308_p13 = pneg %p3307_p12 }
  0x7c   : > { %p3313_p9 = pnand %p3312_p8, %p3308_p13 }
  0x7e   : > { %3316 = shalt.err (!%p3313_p9)
}
  0x7f   : > { %3091 = dma.hbm_to_vmem [thread:$0]  (!%p3576_p0), %s808_s22, 1024, %s810_s15, %s798_s19, %s4136_s18, %s4136_s18, %s4135_s25  }
  0x80   : > { %868 = sbr.rel (%p3544_p6) target bundleno = 2688 (0xa80), region = 116  ;;  %s870_s23 = sand.u32 (!%p3544_p6), 1, %s3370_s26  }
  0x81   : > { %s2596_s28 = sshll.u32 (!%p3544_p6), %s870_s23, 6  ;;  %s871_s17 = scalar_lea.sflag (!%p3544_p6), [#allocation4], %s870_s23 }
  0x82   : > { %s3672_s20 = scalar_lea.vmem (!%p3544_p6), [#allocation3], %s2596_s28 }
  0x85   : > { %3349 = dma.done.wait (%p3537_p5), %s871_s17, 1024  }
  0x86   : > { %3351 = vsyncadd (%p3537_p5), %s871_s17, 4294966272  ;;  %s880_s7 = sand.u32 1, %s3528_s6   ;;  %s3679_s18 = scalar_lea.vmem [#allocation5], %s2596_s28 }
  0x87   : > { %s881_s8 = scalar_lea.sflag [#allocation6], %s880_s7 }
  0x88   : > { %3353 = dma.done.wait (%p3537_p5), %s881_s8, 2048  }
  0x89   : > { %3355 = vsyncadd (%p3537_p5), %s881_s8, 4294965248  ;;  %s3685_s30 = scalar_lea.vmem [#allocation7], %s2596_s28  ;;  %s901_s25 = scalar_lea.sflag [#allocation9], %s880_s7 }
  0x8a   : > { %s3687_s22 = scalar_lea.vmem [#allocation8], %s2596_s28 }
  0x8b   : > { %3357 = dma.done.wait (%p3537_p5), %s901_s25, 1024  }
  0x8c   : > { %3359 = vsyncadd (%p3537_p5), %s901_s25, 4294966272 }
  0x8d   : > { %3361 = dma.done.wait (%p221_p1), [#allocation9], 1024  }
  0x8e   : > { %3363 = vsyncadd (%p221_p1), [#allocation9], 4294966272  ;;  %p1026_p6 = scmp.lt.s32.totalorder %s3528_s6, 1  ;;  %v1068_v0 = vlaneseq  ;;  %v3383_v2 = vmov 0.0   ;;  %s4144_s3 = sld [smem:[#allocation29_spill]] }
  0x8f   : > { %s4146_s13 = sld [smem:[#allocation31_spill]] }
  0x90   : > { %s3699_s5 = scalar_select %p1026_p6, %s3528_s6, 1  ;;  %v1069_v1 = vand.u32 127, %v1068_v0 }
  0x91   : > { %s4147_s25 = sld [smem:[#allocation32_spill]] }
  0x92   : > { %vm1070_vm0 = vcmp.lt.s32.totalorder %v1069_v1, 64  ;;  %vm1073_vm1 = vcmp.ge.s32.totalorder %v1069_v1, 5  ;;  %s2973_s17 = sshll.u32 %s3699_s5, 7  ;;  %s2603_s0 = sshll.u32 %s3699_s5, 1 }
  0x93   : > { %v3717_v3 = vsel %vm1070_vm0, 1.0, %v3383_v2  ;;  %v3719_v4 = vsel %vm1073_vm1, -1e+30, %v3383_v2  ;;  %s4148_s29 = sld [smem:[#allocation33_spill]] }
  0x94   : > { %s1046_s16 = scalar_lea.vmem %s4144_s3, %s3699_s5  ;;  %s4149_s23 = sld [smem:[#allocation34_spill]] }
  0x95   : > { %s3742_s27 = scalar_lea.vmem %s4146_s13, %s2973_s17  ;;  %s4150_s19 = sld [smem:[#allocation19_spill]] (!%p2581_p4) }
  0x96   : > { %1078 = sbr.rel (%p2581_p4) target bundleno = 594 (0x252), region = 140  ;;  %s4152_s9 = sld [smem:[#allocation20_spill]] (!%p2581_p4) }
  0x97   : > { %s3747_s2 = scalar_lea.vmem %s4147_s25, %s2603_s0  ;;  %s4151_s25 = sld [smem:[#allocation18_spill]] (!%p2581_p4) }
  0x98   : > { %s4153_s4 = sld [smem:[#allocation21_spill]] (!%p2581_p4) }
  0x99   : > { %s3752_s21 = scalar_lea.vmem %s4148_s29, %s2973_s17  ;;  %s4154_s29 = sld [smem:[#allocation22_spill]] (!%p2581_p4) }
  0x9a   : > { %s1066_s28 = scalar_lea.vmem %s4149_s23, %s3699_s5 }
  0x9b   : > { %v2982_v5 = vld [vmem:[%s4150_s19 + $0x38] sm:$0xff]  ;;  %v2981_v7 = vld [vmem:[%s4150_s19 + $0x30] sm:$0xff]  ;;  %v2980_v9 = vld [vmem:[%s4150_s19 + $0x28] sm:$0xff] }
  0x9c   : > { %v2990_v6 = vld [vmem:[%s4150_s19 + $0x78] sm:$0xff]  ;;  %1215 = vmatpush.bf16.msra.mxu0 %v2982_v5  ;;  %v2989_v8 = vld [vmem:[%s4150_s19 + $0x70] sm:$0xff]  ;;  %v2988_v10 = vld [vmem:[%s4150_s19 + $0x68] sm:$0xff] }
  0x9d   : > { %1229 = vmatpush.bf16.msra.mxu1 %v2990_v6  ;;  %v2979_v11 = vld [vmem:[%s4150_s19 + $0x20] sm:$0xff]  ;;  %v2978_v13 = vld [vmem:[%s4150_s19 + $0x18] sm:$0xff]  ;;  %v2977_v15 = vld [vmem:[%s4150_s19 + $0x10] sm:$0xff] }
  0x9e   : > { %v2987_v12 = vld [vmem:[%s4150_s19 + $0x60] sm:$0xff]  ;;  %v2986_v14 = vld [vmem:[%s4150_s19 + $0x58] sm:$0xff]  ;;  %v2985_v16 = vld [vmem:[%s4150_s19 + $0x50] sm:$0xff] }
  0x9f   : > { %v2976_v17 = vld [vmem:[%s4150_s19 + $0x8] sm:$0xff]  ;;  %v2975_v19 = vld [vmem:[%s4150_s19] sm:$0xff]  ;;  %v1081_v22 = vld [vmem:[%s4151_s25 + $0x10] sm:$0xff] }
  0xa0   : > { %1216 = vmatpush.bf16.msra.mxu0 %v2981_v7  ;;  %v2984_v18 = vld [vmem:[%s4150_s19 + $0x48] sm:$0xff]  ;;  %v2983_v20 = vld [vmem:[%s4150_s19 + $0x40] sm:$0xff]  ;;  %v1082_v24 = vld [vmem:[%s4151_s25 + $0x18] sm:$0xff] }
  0xa1   : > { %1230 = vmatpush.bf16.msra.mxu1 %v2989_v8  ;;  %v1079_v21 = vld [vmem:[%s4151_s25] sm:$0xff]  ;;  %v1080_v23 = vld [vmem:[%s4151_s25 + $0x8] sm:$0xff] }
  0xa2   : > { %v1083_v25 = vpack.c.bf16 %v1081_v22, %v1079_v21  ;;  %v1084_v26 = vpack.c.bf16 %v1082_v24, %v1080_v23  ;;  %v1117_v27 = vld [vmem:[%s4152_s9] sm:$0xff]  ;;  %v1118_v32 = vld [vmem:[%s4152_s9 + $0x8] sm:$0xff] }
  0xa3   : > { %v3131_v61 = vld [vmem:[%s4153_s4] ss:$0 sm:$0xff] }
  0xa4   : > { %1217 = vmatpush.bf16.msra.mxu0 %v2980_v9  ;;  %v3132_v0 = vld [vmem:[%s4154_s29] ss:$0 sm:$0xff] }
  0xa5   : > { %1231 = vmatpush.bf16.msra.mxu1 %v2988_v10 }
  0xa8   : > { %1218 = vmatpush.bf16.msra.mxu0 %v2979_v11 }
  0xa9   : > { %1232 = vmatpush.bf16.msra.mxu1 %v2987_v12 }
  0xac   : > { %1219 = vmatpush.bf16.msra.mxu0 %v2978_v13 }
  0xad   : > { %1233 = vmatpush.bf16.msra.mxu1 %v2986_v14 }
  0xb0   : > { %1220 = vmatpush.bf16.msra.mxu0 %v2977_v15 }
  0xb1   : > { %1234 = vmatpush.bf16.msra.mxu1 %v2985_v16 }
  0xb4   : > { %1221 = vmatpush.bf16.msra.mxu0 %v2976_v17 }
  0xb5   : > { %1235 = vmatpush.bf16.msra.mxu1 %v2984_v18 }
  0xb8   : > { %1222 = vmatpush.bf16.msra.mxu0 %v2975_v19 }
  0xb9   : > { %1236 = vmatpush.bf16.msra.mxu1 %v2983_v20 }
  0xbb   : > { %1223 = vmatmul.bf16.vlgmr.msra.gmra.mxu0 %v1083_v25 }
  0xbc   : > { %1237 = vmatmul.bf16.vlgmr.msra.gmra.mxu1 %v1084_v26 }
 0x138   : > { %v1224_v28 = vpop.f32.mrf.mxu0 }
 0x139   : > { %v1238_v29 = vpop.f32.mrf.mxu1  ;;  %v1225_v30 = vadd.f32 %v1224_v28, %v1117_v27 }
 0x13b   : > { %v1239_v31 = vadd.f32 %v1238_v29, %v1225_v30 }
 0x13d   : > { %1245 = vadd.xlane.f32.xlu0 %v1239_v31 }
 0x140   : > { %v1226_v33 = vpop.f32.mrf.mxu0 }
 0x141   : > { %v1227_v34 = vadd.f32 %v1226_v33, %v1118_v32  ;;  %v1240_v35 = vpop.f32.mrf.mxu1 }
 0x143   : > { %v1241_v36 = vadd.f32 %v1240_v35, %v1227_v34 }
 0x145   : > { %1247 = vadd.xlane.f32.xlu0 %v1241_v36 }
 0x1b0   : > { %v1246_v37 = vpop.xlane.xlu0 %1245 }
 0x1b1   : > { %v1249_v38 = vmul.f32 0.015625, %v1246_v37 }
 0x1b3   : > { %v1251_v39 = vsub.f32 %v1239_v31, %v1249_v38 }
 0x1b5   : > { %v1253_v40 = vmul.f32 %v3717_v3, %v1251_v39 }
 0x1b7   : > { %v1255_v41 = vmul.f32 %v1253_v40, %v1253_v40 }
 0x1b8   : > { %v1248_v42 = vpop.xlane.xlu0 %1247 }
 0x1b9   : > { %v1250_v43 = vmul.f32 0.015625, %v1248_v42  ;;  %1257 = vadd.xlane.f32.xlu1 %v1255_v41 }
 0x1bb   : > { %v1252_v44 = vsub.f32 %v1241_v36, %v1250_v43 }
 0x1bd   : > { %v1254_v45 = vmul.f32 %v3717_v3, %v1252_v44 }
 0x1bf   : > { %v1256_v46 = vmul.f32 %v1254_v45, %v1254_v45 }
 0x1c1   : > { %1259 = vadd.xlane.f32.xlu1 %v1256_v46 }
 0x22c   : > { %v1258_v47 = vpop.xlane.xlu1 %1257 }
 0x22d   : > { %v1261_v48 = vmul.f32 0.015625, %v1258_v47 }
 0x22f   : > { %v1263_v49 = vadd.f32 1e-05, %v1261_v48 }
 0x231   : > { %3133 = vrsqrt.f32 %v1263_v49  ;;  %vm1271_vm3 = vweird.f32 %v1263_v49 }
 0x234   : > { %v1260_v50 = vpop.xlane.xlu1 %1259 }
 0x235   : > { %v1262_v51 = vmul.f32 0.015625, %v1260_v50 }
 0x237   : > { %v3134_v52 = vpop.eup %3133  ;;  %v1264_v53 = vadd.f32 1e-05, %v1262_v51 }
 0x238   : > { %v1266_v54 = vmul.f32 %v3134_v52, %v1263_v49  ;;  %vm1272_vm2 = vweird.f32 %v3134_v52 }
 0x239   : > { %3135 = vrsqrt.f32 %v1264_v53  ;;  %vm1273_vm4 = vmor %vm1271_vm3, %vm1272_vm2  ;;  %vm1281_vm6 = vweird.f32 %v1264_v53 }
 0x23a   : > { %v1267_v55 = vmul.f32 %v3134_v52, %v1266_v54 }
 0x23c   : > { %v1268_v56 = vmul.f32 0.5, %v1267_v55 }
 0x23e   : > { %v1269_v57 = vsub.f32 1.5, %v1268_v56 }
 0x23f   : > { %v3136_v58 = vpop.eup %3135 }
 0x240   : > { %v1270_v59 = vmul.f32 %v3134_v52, %v1269_v57  ;;  %v1276_v60 = vmul.f32 %v3136_v58, %v1264_v53  ;;  %vm1282_vm5 = vweird.f32 %v3136_v58 }
 0x241   : > { %vm1283_vm7 = vmor %vm1281_vm6, %vm1282_vm5 }
 0x242   : > { %v1274_v62 = vsel %vm1273_vm4, %v3134_v52, %v1270_v59  ;;  %v1277_v63 = vmul.f32 %v3136_v58, %v1276_v60 }
 0x243   : > { %v1285_v1 = vmul.f32 %v1274_v62, %v1253_v40 }
 0x244   : > { %v1278_v2 = vmul.f32 0.5, %v1277_v63 }
 0x245   : > { %v1290_v5 = vmul.f32 %v3131_v61, %v1285_v1 }
 0x246   : > { %v1279_v6 = vsub.f32 1.5, %v1278_v2 }
 0x247   : > { %v1295_v7 = vadd.f32 %v3132_v0, %v1290_v5 }
 0x248   : > { %v1280_v8 = vmul.f32 %v3136_v58, %v1279_v6 }
 0x249   : > { %1297 = vst [vmem:[#allocation2] sm:$0xff] %v1295_v7 }
 0x24a   : > { %v1284_v9 = vsel %vm1283_vm7, %v3136_v58, %v1280_v8 }
 0x24b   : > { %v1286_v10 = vmul.f32 %v1284_v9, %v1254_v45 }
 0x24d   : > { %v1291_v11 = vmul.f32 %v3131_v61, %v1286_v10 }
 0x24f   : > { %v1296_v12 = vadd.f32 %v3132_v0, %v1291_v11 }
 0x251   : > { %1298 = vst [vmem:[#allocation2 + $0x8] sm:$0xff] %v1296_v12 }
 0x252 PF: > { %v3834_v13 = vld [vmem:[#allocation2] sm:$0xff]  ;;  %v2998_v25 = vld [vmem:[%s3672_s20 + $0x38] sm:$0xff]  ;;  %v2996_v31 = vld [vmem:[%s3672_s20 + $0x28] sm:$0xff]  ;;  %s4157_s23 = sld [smem:[#allocation24_spill]]  ;;  %s4159_s17 = scalar_lea.vmem %s4076_s11, %s3699_s5  ;;  %vm1666_vm14 = vcmask 1043456   ;;  %vm1638_vm15 = vcmask 64512  }
 0x253   : > { %1303 = vadd.xlane.f32.xlu0 %v3834_v13  ;;  %v3006_v26 = vld [vmem:[%s3679_s18 + $0x38] sm:$0xff]  ;;  %1424 = vmatpush.bf16.msra.mxu0 %v2998_v25  ;;  %v2997_v28 = vld [vmem:[%s3672_s20 + $0x30] sm:$0xff]  ;;  %v3004_v32 = vld [vmem:[%s3679_s18 + $0x28] sm:$0xff]  ;;  %s4160_s15 = scalar_lea.vmem %s4075_s10, %s3699_s5  ;;  %s4162_s1 = scalar_lea.vmem %s4079_s14, %s3699_s5 }
 0x254   : > { %v3014_v27 = vld [vmem:[%s3685_s30 + $0x38] sm:$0xff]  ;;  %1506 = vmatpush.bf16.msra.mxu1 %v3006_v26  ;;  %v3005_v29 = vld [vmem:[%s3679_s18 + $0x30] sm:$0xff]  ;;  %v3012_v33 = vld [vmem:[%s3685_s30 + $0x28] sm:$0xff]  ;;  %s4164_s7 = sld [smem:[#allocation30_spill]]  ;;  %p2934_p1 = scmp.ne.s32.totalorder %s3528_s6, 1 }
 0x255   : > { %1588 = vmatpush.bf16.msra.mxu2 %v3014_v27  ;;  %v3013_v30 = vld [vmem:[%s3685_s30 + $0x30] sm:$0xff]  ;;  %v2995_v34 = vld [vmem:[%s3672_s20 + $0x20] sm:$0xff]  ;;  %v2994_v37 = vld [vmem:[%s3672_s20 + $0x18] sm:$0xff]  ;;  %s4172_s8 = sld [smem:[#allocation36_spill]] (!%p2934_p1) }
 0x256   : > { %v3003_v35 = vld [vmem:[%s3679_s18 + $0x20] sm:$0xff]  ;;  %v3002_v38 = vld [vmem:[%s3679_s18 + $0x18] sm:$0xff]  ;;  %v2993_v40 = vld [vmem:[%s3672_s20 + $0x10] sm:$0xff] }
 0x257   : > { %1425 = vmatpush.bf16.msra.mxu0 %v2997_v28  ;;  %v3011_v36 = vld [vmem:[%s3685_s30 + $0x20] sm:$0xff]  ;;  %v3010_v39 = vld [vmem:[%s3685_s30 + $0x18] sm:$0xff]  ;;  %v3001_v41 = vld [vmem:[%s3679_s18 + $0x10] sm:$0xff] }
 0x258   : > { %v3837_v14 = vld [vmem:[#allocation2 + $0x8] sm:$0xff]  ;;  %1507 = vmatpush.bf16.msra.mxu1 %v3005_v29  ;;  %v3009_v42 = vld [vmem:[%s3685_s30 + $0x10] sm:$0xff]  ;;  %v2992_v43 = vld [vmem:[%s3672_s20 + $0x8] sm:$0xff]  ;;  %s4158_s13 = scalar_lea.vmem %s4157_s23, %s3699_s5 }
 0x259   : > { %1589 = vmatpush.bf16.msra.mxu2 %v3013_v30  ;;  %v3000_v44 = vld [vmem:[%s3679_s18 + $0x8] sm:$0xff]  ;;  %v2991_v47 = vld [vmem:[%s3672_s20] sm:$0xff]  ;;  %v3138_v11 = vld [vmem:[%s4158_s13] ss:$0 sm:$0xff]  ;;  %s4173_s20 = sld [smem:[#allocation38_spill]] (!%p2934_p1) }
 0x25a   : > { %v3008_v45 = vld [vmem:[%s3685_s30 + $0x8] sm:$0xff]  ;;  %v2999_v48 = vld [vmem:[%s3679_s18] sm:$0xff]  ;;  %s4161_s18 = scalar_lea.vmem %s4077_s12, %s3699_s5  ;;  %s4165_s0 = scalar_lea.vmem %s4164_s7, %s3699_s5 }
 0x25b   : > { %1305 = vadd.xlane.f32.xlu0 %v3837_v14  ;;  %1426 = vmatpush.bf16.msra.mxu0 %v2996_v31  ;;  %v3007_v50 = vld [vmem:[%s3685_s30] sm:$0xff]  ;;  %s4155_s30 = sld [smem:[#allocation23_spill]] }
 0x25c   : > { %1508 = vmatpush.bf16.msra.mxu1 %v3004_v32 }
 0x25d   : > { %1590 = vmatpush.bf16.msra.mxu2 %v3012_v33 }
 0x25f   : > { %1427 = vmatpush.bf16.msra.mxu0 %v2995_v34 }
 0x260   : > { %1509 = vmatpush.bf16.msra.mxu1 %v3003_v35 }
 0x261   : > { %1591 = vmatpush.bf16.msra.mxu2 %v3011_v36  ;;  %s4156_s3 = scalar_lea.vmem %s4155_s30, %s3699_s5 }
 0x262   : > { %v3137_v6 = vld [vmem:[%s4156_s3] ss:$0 sm:$0xff] }
 0x263   : > { %1428 = vmatpush.bf16.msra.mxu0 %v2994_v37 }
 0x264   : > { %1510 = vmatpush.bf16.msra.mxu1 %v3002_v38 }
 0x265   : > { %1592 = vmatpush.bf16.msra.mxu2 %v3010_v39 }
 0x267   : > { %1429 = vmatpush.bf16.msra.mxu0 %v2993_v40 }
 0x268   : > { %1511 = vmatpush.bf16.msra.mxu1 %v3001_v41 }
 0x269   : > { %1593 = vmatpush.bf16.msra.mxu2 %v3009_v42 }
 0x26b   : > { %1430 = vmatpush.bf16.msra.mxu0 %v2992_v43 }
 0x26c   : > { %1512 = vmatpush.bf16.msra.mxu1 %v3000_v44 }
 0x26d   : > { %1594 = vmatpush.bf16.msra.mxu2 %v3008_v45 }
 0x26f   : > { %1431 = vmatpush.bf16.msra.mxu0 %v2991_v47 }
 0x270   : > { %1513 = vmatpush.bf16.msra.mxu1 %v2999_v48 }
 0x271   : > { %1595 = vmatpush.bf16.msra.mxu2 %v3007_v50 }
 0x2c6   : > { %v1304_v15 = vpop.xlane.xlu0 %1303 }
 0x2c7   : > { %v1307_v16 = vmul.f32 0.015625, %v1304_v15 }
 0x2c9   : > { %v1309_v17 = vsub.f32 %v3834_v13, %v1307_v16 }
 0x2cb   : > { %v3842_v18 = vmul.f32 %v3717_v3, %v1309_v17 }
 0x2cd   : > { %v1313_v19 = vmul.f32 %v3842_v18, %v3842_v18 }
 0x2ce   : > { %v1306_v20 = vpop.xlane.xlu0 %1305 }
 0x2cf   : > { %v1308_v21 = vmul.f32 0.015625, %v1306_v20  ;;  %1315 = vadd.xlane.f32.xlu1 %v1313_v19 }
 0x2d1   : > { %v1310_v22 = vsub.f32 %v3837_v14, %v1308_v21  ;;  %v3139_v21 = vld [vmem:[%s4160_s15] ss:$0 sm:$0xff] }
 0x2d3   : > { %v3848_v23 = vmul.f32 %v3717_v3, %v1310_v22 }
 0x2d5   : > { %v1314_v24 = vmul.f32 %v3848_v23, %v3848_v23 }
 0x2d7   : > { %1317 = vadd.xlane.f32.xlu1 %v1314_v24  ;;  %v3141_v24 = vld [vmem:[%s4161_s18] ss:$0 sm:$0xff] }
 0x342   : > { %v1316_v46 = vpop.xlane.xlu1 %1315 }
 0x343   : > { %v1319_v49 = vmul.f32 0.015625, %v1316_v46 }
 0x345   : > { %v1321_v51 = vadd.f32 1e-05, %v1319_v49 }
 0x347   : > { %3146 = vrsqrt.f32 %v1321_v51  ;;  %vm1329_vm9 = vweird.f32 %v1321_v51 }
 0x34a   : > { %v1318_v52 = vpop.xlane.xlu1 %1317 }
 0x34b   : > { %v1320_v53 = vmul.f32 0.015625, %v1318_v52 }
 0x34d   : > { %v3147_v54 = vpop.eup %3146  ;;  %v1322_v55 = vadd.f32 1e-05, %v1320_v53 }
 0x34e   : > { %v1324_v56 = vmul.f32 %v3147_v54, %v1321_v51  ;;  %vm1330_vm8 = vweird.f32 %v3147_v54 }
 0x34f   : > { %3148 = vrsqrt.f32 %v1322_v55  ;;  %vm1331_vm10 = vmor %vm1329_vm9, %vm1330_vm8  ;;  %vm1339_vm12 = vweird.f32 %v1322_v55 }
 0x350   : > { %v1325_v57 = vmul.f32 %v3147_v54, %v1324_v56 }
 0x352   : > { %v1326_v58 = vmul.f32 0.5, %v1325_v57 }
 0x354   : > { %v1327_v59 = vsub.f32 1.5, %v1326_v58 }
 0x355   : > { %v3149_v60 = vpop.eup %3148 }
 0x356   : > { %v1328_v61 = vmul.f32 %v3147_v54, %v1327_v59  ;;  %v1334_v62 = vmul.f32 %v3149_v60, %v1322_v55  ;;  %vm1340_vm11 = vweird.f32 %v3149_v60 }
 0x357   : > { %vm1341_vm13 = vmor %vm1339_vm12, %vm1340_vm11 }
 0x358   : > { %v1335_v63 = vmul.f32 %v3149_v60, %v1334_v62  ;;  %v1332_v0 = vsel %vm1331_vm10, %v3147_v54, %v1328_v61  ;;  %v3021_v61 = vld [vmem:[%s3687_s22 + $0x30] sm:$0xff] }
 0x359   : > { %v1343_v5 = vmul.f32 %v1332_v0, %v3842_v18  ;;  %v3140_v18 = vld [vmem:[%s4159_s17] ss:$0 sm:$0xff]  ;;  %v3019_v0 = vld [vmem:[%s3687_s22 + $0x20] sm:$0xff] }
 0x35a   : > { %v1336_v1 = vmul.f32 0.5, %v1335_v63  ;;  %v3020_v63 = vld [vmem:[%s3687_s22 + $0x28] sm:$0xff] }
 0x35b   : > { %v1348_v10 = vmul.f32 %v3137_v6, %v1343_v5 }
 0x35c   : > { %v1337_v2 = vsub.f32 1.5, %v1336_v1 }
 0x35d   : > { %v1353_v15 = vadd.f32 %v3138_v11, %v1348_v10 }
 0x35e   : > { %v1338_v7 = vmul.f32 %v3149_v60, %v1337_v2 }
 0x360   : > { %v1342_v8 = vsel %vm1341_vm13, %v3149_v60, %v1338_v7  ;;  %v3022_v60 = vld [vmem:[%s3687_s22 + $0x38] sm:$0xff] }
 0x361   : > { %v1344_v9 = vmul.f32 %v1342_v8, %v3848_v23  ;;  %1767 = vmatpush.bf16.msrb.mxu1 %v3022_v60  ;;  %v3030_v60 = vld [vmem:[%s3742_s27 + $0x34] sm:$0xf0] }
 0x363   : > { %v1349_v12 = vmul.f32 %v3137_v6, %v1344_v9  ;;  %v3018_v6 = vld [vmem:[%s3687_s22 + $0x18] sm:$0xff] }
 0x365   : > { %v1354_v16 = vadd.f32 %v3138_v11, %v1349_v12  ;;  %1768 = vmatpush.bf16.msrb.mxu1 %v3021_v61  ;;  %v3017_v11 = vld [vmem:[%s3687_s22 + $0x10] sm:$0xff]  ;;  %v3016_v12 = vld [vmem:[%s3687_s22 + $0x8] sm:$0xff]  ;;  %v3029_v61 = vld [vmem:[%s3742_s27 + $0x34] sm:$0xf] }
 0x367   : > { %v1355_v17 = vpack.c.bf16 %v1354_v16, %v1353_v15  ;;  %v3015_v15 = vld [vmem:[%s3687_s22] sm:$0xff] }
 0x369   : > { %1432 = vmatmul.bf16.vlgmr.msra.gmra.mxu0 %v1355_v17  ;;  %1514 = vmatmul.bf16.vlgmr.msra.gmra.mxu1 %v1355_v17 }
 0x36a   : > { %1596 = vmatmul.bf16.vlgmr.msra.gmra.mxu2 %v1355_v17  ;;  %1769 = vmatpush.bf16.msrb.mxu1 %v3020_v63  ;;  %v2830_v63 = vld [vmem:[%s3742_s27 + $0x38] sm:$0xf0] }
 0x36e   : > { %1770 = vmatpush.bf16.msrb.mxu1 %v3019_v0  ;;  %v2833_v0 = vor.u32 %v3029_v61, %v2830_v63 }
 0x372   : > { %1771 = vmatpush.bf16.msrb.mxu1 %v3018_v6 }
 0x376   : > { %1772 = vmatpush.bf16.msrb.mxu1 %v3017_v11  ;;  %v3025_v11 = vld [vmem:[%s3742_s27 + $0x14] sm:$0xf] }
 0x37a   : > { %1773 = vmatpush.bf16.msrb.mxu1 %v3016_v12 }
 0x37e   : > { %1774 = vmatpush.bf16.msrb.mxu1 %v3015_v15  ;;  %v2814_v15 = vld [vmem:[%s3742_s27 + $0x18] sm:$0xf0] }
 0x3e6   : > { %v1515_v19 = vpop.f32.mrf.mxu1  ;;  %v1433_v22 = vpop.f32.mrf.mxu0 }
 0x3e7   : > { %v1516_v20 = vadd.f32 %v3140_v18, %v1515_v19  ;;  %v1434_v25 = vadd.f32 %v3139_v21, %v1433_v22 }
 0x3e9   : > { %v1604_v23 = vpack.c.bf16 %v1516_v20, %v1516_v20  ;;  %v1602_v30 = vpack.c.bf16 %v1434_v25, %v1434_v25 }
 0x3eb   : > { %1615 = vmatpush.bf16.xpose.msra.mxu3 %v1604_v23 }
 0x3ed   : > { %v1597_v26 = vpop.f32.mrf.mxu2 }
 0x3ee   : > { %v1598_v27 = vadd.f32 %v3141_v24, %v1597_v26  ;;  %v1517_v28 = vpop.f32.mrf.mxu1  ;;  %v1435_v37 = vpop.f32.mrf.mxu0 }
 0x3ef   : > { %v1518_v29 = vadd.f32 %v3140_v18, %v1517_v28  ;;  %v1436_v39 = vadd.f32 %v3139_v21, %v1435_v37  ;;  %v3142_v21 = vld [vmem:[%s4162_s1] ss:$0 sm:$0xff]  ;;  %v3038_v37 = vld [vmem:[%s3742_s27 + $0x74] sm:$0xf0] }
 0x3f0   : > { %v1606_v31 = vpack.c.bf16 %v1598_v27, %v1598_v27 }
 0x3f1   : > { %v1605_v32 = vpack.c.bf16 %v1518_v29, %v1518_v29  ;;  %v1603_v40 = vpack.c.bf16 %v1436_v39, %v1436_v39 }
 0x3f2   : > { %1616 = vmatmul.bf16.vlgmr.msra.gmra.mxu3 %v1602_v30  ;;  %v1668_v33 = vsel %vm1666_vm14, %v1606_v31, 0 }
 0x3f3   : > { %1628 = vmatpush.bf16.xpose.msrb.mxu3 %v1605_v32 }
 0x3f5   : > { %v1599_v34 = vpop.f32.mrf.mxu2 }
 0x3f6   : > { %v1600_v35 = vadd.f32 %v3141_v24, %v1599_v34 }
 0x3f8   : > { %v1607_v36 = vpack.c.bf16 %v1600_v35, %v1600_v35 }
 0x3fa   : > { %v1687_v38 = vsel %vm1666_vm14, %v1607_v36, 0  ;;  %v2860_v36 = vld [vmem:[%s3742_s27 + $0x70] sm:$0xf] }
 0x3fb   : > { %1677 = vmatpush.bf16.msra.mxu3 %v1668_v33  ;;  %1696 = vmatpush.bf16.msrb.mxu0 %v1687_v38  ;;  %v3037_v38 = vld [vmem:[%s3742_s27 + $0x74] sm:$0xf]  ;;  %v2861_v39 = vor.u32 %v3038_v37, %v2860_v36 }
 0x3fd   : > { %1946 = vmatpush.bf16.msrb.mxu2 %v2861_v39 }
 0x402   : > { %1629 = vmatmul.bf16.vlgmr.msrb.gmra.mxu3 %v1603_v40  ;;  %v2862_v40 = vld [vmem:[%s3742_s27 + $0x78] sm:$0xf0] }
 0x475   : > { %v1617_v41 = vpop.f32.mrf.mxu3 }
 0x476   : > { %v1634_v42 = vmul.f32 0.125, %v1617_v41  ;;  %v2865_v41 = vor.u32 %v3037_v38, %v2862_v40 }
 0x478   : > { %v1636_v43 = vadd.f32 %v1634_v42, %v3719_v4  ;;  %1960 = vmatpush.bf16.msrb.mxu3 %v2865_v41  ;;  %v2852_v42 = vld [vmem:[%s3742_s27 + $0x60] sm:$0xf] }
 0x47a   : > { %v1639_v44 = vsel %vm1638_vm15, %v1636_v43, -inf }
 0x47b   : > { %1640 = vmax.xlane.f32.xlu2 %v1639_v44  ;;  %v3035_v44 = vld [vmem:[%s3742_s27 + $0x64] sm:$0xf] }
 0x47d   : > { %v1619_v45 = vpop.f32.mrf.mxu3 }
 0x485   : > { %v1630_v46 = vpop.f32.mrf.mxu3 }
 0x486   : > { %v1635_v47 = vmul.f32 0.125, %v1630_v46  ;;  %v2854_v46 = vld [vmem:[%s3742_s27 + $0x68] sm:$0xf0] }
 0x488   : > { %v1637_v48 = vadd.f32 %v1635_v47, %v3719_v4  ;;  %v2857_v47 = vor.u32 %v3035_v44, %v2854_v46  ;;  %v3143_v44 = vld [vmem:[%s1046_s16] ss:$0 sm:$0xff] }
 0x48a   : > { %v1642_v49 = vsel %vm1638_vm15, %v1637_v48, -inf  ;;  %1961 = vmatpush.bf16.msrb.mxu3 %v2857_v47 }
 0x48b   : > { %1643 = vmax.xlane.f32.xlu2 %v1642_v49  ;;  %v3034_v49 = vld [vmem:[%s3742_s27 + $0x54] sm:$0xf0] }
 0x48d   : > { %v1632_v50 = vpop.f32.mrf.mxu3 }
 0x48e   : > { %v3033_v50 = vld [vmem:[%s3742_s27 + $0x54] sm:$0xf] }
 0x4ee   : > { %v1641_v51 = vpop.xlane.xlu2 %1640 }
 0x4ef   : > { %v1645_v52 = vsub.f32 %v1636_v43, %v1641_v51  ;;  %v3036_v43 = vld [vmem:[%s3742_s27 + $0x64] sm:$0xf0] }
 0x4f0   : > { %v2853_v45 = vor.u32 %v3036_v43, %v2852_v42 }
 0x4f1   : > { %v1647_v53 = vmul.f32 1.442695, %v1645_v52  ;;  %v2846_v52 = vld [vmem:[%s3742_s27 + $0x58] sm:$0xf0] }
 0x4f2   : > { %1947 = vmatpush.bf16.msrb.mxu2 %v2853_v45 }
 0x4f3   : > { %3150 = vpow2.f32 %v1647_v53  ;;  %v2849_v53 = vor.u32 %v3033_v50, %v2846_v52 }
 0x4f5   : > { %1962 = vmatpush.bf16.msrb.mxu3 %v2849_v53  ;;  %v3046_v53 = vld [vmem:[%s3752_s21 + $0x38] sm:$0xff] }
 0x4f6   : > { %2192 = vmatpush.bf16.msra.mxu0 %v3046_v53 }
 0x4f9   : > { %v3151_v54 = vpop.eup %3150 }
 0x4fa   : > { %v1651_v55 = vsel %vm1638_vm15, %v3151_v54, 0.0 }
 0x4fb   : > { %1652 = vadd.xlane.f32.xlu0 %v1651_v55  ;;  %v3032_v55 = vld [vmem:[%s3742_s27 + $0x44] sm:$0xf0] }
 0x4fe   : > { %v1644_v56 = vpop.xlane.xlu2 %1643 }
 0x4ff   : > { %v1646_v57 = vsub.f32 %v1637_v48, %v1644_v56  ;;  %v2844_v48 = vld [vmem:[%s3742_s27 + $0x50] sm:$0xf]  ;;  %v3031_v56 = vld [vmem:[%s3742_s27 + $0x44] sm:$0xf] }
 0x500   : > { %v2845_v51 = vor.u32 %v3034_v49, %v2844_v48 }
 0x501   : > { %v1649_v58 = vmul.f32 1.442695, %v1646_v57 }
 0x502   : > { %1948 = vmatpush.bf16.msrb.mxu2 %v2845_v51 }
 0x503   : > { %3152 = vpow2.f32 %v1649_v58  ;;  %v2838_v58 = vld [vmem:[%s3742_s27 + $0x48] sm:$0xf0] }
 0x509   : > { %v3153_v4 = vpop.eup %3152 }
 0x50a   : > { %v1654_v59 = vsel %vm1638_vm15, %v3153_v4, 0.0 }
 0x50b   : > { %1655 = vadd.xlane.f32.xlu1 %v1654_v59  ;;  %v2828_v59 = vld [vmem:[%s3742_s27 + $0x30] sm:$0xf] }
 0x56e   : > { %v1653_v62 = vpop.xlane.xlu0 %1652 }
 0x56f   : > { %3154 = vrcp.f32 %v1653_v62  ;;  %v2829_v62 = vor.u32 %v3030_v60, %v2828_v59  ;;  %v3051_v59 = vld [vmem:[%s3752_s21 + $0x60] sm:$0xff] }
 0x575   : > { %v3155_v1 = vpop.eup %3154 }
 0x576   : > { %v1659_v2 = vmul.f32 %v3155_v1, %v3151_v54  ;;  %v2836_v54 = vld [vmem:[%s3742_s27 + $0x40] sm:$0xf] }
 0x577   : > { %v2837_v57 = vor.u32 %v3032_v55, %v2836_v54  ;;  %v2820_v1 = vld [vmem:[%s3742_s27 + $0x20] sm:$0xf]  ;;  %v3054_v54 = vld [vmem:[%s3752_s21 + $0x78] sm:$0xff]  ;;  %v3053_v55 = vld [vmem:[%s3752_s21 + $0x70] sm:$0xff] }
 0x578   : > { %v1661_v5 = vpack.c.bf16 %v1659_v2, %v1659_v2  ;;  %v3028_v2 = vld [vmem:[%s3742_s27 + $0x24] sm:$0xf0]  ;;  %2206 = vmatpush.bf16.msra.mxu1 %v3054_v54 }
 0x579   : > { %1949 = vmatpush.bf16.msrb.mxu2 %v2837_v57  ;;  %v2821_v6 = vor.u32 %v3028_v2, %v2820_v1  ;;  %v3052_v57 = vld [vmem:[%s3752_s21 + $0x68] sm:$0xff]  ;;  %v3050_v1 = vld [vmem:[%s3752_s21 + $0x58] sm:$0xff] }
 0x57a   : > { %2768 = vmatmul.msk.bf16.vlgmr.msra.gmra.mxu3 %vm1638_vm15, %v1661_v5  ;;  %v3027_v5 = vld [vmem:[%s3742_s27 + $0x24] sm:$0xf] }
 0x57c   : > { %2207 = vmatpush.bf16.msra.mxu1 %v3053_v55 }
 0x57d   : > { %1950 = vmatpush.bf16.msrb.mxu2 %v2829_v62 }
 0x57e   : > { %v1656_v7 = vpop.xlane.xlu1 %1655 }
 0x57f   : > { %3156 = vrcp.f32 %v1656_v7  ;;  %v2822_v7 = vld [vmem:[%s3742_s27 + $0x28] sm:$0xf0] }
 0x580   : > { %2208 = vmatpush.bf16.msra.mxu1 %v3052_v57 }
 0x581   : > { %1951 = vmatpush.bf16.msrb.mxu2 %v2821_v6 }
 0x584   : > { %2209 = vmatpush.bf16.msra.mxu1 %v3051_v59 }
 0x585   : > { %v3157_v8 = vpop.eup %3156 }
 0x586   : > { %v1660_v9 = vmul.f32 %v3157_v8, %v3153_v4  ;;  %v2841_v4 = vor.u32 %v3031_v56, %v2838_v58  ;;  %v2825_v8 = vor.u32 %v3027_v5, %v2822_v7  ;;  %v3044_v56 = vld [vmem:[%s3752_s21 + $0x28] sm:$0xff]  ;;  %v1860_v58 = vld [vmem:[%s3747_s2] sm:$0x3] }
 0x587   : > { %v1862_v60 = vperm.slane %v1860_v58, 0  ;;  %v1863_v61 = vperm.slane %v1860_v58, 1 }
 0x588   : > { %v1662_v10 = vpack.c.bf16 %v1660_v9, %v1660_v9  ;;  %1963 = vmatpush.bf16.msrb.mxu3 %v2841_v4  ;;  %v2812_v9 = vld [vmem:[%s3742_s27 + $0x10] sm:$0xf]  ;;  %v3043_v4 = vld [vmem:[%s3752_s21 + $0x20] sm:$0xff]  ;;  %2210 = vmatpush.bf16.msra.mxu1 %v3050_v1 }
 0x58a   : > { %2769 = vmatmul.msk.bf16.vlgmr.msrb.gmra.mxu0 %vm1638_vm15, %v1662_v10  ;;  %v3026_v10 = vld [vmem:[%s3742_s27 + $0x14] sm:$0xf0] }
 0x58b   : > { %v2813_v12 = vor.u32 %v3026_v10, %v2812_v9  ;;  %v3049_v9 = vld [vmem:[%s3752_s21 + $0x50] sm:$0xff] }
 0x58c   : > { %1964 = vmatpush.bf16.msrb.mxu3 %v2833_v0  ;;  %v3042_v0 = vld [vmem:[%s3752_s21 + $0x18] sm:$0xff]  ;;  %2211 = vmatpush.bf16.msra.mxu1 %v3049_v9 }
 0x58d   : > { %1952 = vmatpush.bf16.msrb.mxu2 %v2813_v12 }
 0x590   : > { %1965 = vmatpush.bf16.msrb.mxu3 %v2825_v8  ;;  %v3041_v8 = vld [vmem:[%s3752_s21 + $0x10] sm:$0xff] }
 0x5fd   : > { %v1679_v16 = vpop.f32.mrf.mxu3 }
 0x605   : > { %v1681_v17 = vpop.f32.mrf.mxu3 }
 0x606   : > { %v3024_v17 = vld [vmem:[%s3742_s27 + $0x4] sm:$0xf0] }
 0x607   : > { %v1698_v18 = vpop.f32.mrf.mxu0 }
 0x608   : > { %v1702_v19 = vpack.c.bf16 %v1698_v18, %v1679_v16  ;;  %v2804_v16 = vld [vmem:[%s3742_s27] sm:$0xf] }
 0x60a   : > { %1775 = vmatmul.bf16.vlgmr.msrb.gmra.mxu1 %v1702_v19  ;;  %v2817_v19 = vor.u32 %v3025_v11, %v2814_v15 }
 0x60c   : > { %1966 = vmatpush.bf16.msrb.mxu3 %v2817_v19 }
 0x60f   : > { %v1700_v20 = vpop.f32.mrf.mxu0 }
 0x610   : > { %v3023_v20 = vld [vmem:[%s3742_s27 + $0x4] sm:$0xf] }
 0x687   : > { %v1776_v22 = vpop.f32.mrf.mxu1 }
 0x688   : > { %v1781_v23 = vadd.f32 %v1776_v22, %v3834_v13 }
 0x68a   : > { %v3925_v24 = vadd.f32 %v3142_v21, %v1781_v23  ;;  %v2805_v23 = vor.u32 %v3024_v17, %v2804_v16  ;;  %v3040_v16 = vld [vmem:[%s3752_s21 + $0x8] sm:$0xff] }
 0x68b   : > { %v3048_v17 = vld [vmem:[%s3752_s21 + $0x48] sm:$0xff] }
 0x68c   : > { %1791 = vadd.xlane.f32.xlu2 %v3925_v24  ;;  %1953 = vmatpush.bf16.msrb.mxu2 %v2805_v23  ;;  %v3047_v23 = vld [vmem:[%s3752_s21 + $0x40] sm:$0xff] }
 0x68d   : > { %2212 = vmatpush.bf16.msra.mxu1 %v3048_v17 }
 0x68f   : > { %v1778_v25 = vpop.f32.mrf.mxu1 }
 0x690   : > { %v1782_v26 = vadd.f32 %v1778_v25, %v3837_v14 }
 0x691   : > { %2213 = vmatpush.bf16.msra.mxu1 %v3047_v23 }
 0x692   : > { %v3929_v27 = vadd.f32 %v3142_v21, %v1782_v26  ;;  %v2806_v21 = vld [vmem:[%s3742_s27 + $0x8] sm:$0xf0] }
 0x693   : > { %v2809_v25 = vor.u32 %v3023_v20, %v2806_v21 }
 0x694   : > { %1793 = vadd.xlane.f32.xlu0 %v3929_v27 }
 0x695   : > { %1967 = vmatpush.bf16.msrb.mxu3 %v2809_v25 }
 0x6ff   : > { %v1792_v28 = vpop.xlane.xlu2 %1791 }
 0x700   : > { %v1795_v29 = vmul.f32 0.015625, %v1792_v28 }
 0x702   : > { %v1797_v30 = vsub.f32 %v3925_v24, %v1795_v29 }
 0x704   : > { %v3934_v13 = vmul.f32 %v3717_v3, %v1797_v30 }
 0x706   : > { %v1801_v31 = vmul.f32 %v3934_v13, %v3934_v13 }
 0x707   : > { %v1794_v32 = vpop.xlane.xlu0 %1793 }
 0x708   : > { %v1796_v14 = vmul.f32 0.015625, %v1794_v32  ;;  %1803 = vadd.xlane.f32.xlu1 %v1801_v31 }
 0x70a   : > { %v1798_v33 = vsub.f32 %v3929_v27, %v1796_v14 }
 0x70c   : > { %v3940_v34 = vmul.f32 %v3717_v3, %v1798_v33 }
 0x70e   : > { %v1802_v35 = vmul.f32 %v3940_v34, %v3940_v34 }
 0x710   : > { %1805 = vadd.xlane.f32.xlu2 %v1802_v35 }
 0x77b   : > { %v1804_v18 = vpop.xlane.xlu1 %1803 }
 0x77c   : > { %v1807_v22 = vmul.f32 0.015625, %v1804_v18 }
 0x77e   : > { %v1809_v26 = vadd.f32 1e-05, %v1807_v22  ;;  %v3039_v22 = vld [vmem:[%s3752_s21] sm:$0xff] }
 0x780   : > { %3158 = vrsqrt.f32 %v1809_v26  ;;  %vm1817_vm1 = vweird.f32 %v1809_v26 }
 0x783   : > { %v1806_v28 = vpop.xlane.xlu2 %1805 }
 0x784   : > { %v1808_v29 = vmul.f32 0.015625, %v1806_v28 }
 0x786   : > { %v3159_v30 = vpop.eup %3158  ;;  %v1810_v31 = vadd.f32 1e-05, %v1808_v29 }
 0x787   : > { %v1812_v32 = vmul.f32 %v3159_v30, %v1809_v26  ;;  %vm1818_vm0 = vweird.f32 %v3159_v30 }
 0x788   : > { %3160 = vrsqrt.f32 %v1810_v31  ;;  %vm1819_vm2 = vmor %vm1817_vm1, %vm1818_vm0  ;;  %vm1827_vm4 = vweird.f32 %v1810_v31 }
 0x789   : > { %v1813_v14 = vmul.f32 %v3159_v30, %v1812_v32 }
 0x78b   : > { %v1814_v33 = vmul.f32 0.5, %v1813_v14 }
 0x78d   : > { %v1815_v35 = vsub.f32 1.5, %v1814_v33 }
 0x78e   : > { %v3161_v36 = vpop.eup %3160 }
 0x78f   : > { %v1816_v37 = vmul.f32 %v3159_v30, %v1815_v35  ;;  %v1822_v38 = vmul.f32 %v3161_v36, %v1810_v31  ;;  %vm1828_vm3 = vweird.f32 %v3161_v36 }
 0x790   : > { %vm1829_vm5 = vmor %vm1827_vm4, %vm1828_vm3 }
 0x791   : > { %v1823_v39 = vmul.f32 %v3161_v36, %v1822_v38  ;;  %v1820_v40 = vsel %vm1819_vm2, %v3159_v30, %v1816_v37 }
 0x792   : > { %v1831_v43 = vmul.f32 %v1820_v40, %v3934_v13  ;;  %v3144_v13 = vld [vmem:[%s4165_s0] ss:$0 sm:$0xff] }
 0x793   : > { %v1824_v41 = vmul.f32 0.5, %v1823_v39 }
 0x794   : > { %v1836_v48 = vmul.f32 %v3143_v44, %v1831_v43 }
 0x795   : > { %v1825_v42 = vsub.f32 1.5, %v1824_v41 }
 0x796   : > { %v1841_v50 = vadd.f32 %v3144_v13, %v1836_v48 }
 0x797   : > { %v1826_v45 = vmul.f32 %v3161_v36, %v1825_v42 }
 0x799   : > { %v1830_v46 = vsel %vm1829_vm5, %v3161_v36, %v1826_v45 }
 0x79a   : > { %v1832_v47 = vmul.f32 %v1830_v46, %v3940_v34  ;;  %v3045_v34 = vld [vmem:[%s3752_s21 + $0x30] sm:$0xff] }
 0x79b   : > { %2193 = vmatpush.bf16.msra.mxu0 %v3045_v34 }
 0x79c   : > { %v1837_v49 = vmul.f32 %v3143_v44, %v1832_v47 }
 0x79e   : > { %v1842_v51 = vadd.f32 %v3144_v13, %v1837_v49 }
 0x79f   : > { %2194 = vmatpush.bf16.msra.mxu0 %v3044_v56 }
 0x7a0   : > { %v1843_v52 = vpack.c.bf16 %v1842_v51, %v1841_v50 }
 0x7a2   : > { %1954 = vmatmul.bf16.vlgmr.msrb.gmra.mxu2 %v1843_v52  ;;  %1968 = vmatmul.bf16.vlgmr.msrb.gmra.mxu3 %v1843_v52 }
 0x7a3   : > { %2195 = vmatpush.bf16.msra.mxu0 %v3043_v4 }
 0x7a7   : > { %2196 = vmatpush.bf16.msra.mxu0 %v3042_v0 }
 0x7ab   : > { %2197 = vmatpush.bf16.msra.mxu0 %v3041_v8 }
 0x7af   : > { %2198 = vmatpush.bf16.msra.mxu0 %v3040_v16 }
 0x7b3   : > { %2199 = vmatpush.bf16.msra.mxu0 %v3039_v22 }
 0x825   : > { %v1955_v62 = vpop.f32.mrf.mxu2  ;;  %v1969_v63 = vpop.f32.mrf.mxu3 }
 0x826   : > { %v3999_v2 = vadd.f32 %v1955_v62, %v1862_v60  ;;  %v4001_v5 = vadd.f32 %v1969_v63, %v1863_v61 }
 0x828   : > { %v2866_v6 = vmul.f32 -1.702, %v3999_v2  ;;  %v2867_v7 = vmul.f32 -1.702, %v4001_v5 }
 0x82a   : > { %v1982_v10 = vmul.f32 1.442695, %v2866_v6  ;;  %v1984_v11 = vmul.f32 1.442695, %v2867_v7 }
 0x82c   : > { %3162 = vpow2.f32 %v1982_v10 }
 0x82d   : > { %3164 = vpow2.f32 %v1984_v11  ;;  %v1957_v12 = vpop.f32.mrf.mxu2  ;;  %v1971_v15 = vpop.f32.mrf.mxu3 }
 0x82e   : > { %v4009_v18 = vadd.f32 %v1957_v12, %v1862_v60  ;;  %v4011_v19 = vadd.f32 %v1971_v15, %v1863_v61 }
 0x830   : > { %v2868_v20 = vmul.f32 -1.702, %v4009_v18  ;;  %v2869_v21 = vmul.f32 -1.702, %v4011_v19 }
 0x832   : > { %v3163_v25 = vpop.eup %3162  ;;  %v1986_v26 = vmul.f32 1.442695, %v2868_v20  ;;  %v1988_v30 = vmul.f32 1.442695, %v2869_v21 }
 0x833   : > { %v3165_v28 = vpop.eup %3164  ;;  %v1990_v29 = vadd.f32 1.0, %v3163_v25 }
 0x834   : > { %v1991_v31 = vadd.f32 1.0, %v3165_v28  ;;  %3166 = vpow2.f32 %v1986_v26 }
 0x835   : > { %3168 = vrcp.f32 %v1990_v29  ;;  %vm1999_vm7 = vweird.f32 %v1990_v29  ;;  %v2003_v47 = vand.u32 2147483647, %v1990_v29  ;;  %v2005_v48 = vand.u32 2147483648, %v1990_v29 }
 0x836   : > { %3170 = vrcp.f32 %v1991_v31  ;;  %vm2014_vm8 = vweird.f32 %v1991_v31  ;;  %v2018_v49 = vand.u32 2147483647, %v1991_v31  ;;  %v2020_v54 = vand.u32 2147483648, %v1991_v31 }
 0x837   : > { %3172 = vpow2.f32 %v1988_v30  ;;  %vm2004_vm12 = vcmp.eq.f32.partialorder %v2003_v47, 8.507059e+37  ;;  %v2006_v58 = vor.u32 1.1754944e-38, %v2005_v48 }
 0x838   : > { %v2021_v7 = vor.u32 1.1754944e-38, %v2020_v54  ;;  %vm2019_vm2 = vcmp.eq.f32.partialorder %v2018_v49, 8.507059e+37 }
 0x83a   : > { %v3167_v32 = vpop.eup %3166 }
 0x83b   : > { %v3169_v14 = vpop.eup %3168  ;;  %v1992_v33 = vadd.f32 1.0, %v3167_v32 }
 0x83c   : > { %v3171_v35 = vpop.eup %3170  ;;  %v1995_v36 = vmul.f32 %v3169_v14, %v1990_v29  ;;  %vm2000_vm6 = vweird.f32 %v3169_v14 }
 0x83d   : > { %v3173_v37 = vpop.eup %3172  ;;  %v2010_v38 = vmul.f32 %v3171_v35, %v1991_v31  ;;  %3174 = vrcp.f32 %v1992_v33  ;;  %v2035_v51 = vand.u32 2147483648, %v1992_v33  ;;  %vm4017_vm9 = vmor %vm1999_vm7, %vm2000_vm6  ;;  %vm2015_vm10 = vweird.f32 %v3171_v35 }
 0x83e   : > { %v1996_v39 = vsub.f32 1.0, %v1995_v36  ;;  %v1993_v40 = vadd.f32 1.0, %v3173_v37  ;;  %v2033_v57 = vand.u32 2147483647, %v1992_v33  ;;  %vm2029_vm13 = vweird.f32 %v1992_v33  ;;  %vm4024_vm14 = vmor %vm2014_vm8, %vm2015_vm10 }
 0x83f   : > { %v2011_v41 = vsub.f32 1.0, %v2010_v38  ;;  %v2036_v61 = vor.u32 1.1754944e-38, %v2035_v51 }
 0x840   : > { %v1997_v42 = vmul.f32 %v3169_v14, %v1996_v39  ;;  %3176 = vrcp.f32 %v1993_v40  ;;  %v2048_v62 = vand.u32 2147483647, %v1993_v40  ;;  %v2050_v63 = vand.u32 2147483648, %v1993_v40 }
 0x841   : > { %v2012_v44 = vmul.f32 %v3171_v35, %v2011_v41  ;;  %vm2034_vm1 = vcmp.eq.f32.partialorder %v2033_v57, 8.507059e+37  ;;  %vm2044_vm3 = vweird.f32 %v1993_v40 }
 0x842   : > { %v1998_v45 = vadd.f32 %v3169_v14, %v1997_v42  ;;  %v2051_v16 = vor.u32 1.1754944e-38, %v2050_v63  ;;  %vm2049_vm5 = vcmp.eq.f32.partialorder %v2048_v62, 8.507059e+37 }
 0x843   : > { %v3175_v43 = vpop.eup %3174  ;;  %v2013_v53 = vadd.f32 %v3171_v35, %v2012_v44 }
 0x844   : > { %v2025_v46 = vmul.f32 %v3175_v43, %v1992_v33  ;;  %v2002_v55 = vsel %vm4017_vm9, %v3169_v14, %v1998_v45  ;;  %vm2030_vm11 = vweird.f32 %v3175_v43 }
 0x845   : > { %v2007_v0 = vsel %vm2004_vm12, %v2006_v58, %v2002_v55  ;;  %v2017_v1 = vsel %vm4024_vm14, %v3171_v35, %v2013_v53  ;;  %vm2031_vm15 = vmor %vm2029_vm13, %vm2030_vm11 }
 0x846   : > { %v3177_v13 = vpop.eup %3176  ;;  %v2026_v50 = vsub.f32 1.0, %v2025_v46  ;;  %v2054_v11 = vmul.f32 %v2007_v0, %v3999_v2  ;;  %v2022_v12 = vsel %vm2019_vm2, %v2021_v7, %v2017_v1  ;;  %v3145_v2 = vld [vmem:[%s1066_s28] ss:$0 sm:$0xff]  ;;  %s4171_s28 = sld [smem:[#allocation35_spill]] (!%p2934_p1) }
 0x847   : > { %v2040_v34 = vmul.f32 %v3177_v13, %v1993_v40  ;;  %vm2045_vm0 = vweird.f32 %v3177_v13  ;;  %v2055_v22 = vmul.f32 %v2022_v12, %v4001_v5 }
 0x848   : > { %v2027_v56 = vmul.f32 %v3175_v43, %v2026_v50  ;;  %vm2046_vm4 = vmor %vm2044_vm3, %vm2045_vm0 }
 0x849   : > { %v2041_v4 = vsub.f32 1.0, %v2040_v34 }
 0x84a   : > { %v2028_v60 = vadd.f32 %v3175_v43, %v2027_v56 }
 0x84b   : > { %v2042_v6 = vmul.f32 %v3177_v13, %v2041_v4 }
 0x84c   : > { %v2032_v8 = vsel %vm2031_vm15, %v3175_v43, %v2028_v60 }
 0x84d   : > { %v2037_v9 = vsel %vm2034_vm1, %v2036_v61, %v2032_v8  ;;  %v2043_v10 = vadd.f32 %v3177_v13, %v2042_v6 }
 0x84e   : > { %v2056_v15 = vmul.f32 %v2037_v9, %v4009_v18 }
 0x84f   : > { %v2047_v17 = vsel %vm2046_vm4, %v3177_v13, %v2043_v10 }
 0x850   : > { %v2058_v20 = vpack.c.bf16 %v2056_v15, %v2054_v11  ;;  %v2052_v21 = vsel %vm2049_vm5, %v2051_v16, %v2047_v17 }
 0x851   : > { %v2057_v23 = vmul.f32 %v2052_v21, %v4011_v19 }
 0x852   : > { %2200 = vmatmul.bf16.vlgmr.msra.gmra.mxu0 %v2058_v20 }
 0x853   : > { %v2059_v25 = vpack.c.bf16 %v2057_v23, %v2055_v22 }
 0x855   : > { %2214 = vmatmul.bf16.vlgmr.msra.gmra.mxu1 %v2059_v25 }
 0x8cf   : > { %v2201_v26 = vpop.f32.mrf.mxu0 }
 0x8d0   : > { %v2202_v18 = vadd.f32 %v3145_v2, %v2201_v26 }
 0x8d2   : > { %v2215_v28 = vpop.f32.mrf.mxu1 }
 0x8d3   : > { %v2216_v29 = vadd.f32 %v2215_v28, %v2202_v18 }
 0x8d5   : > { %v2220_v30 = vadd.f32 %v2216_v29, %v3925_v24 }
 0x8d7   : > { %2222 = vst [vmem:[#allocation2] sm:$0xff] %v2220_v30  ;;  %v2203_v31 = vpop.f32.mrf.mxu0 }
 0x8d8   : > { %v2204_v32 = vadd.f32 %v3145_v2, %v2203_v31 }
 0x8da   : > { %v2217_v5 = vpop.f32.mrf.mxu1 }
 0x8db   : > { %v2218_v14 = vadd.f32 %v2217_v5, %v2204_v32  ;;  %2227 = sbr.rel (%p2934_p1) target bundleno = 2688 (0xa80), region = 144 }
 0x8dd   : > { %v2221_v19 = vadd.f32 %v2218_v14, %v3929_v27 }
 0x8df   : > { %2223 = vst [vmem:[#allocation2 + $0x8] sm:$0xff] %v2221_v19 }
 0x8e0   : > { %v2228_v33 = vld [vmem:[#allocation2] sm:$0x1]  ;;  %vm2233_vm6 = vcmask 1040384   ;;  %vm2237_vm7 = vcmask 1041408   ;;  %v3062_v24 = vld [vmem:[#allocation10 + $0x38] sm:$0xff]  ;;  %v3060_v45 = vld [vmem:[#allocation10 + $0x28] sm:$0xff] }
 0x8e1   : > { %2334 = vmatpush.bf16.msra.mxu0 %v3062_v24  ;;  %v3061_v44 = vld [vmem:[#allocation10 + $0x30] sm:$0xff]  ;;  %v3059_v46 = vld [vmem:[#allocation10 + $0x20] sm:$0xff]  ;;  %v3058_v47 = vld [vmem:[#allocation10 + $0x18] sm:$0xff] }
 0x8e2   : > { %v3057_v48 = vld [vmem:[#allocation10 + $0x10] sm:$0xff]  ;;  %v3056_v13 = vld [vmem:[#allocation10 + $0x8] sm:$0xff]  ;;  %v3055_v49 = vld [vmem:[#allocation10] sm:$0xff] }
 0x8e3   : > { %v3178_v57 = vld [vmem:[%s4171_s28] ss:$0 sm:$0xff] }
 0x8e4   : > { %v3179_v59 = vld [vmem:[%s4172_s8] ss:$0 sm:$0xff] }
 0x8e5   : > { %2335 = vmatpush.bf16.msra.mxu0 %v3061_v44 }
 0x8e6   : > { %v2229_v35 = vld [vmem:[#allocation2 + $0x8] sm:$0x1] }
 0x8e7   : > { %v2231_v36 = vrot.slane %v2229_v35, 7 }
 0x8e9   : > { %v2234_v37 = vsel %vm2233_vm6, %v2228_v33, %v2231_v36  ;;  %2336 = vmatpush.bf16.msra.mxu0 %v3060_v45 }
 0x8ea   : > { %v2238_v38 = vsel %vm2237_vm7, %v2234_v37, 0.0 }
 0x8eb   : > { %2239 = vadd.xlane.f32.xlu0 %v2238_v38 }
 0x8ed   : > { %2337 = vmatpush.bf16.msra.mxu0 %v3059_v46 }
 0x8f1   : > { %2338 = vmatpush.bf16.msra.mxu0 %v3058_v47 }
 0x8f5   : > { %2339 = vmatpush.bf16.msra.mxu0 %v3057_v48 }
 0x8f9   : > { %2340 = vmatpush.bf16.msra.mxu0 %v3056_v13 }
 0x8fd   : > { %2341 = vmatpush.bf16.msra.mxu0 %v3055_v49 }
 0x95e   : > { %v2240_v39 = vpop.xlane.xlu0 %2239 }
 0x95f   : > { %v2241_v40 = vmul.f32 0.015625, %v2240_v39 }
 0x961   : > { %v2242_v41 = vsub.f32 %v2234_v37, %v2241_v40 }
 0x963   : > { %v2243_v42 = vmul.f32 %v3717_v3, %v2242_v41 }
 0x965   : > { %v2244_v27 = vmul.f32 %v2243_v42, %v2243_v42 }
 0x967   : > { %v2245_v43 = vsel %vm2237_vm7, %v2244_v27, 0.0 }
 0x968   : > { %2246 = vadd.xlane.f32.xlu0 %v2245_v43 }
 0x9db   : > { %v2247_v50 = vpop.xlane.xlu0 %2246 }
 0x9dc   : > { %v2248_v51 = vmul.f32 0.015625, %v2247_v50 }
 0x9de   : > { %v2249_v3 = vadd.f32 1e-05, %v2248_v51 }
 0x9e0   : > { %3180 = vrsqrt.f32 %v2249_v3  ;;  %vm2256_vm9 = vweird.f32 %v2249_v3 }
 0x9e6   : > { %v3181_v52 = vpop.eup %3180 }
 0x9e7   : > { %v2251_v53 = vmul.f32 %v3181_v52, %v2249_v3  ;;  %vm2257_vm8 = vweird.f32 %v3181_v52 }
 0x9e8   : > { %vm2258_vm10 = vmor %vm2256_vm9, %vm2257_vm8 }
 0x9e9   : > { %v2252_v54 = vmul.f32 %v3181_v52, %v2251_v53 }
 0x9eb   : > { %v2253_v34 = vmul.f32 0.5, %v2252_v54 }
 0x9ed   : > { %v2254_v55 = vsub.f32 1.5, %v2253_v34 }
 0x9ef   : > { %v2255_v56 = vmul.f32 %v3181_v52, %v2254_v55 }
 0x9f1   : > { %v2259_v58 = vsel %vm2258_vm10, %v3181_v52, %v2255_v56 }
 0x9f2   : > { %v2260_v4 = vmul.f32 %v2259_v58, %v2243_v42 }
 0x9f4   : > { %v2264_v60 = vmul.f32 %v3178_v57, %v2260_v4 }
 0x9f6   : > { %v2268_v61 = vadd.f32 %v3179_v59, %v2264_v60 }
 0x9f8   : > { %v2269_v62 = vpack.c.bf16 %v2268_v61, %v2268_v61 }
 0x9fa   : > { %2342 = vmatmul.bf16.vlgmr.msra.gmra.mxu0 %v2269_v62 }
 0xa77   : > { %v2343_v63 = vpop.f32.mrf.mxu0 }
 0xa78   : > { %2347 = vst [vmem:[%s4173_s20] sm:$0x3] %v2343_v63 }
 0xa7f   : > { %v2345_v0 = vpop.f32.mrf.mxu0 }
 0xa80 PF: > { %s4174_s28 = sld [smem:[#allocation16_spill]]  ;;  %s4177_s5 = smov %s3370_s26 }
 0xa81   : > { %s4175_s18 = sld [smem:[#allocation15_spill]] }
 0xa82   : > { %s4176_s27 = sld [smem:[#allocation17_spill]] }
 0xa86   : > { %p40_p4 = scmp.ge.s32.totalorder %s4174_s28, 4  }
 0xa87   : > { %s4178_s26 = smov %s4175_s18 }
 0xa88   :  { %42 = sbr.rel (!%p40_p4) target bundleno = 29 (0x1d), region = 237 }
 0xa8d   :  { %2359 = vsyncpa [#allocation4], 1 }
 0xa8e   :  { %2361 = vsyncpa [#allocation4 + $0x1], 1 }
 0xa8f   :  { %2362 = vsyncpa [#allocation6], 1 }
 0xa90   :  { %2364 = vsyncpa [#allocation6 + $0x1], 1 }
 0xa91   :  { %2365 = vsyncpa [#allocation9], 1 }
 0xa92   :  { %2367 = vsyncpa [#allocation9 + $0x1], 1 }

// kernel: clip_forward.4
= control target key start
LH: loop header
LB: loop body
LE: loop exit
PB: predicated region body
PF: predicated region fallthrough
CT: control target
= control target key end

     0   :  { %s3927_s0 = inlined_call_operand.vmem [shape: f32[16,128], index: 0, kind: input, shape index: {}]   ;;  %s3928_s1 = inlined_call_operand.vmem [shape: f32[2,1,128], index: 1, kind: input, shape index: {}]   ;;  %s3929_s2 = inlined_call_operand.vmem [shape: f32[2,1,128], index: 2, kind: input, shape index: {}]   ;;  %s3930_s3 = inlined_call_operand.vmem [shape: bf16[2,2,128,128], index: 3, kind: input, shape index: {}]   ;;  %s3931_s4 = inlined_call_operand.hbm [shape: bf16[2,2,128,128], index: 4, kind: input, shape index: {}]   ;;  %s3932_s5 = inlined_call_operand.hbm [shape: bf16[2,2,128,128], index: 5, kind: input, shape index: {}]   ;;  %s3933_s6 = inlined_call_operand.vmem [shape: f32[2,2,1,128], index: 6, kind: input, shape index: {}]   ;;  %s3934_s7 = inlined_call_operand.vmem [shape: f32[2,2,1,128], index: 7, kind: input, shape index: {}]   ;;  %s3935_s8 = inlined_call_operand.vmem [shape: f32[2,2,1,128], index: 8, kind: input, shape index: {}]   ;;  %s3936_s9 = inlined_call_operand.hbm [shape: bf16[2,2,128,128], index: 9, kind: input, shape index: {}]   ;;  %s3937_s10 = inlined_call_operand.vmem [shape: f32[2,1,128], index: 10, kind: input, shape index: {}]   ;;  %s3938_s11 = inlined_call_operand.vmem [shape: f32[2,1,128], index: 11, kind: input, shape index: {}]   ;;  %s3939_s12 = inlined_call_operand.vmem [shape: f32[2,1,128], index: 12, kind: input, shape index: {}]   ;;  %s3940_s13 = inlined_call_operand.vmem [shape: bf16[2,128,128], index: 13, kind: input, shape index: {}]   ;;  %s3941_s14 = inlined_call_operand.vmem [shape: f32[2,1,128], index: 14, kind: input, shape index: {}]   ;;  %s3942_s15 = inlined_call_operand.hbm [shape: bf16[2,128,128], index: 15, kind: input, shape index: {}]   ;;  %s3943_s16 = inlined_call_operand.vmem [shape: f32[2,1,128], index: 16, kind: input, shape index: {}]   ;;  %s3944_s17 = inlined_call_operand.vmem [shape: f32[1,128], index: 17, kind: input, shape index: {}]   ;;  %s3945_s18 = inlined_call_operand.vmem [shape: f32[1,128], index: 18, kind: input, shape index: {}]   ;;  %s3946_s19 = inlined_call_operand.vmem [shape: bf16[128,128], index: 19, kind: input, shape index: {}]   ;;  %s3947_s20 = inlined_call_operand.vmem [shape: f32[16,128], index: 20, kind: output, shape index: {}]  }
   0x1   :  { %3960 = sst [smem:[#allocation18_spill]] %s3927_s0 }
   0x2   :  { %3961 = sst [smem:[#allocation19_spill]] %s3928_s1 }
   0x3   :  { %3962 = sst [smem:[#allocation20_spill]] %s3929_s2 }
   0x4   :  { %3963 = sst [smem:[#allocation21_spill]] %s3930_s3 }
   0x5   :  { %3964 = sst [smem:[#allocation22_spill]] %s3931_s4 }
   0x6   :  { %3965 = sst [smem:[#allocation23_spill]] %s3932_s5 }
   0x7   :  { %3966 = sst [smem:[#allocation24_spill]] %s3933_s6 }
   0x8   :  { %3967 = sst [smem:[#allocation25_spill]] %s3934_s7 }
   0x9   :  { %3968 = sst [smem:[#allocation26_spill]] %s3935_s8 }
   0xa   :  { %3969 = sst [smem:[#allocation27_spill]] %s3936_s9 }
   0xb   :  { %3970 = sst [smem:[#allocation28_spill]] %s3938_s11 }
   0xc   :  { %3971 = sst [smem:[#allocation29_spill]] %s3939_s12 }
   0xd   :  { %3972 = sst [smem:[#allocation30_spill]] %s3940_s13 }
   0xe   :  { %3973 = sst [smem:[#allocation31_spill]] %s3941_s14 }
   0xf   :  { %3974 = sst [smem:[#allocation32_spill]] %s3942_s15 }
  0x10   :  { %3975 = sst [smem:[#allocation33_spill]] %s3943_s16 }
  0x11   :  { %3976 = sst [smem:[#allocation34_spill]] %s3944_s17 }
  0x12   :  { %3977 = sst [smem:[#allocation35_spill]] %s3945_s18 }
  0x13   :  { %3978 = sst [smem:[#allocation36_spill]] %s3946_s19 }
  0x14   :  { %3979 = sst [smem:[#allocation37_spill]] %s3947_s20 }
  0x15   :  { %25 = vsyncpa [#allocation4], 0 }
  0x16   :  { %27 = vsyncpa [#allocation4 + $0x1], 0 }
  0x17   :  { %28 = vsyncpa [#allocation6], 0 }
  0x18   :  { %30 = vsyncpa [#allocation6 + $0x1], 0 }
  0x19   :  { %31 = vsyncpa [#allocation9], 0 }
  0x1a   :  { %33 = vsyncpa [#allocation9 + $0x1], 0  ;;  %s3453_s1 = smov 0   ;;  %s3455_s22 = smov 0  }
  0x1b   :  { %s3457_s23 = smov 0   ;;  %s3459_s24 = smov 0  }
  0x1c LB: > { %3980 = sst [smem:[#allocation13_spill]] %s3335_s22  ;;  %s3472_s2 = sadd.s32 4294967295, %s3343_s24   ;;  %s3343_s24 = sphi %s3459_s24, %s4020_s24   ;;  %s3339_s23 = sphi %s3457_s23, %s4023_s23   ;;  %s3335_s22 = sphi %s3455_s22, %s4022_s22   ;;  %s3331_s1 = sphi %s3453_s1, %s4021_s1  }
  0x1d   : > { %3981 = sst [smem:[#allocation14_spill]] %s3339_s23  ;;  %s3475_s25 = sadd.s32 1, %s3343_s24  }
  0x1e   : > { %3982 = sst [smem:[#allocation15_spill]] %s3475_s25  ;;  %s142_s3 = ssub.s32 %s3343_s24, %s3475_s25 }
  0x1f   : > { %s145_s26 = sadd.s32 1, %s3339_s23  ;;  %p143_p0 = scmp.eq.s32.totalorder %s142_s3, 0 }
  0x20   : > { %p152_p1 = scmp.ne.s32.totalorder %s3339_s23, %s3335_s22  ;;  %p153_p2 = scmp.eq.s32.totalorder %s3343_s24, 0 }
  0x21   : > { %p158_p3 = scmp.ne.s32.totalorder %s3335_s22, %s3331_s1  ;;  %p159_p5 = scmp.eq.s32.totalorder %s3472_s2, 0 }
  0x22   : > { %s3485_s27 = scalar_select %p143_p0, %s3339_s23, %s145_s26  }
  0x23   : > { %p154_p4 = por %p153_p2, %p152_p1  ;;  %p3094_p6 = scmp.lt.s32.totalorder %s3343_s24, 2 }
  0x24   : > { %3983 = sst [smem:[#allocation16_spill]] %s3485_s27  ;;  %p3489_p7 = por %p159_p5, %p158_p3 }
  0x25   : > { %s3494_s4 = sand.u32 1, %s3339_s23   ;;  %s3500_s30 = sshll.u32 %s3343_s24, 7 }
  0x26   : > { %s3497_s29 = sshll.u32 %s3494_s4, 7  ;;  %p3502_p8 = pnand %p3094_p6, %p154_p4 }
  0x27   : > { %s632_s21 = sand.u32 1, %s3343_s24   ;;  %s3986_s5 = sld [smem:[#allocation23_spill]] }
  0x28   : > { %s636_s23 = scalar_lea.vmem [#allocation5], %s3497_s29  ;;  %s3512_s20 = scalar_lea.sflag [#allocation6], %s632_s21 }
  0x29   : > { %s644_s25 = sshll.u32 %s636_s23, 4  ;;  %p3185_p10 = pneg %p3502_p8  ;;  %s645_s25 = int_to_ptr.vmem [resolvable:$true] %s644_s25 }
  0x2d   : > { %s641_s26 = scalar_lea.hbm %s3986_s5, %s3500_s30  ;;  %s3188_s3 = scalar_lea.hbm %s3986_s5, 256 }
  0x2e   : > { %s642_s27 = sshll.u32 %s641_s26, 4  ;;  %s643_s27 = int_to_ptr.hbm [resolvable:$true] %s642_s27 }
  0x2f   : > { %s3181_s18 = sshra.s32 %s643_s27, 4  ;;  %s3182_s18 = int_to_ptr.hbm [resolvable:$true] %s3181_s18 }
  0x30   : > { %s3183_s17 = scalar_lea.hbm %s3182_s18, 128  ;;  %p3189_p13 = scmp.lt.s32.totalorder %s3182_s18, %s3986_s5 }
  0x31   : > { %p3184_p9 = scmp.ne.s32.totalorder %s3182_s18, %s3183_s17  ;;  %p3190_p0 = scmp.lt.s32.totalorder %s3188_s3, %s3183_s17 }
  0x33   : > { %p3186_p11 = pnand %p3185_p10, %p3184_p9  ;;  %p3191_p1 = por %p3190_p0, %p3189_p13 }
  0x35   : > { %p3187_p12 = pneg %p3186_p11 }
  0x37   : > { %p3192_p2 = pnand %p3191_p1, %p3187_p12 }
  0x39   : > { %3195 = shalt.err (!%p3192_p2)
}
  0x3a   : > { %s3955_s21 = smov 64   ;;  %s3346_s16 = smov 4  }
  0x3b   : > { %3087 = dma.hbm_to_vmem [thread:$0]  (!%p3502_p8), %s643_s27, 2048, %s645_s25, %s3512_s20, %s3955_s21, %s3955_s21, %s3346_s16  }
  0x3c   : > { %p2537_p3 = scmp.ge.s32.totalorder %s3343_s24, 1  ;;  %p755_p4 = scmp.lt.s32.totalorder %s3343_s24, 3 }
  0x3d   : > { %s3988_s1 = sld [smem:[#allocation22_spill]]  ;;  %s614_s5 = scalar_lea.vmem [#allocation3], %s3497_s29 }
  0x3e   : > { %p3533_p5 = pnand %p2537_p3, %p755_p4  ;;  %s622_s14 = sshll.u32 %s614_s5, 4  ;;  %s623_s14 = int_to_ptr.vmem [resolvable:$true] %s622_s14 }
  0x3f   : > { %s611_s13 = scalar_lea.sflag [#allocation4], %s3494_s4 }
  0x43   : > { %s3989_s3 = smov %s3988_s1  ;;  %s619_s26 = scalar_lea.hbm %s3988_s1, %s3500_s30 }
  0x44   : > { %s620_s23 = sshll.u32 %s619_s26, 4  ;;  %s3218_s21 = scalar_lea.hbm %s3989_s3, 256  ;;  %s621_s23 = int_to_ptr.hbm [resolvable:$true] %s620_s23 }
  0x45   : > { %s3211_s12 = sshra.s32 %s621_s23, 4  ;;  %s3212_s12 = int_to_ptr.hbm [resolvable:$true] %s3211_s12 }
  0x46   : > { %s3213_s11 = scalar_lea.hbm %s3212_s12, 128  ;;  %p3219_p12 = scmp.lt.s32.totalorder %s3212_s12, %s3989_s3 }
  0x47   : > { %p3214_p6 = scmp.ne.s32.totalorder %s3212_s12, %s3213_s11  ;;  %p3220_p13 = scmp.lt.s32.totalorder %s3218_s21, %s3213_s11 }
  0x49   : > { %p3216_p9 = pnand %p3214_p6, %p3185_p10  ;;  %p3221_p0 = por %p3220_p13, %p3219_p12 }
  0x4b   : > { %p3217_p11 = pneg %p3216_p9 }
  0x4d   : > { %p3222_p1 = pnand %p3221_p0, %p3217_p11 }
  0x4f   : > { %3225 = shalt.err (!%p3222_p1)
}
  0x50   : > { %s3990_s5 = smov 64   ;;  %s3991_s9 = sld [smem:[#allocation27_spill]] }
  0x51   : > { %3084 = dma.hbm_to_vmem [thread:$0]  (!%p3502_p8), %s621_s23, 2048, %s623_s14, %s611_s13, %s3990_s5, %s3990_s5, %s3346_s16  }
  0x52   : > { %s679_s18 = scalar_lea.vmem [#allocation7], %s3497_s29 }
  0x53   : > { %s687_s12 = sshll.u32 %s679_s18, 4  ;;  %s688_s12 = int_to_ptr.vmem [resolvable:$true] %s687_s12 }
  0x56   : > { %s684_s25 = scalar_lea.hbm %s3991_s9, %s3500_s30  ;;  %s3248_s13 = scalar_lea.hbm %s3991_s9, 256 }
  0x57   : > { %s685_s27 = sshll.u32 %s684_s25, 4  ;;  %s686_s27 = int_to_ptr.hbm [resolvable:$true] %s685_s27 }
  0x58   : > { %s3241_s11 = sshra.s32 %s686_s27, 4  ;;  %s3242_s11 = int_to_ptr.hbm [resolvable:$true] %s3241_s11 }
  0x59   : > { %s3243_s21 = scalar_lea.hbm %s3242_s11, 128  ;;  %p3249_p6 = scmp.lt.s32.totalorder %s3242_s11, %s3991_s9 }
  0x5a   : > { %p3244_p2 = scmp.ne.s32.totalorder %s3242_s11, %s3243_s21  ;;  %p3250_p9 = scmp.lt.s32.totalorder %s3248_s13, %s3243_s21 }
  0x5c   : > { %p3246_p3 = pnand %p3244_p2, %p3185_p10  ;;  %p3251_p11 = por %p3250_p9, %p3249_p6 }
  0x5e   : > { %p3247_p4 = pneg %p3246_p3 }
  0x60   : > { %p3252_p12 = pnand %p3251_p11, %p3247_p4 }
  0x62   : > { %3255 = shalt.err (!%p3252_p12)
}
  0x63   : > { %3090 = dma.hbm_to_vmem [thread:$0]  (!%p3502_p8), %s686_s27, 2048, %s688_s12, %s3512_s20, %s3990_s5, %s3990_s5, %s3346_s16  }
  0x64   : > { %s2534_s29 = sshll.u32 %s3494_s4, 6  ;;  %s2982_s30 = sshll.u32 %s3343_s24, 6 }
  0x65   : > { %s3992_s15 = sld [smem:[#allocation32_spill]]  ;;  %s733_s25 = scalar_lea.vmem [#allocation8], %s2534_s29 }
  0x66   : > { %s741_s18 = sshll.u32 %s733_s25, 4  ;;  %s730_s21 = scalar_lea.sflag [#allocation9], %s3494_s4  ;;  %s742_s18 = int_to_ptr.vmem [resolvable:$true] %s741_s18 }
  0x6b   : > { %s738_s26 = scalar_lea.hbm %s3992_s15, %s2982_s30  ;;  %s3278_s27 = scalar_lea.hbm %s3992_s15, 128 }
  0x6c   : > { %s739_s11 = sshll.u32 %s738_s26, 4  ;;  %s740_s11 = int_to_ptr.hbm [resolvable:$true] %s739_s11 }
  0x6d   : > { %s3271_s19 = sshra.s32 %s740_s11, 4  ;;  %s3272_s19 = int_to_ptr.hbm [resolvable:$true] %s3271_s19 }
  0x6e   : > { %s3273_s13 = scalar_lea.hbm %s3272_s19, 64  ;;  %p3279_p2 = scmp.lt.s32.totalorder %s3272_s19, %s3992_s15 }
  0x6f   : > { %p3274_p13 = scmp.ne.s32.totalorder %s3272_s19, %s3273_s13  ;;  %p3280_p3 = scmp.lt.s32.totalorder %s3278_s27, %s3273_s13 }
  0x71   : > { %p3276_p0 = pnand %p3274_p13, %p3185_p10  ;;  %p3281_p4 = por %p3280_p3, %p3279_p2 }
  0x73   : > { %p3277_p1 = pneg %p3276_p0 }
  0x75   : > { %p3282_p6 = pnand %p3281_p4, %p3277_p1 }
  0x77   : > { %3285 = shalt.err (!%p3282_p6)
}
  0x78   : > { %3093 = dma.hbm_to_vmem [thread:$0]  (!%p3502_p8), %s740_s11, 1024, %s742_s18, %s730_s21, %s3990_s5, %s3990_s5, %s3346_s16  }
  0x79   : > { %759 = sbr.rel (%p3533_p5) target bundleno = 2684 (0xa7c), region = 100 }
  0x7e   : > { %s761_s4 = sand.u32 1, %s3335_s22  }
  0x7f   : > { %s2538_s23 = sshll.u32 %s761_s4, 7  ;;  %s762_s29 = scalar_lea.sflag [#allocation4], %s761_s4 }
  0x80   : > { %s3600_s30 = scalar_lea.vmem [#allocation3], %s2538_s23 }
  0x81   : > { %3318 = dma.done.wait (%p3489_p7), %s762_s29, 2048  }
  0x82   : > { %3320 = vsyncadd (%p3489_p7), %s762_s29, 4294965248  ;;  %s771_s0 = sand.u32 1, %s3472_s2   ;;  %s3607_s16 = scalar_lea.vmem [#allocation5], %s2538_s23 }
  0x83   : > { %s772_s3 = scalar_lea.sflag [#allocation6], %s771_s0 }
  0x84   : > { %3322 = dma.done.wait (%p3489_p7), %s772_s3, 4096  }
  0x85   : > { %3324 = vsyncadd (%p3489_p7), %s772_s3, 4294963200  ;;  %s2541_s17 = sshll.u32 %s761_s4, 6  ;;  %s3613_s5 = scalar_lea.vmem [#allocation7], %s2538_s23 }
  0x86   : > { %s792_s1 = scalar_lea.sflag [#allocation9], %s761_s4  ;;  %s3615_s26 = scalar_lea.vmem [#allocation8], %s2541_s17 }
  0x87   : > { %3993 = sst [smem:[#allocation17_spill]] %s3615_s26 }
  0x88   : > { %3326 = dma.done.wait (%p3489_p7), %s792_s1, 1024  }
  0x89   : > { %3328 = vsyncadd (%p3489_p7), %s792_s1, 4294966272  ;;  %p906_p8 = scmp.lt.s32.totalorder %s3472_s2, 1  ;;  %v950_v0 = vlaneseq  ;;  %v3347_v3 = vmov 0.0   ;;  %s3996_s23 = sld [smem:[#allocation21_spill]] }
  0x8a   : > { %s3997_s6 = sld [smem:[#allocation24_spill]]  ;;  %p2550_p7 = scmp.ne.s32.totalorder %s3472_s2, 0 }
  0x8b   : > { %s3623_s25 = scalar_select %p906_p8, %s3472_s2, 1  ;;  %v951_v1 = vand.u32 127, %v950_v0  ;;  %v958_v2 = vshrl.u32 %v950_v0, 7 }
  0x8c   : > { %s3998_s7 = sld [smem:[#allocation25_spill]] }
  0x8d   : > { %vm952_vm0 = vcmp.lt.s32.totalorder %v951_v1, 32  ;;  %vm955_vm1 = vcmp.ge.s32.totalorder %v951_v1, 8  ;;  %vm959_vm2 = vcmp.gt.s32.totalorder %v951_v1, %v958_v2  ;;  %s2983_s27 = sshll.u32 %s3623_s25, 7  ;;  %s2544_s12 = sshll.u32 %s3623_s25, 1 }
  0x8e   : > { %v3635_v4 = vsel %vm952_vm0, 1.0, %v3347_v3  ;;  %v956_v5 = vsel %vm955_vm1, -1e+30, %v3347_v3  ;;  %s3999_s8 = sld [smem:[#allocation26_spill]]  ;;  %s2984_s1 = sshll.u32 %s3623_s25, 6 }
  0x8f   : > { %s3640_s29 = scalar_lea.vmem %s3996_s23, %s2983_s27  ;;  %v3647_v6 = vsel %vm959_vm2, -1e+30, %v956_v5  ;;  %s4000_s0 = sld [smem:[#allocation28_spill]] }
  0x90   : > { %s3645_s17 = scalar_lea.vmem %s3997_s6, %s2544_s12  ;;  %s4001_s6 = sld [smem:[#allocation29_spill]] }
  0x91   : > { %s4002_s15 = sld [smem:[#allocation30_spill]] }
  0x92   : > { %s3652_s11 = scalar_lea.vmem %s3998_s7, %s2544_s12  ;;  %s4003_s13 = sld [smem:[#allocation31_spill]] }
  0x93   : > { %s4004_s14 = sld [smem:[#allocation33_spill]] }
  0x94   : > { %s3657_s28 = scalar_lea.vmem %s3999_s8, %s2544_s12 }
  0x95   : > { %s934_s3 = scalar_lea.vmem %s4000_s0, %s3623_s25  ;;  %964 = sbr.rel (%p2550_p7) target bundleno = 159 (0x9f), region = 120 }
  0x96   : > { %s937_s9 = scalar_lea.vmem %s4001_s6, %s3623_s25  ;;  %s4005_s6 = sld [smem:[#allocation18_spill]] (!%p2550_p7) }
  0x97   : > { %s3675_s22 = scalar_lea.vmem %s4002_s15, %s2984_s1 }
  0x98   : > { %s945_s8 = scalar_lea.vmem %s4003_s13, %s3623_s25 }
  0x99   : > { %s948_s26 = scalar_lea.vmem %s4004_s14, %s3623_s25 }
  0x9c   : > { %v965_v7 = vld [vmem:[%s4005_s6] sm:$0xff]  ;;  %v966_v8 = vld [vmem:[%s4005_s6 + $0x8] sm:$0xff] }
  0x9d   : > { %967 = vst [vmem:[#allocation2] sm:$0xff] %v965_v7 }
  0x9e   : > { %968 = vst [vmem:[#allocation2 + $0x8] sm:$0xff] %v966_v8 }
  0x9f PF: > { %v3000_v11 = vld [vmem:[%s3600_s30 + $0x38] sm:$0xff]  ;;  %v2999_v13 = vld [vmem:[%s3600_s30 + $0x30] sm:$0xff]  ;;  %v2998_v25 = vld [vmem:[%s3600_s30 + $0x28] sm:$0xff]  ;;  %s4008_s1 = sld [smem:[#allocation20_spill]]  ;;  %vm1336_vm9 = vcmask 1043456   ;;  %vm1308_vm10 = vcmask 64512  }
  0xa0   : > { %v3008_v12 = vld [vmem:[%s3607_s16 + $0x38] sm:$0xff]  ;;  %1176 = vmatpush.bf16.msra.mxu1 %v3000_v11  ;;  %v3007_v14 = vld [vmem:[%s3607_s16 + $0x30] sm:$0xff]  ;;  %v3006_v26 = vld [vmem:[%s3607_s16 + $0x28] sm:$0xff]  ;;  %p2944_p10 = scmp.ne.s32.totalorder %s3472_s2, 1 }
  0xa1   : > { %1258 = vmatpush.bf16.msra.mxu2 %v3008_v12  ;;  %v2997_v27 = vld [vmem:[%s3600_s30 + $0x20] sm:$0xff]  ;;  %v2992_v29 = vld [vmem:[%s3640_s29 + $0x38] sm:$0xff]  ;;  %v2996_v30 = vld [vmem:[%s3600_s30 + $0x18] sm:$0xff]  ;;  %s4016_s2 = sld [smem:[#allocation36_spill]] (!%p2944_p10) }
  0xa2   : > { %v3005_v28 = vld [vmem:[%s3607_s16 + $0x20] sm:$0xff]  ;;  %1094 = vmatpush.bf16.msra.mxu0 %v2992_v29  ;;  %v3004_v31 = vld [vmem:[%s3607_s16 + $0x18] sm:$0xff]  ;;  %v2995_v33 = vld [vmem:[%s3600_s30 + $0x10] sm:$0xff]  ;;  %s4017_s12 = sld [smem:[#allocation34_spill]] (!%p2944_p10) }
  0xa3   : > { %v2991_v32 = vld [vmem:[%s3640_s29 + $0x30] sm:$0xff]  ;;  %v3003_v34 = vld [vmem:[%s3607_s16 + $0x10] sm:$0xff]  ;;  %v2990_v35 = vld [vmem:[%s3640_s29 + $0x28] sm:$0xff]  ;;  %s4018_s20 = sld [smem:[#allocation35_spill]] (!%p2944_p10) }
  0xa4   : > { %v3692_v9 = vld [vmem:[#allocation2] sm:$0xff]  ;;  %1177 = vmatpush.bf16.msra.mxu1 %v2999_v13  ;;  %v2994_v36 = vld [vmem:[%s3600_s30 + $0x8] sm:$0xff]  ;;  %v2993_v39 = vld [vmem:[%s3600_s30] sm:$0xff]  ;;  %s4019_s4 = sld [smem:[#allocation37_spill]] (!%p2944_p10) }
  0xa5   : > { %973 = vadd.xlane.f32.xlu0 %v3692_v9  ;;  %v3695_v10 = vld [vmem:[#allocation2 + $0x8] sm:$0xff]  ;;  %1259 = vmatpush.bf16.msra.mxu2 %v3007_v14  ;;  %v3002_v37 = vld [vmem:[%s3607_s16 + $0x8] sm:$0xff]  ;;  %v2989_v38 = vld [vmem:[%s3640_s29 + $0x20] sm:$0xff]  ;;  %s4009_s18 = scalar_lea.vmem %s4008_s1, %s3623_s25 }
  0xa6   : > { %1095 = vmatpush.bf16.msra.mxu0 %v2991_v32  ;;  %v3001_v40 = vld [vmem:[%s3607_s16] sm:$0xff]  ;;  %v2988_v41 = vld [vmem:[%s3640_s29 + $0x18] sm:$0xff]  ;;  %v3032_v43 = vld [vmem:[%s3600_s30 + $0x78] sm:$0xff] }
  0xa7   : > { %v3024_v42 = vld [vmem:[%s3640_s29 + $0x78] sm:$0xff]  ;;  %v2987_v44 = vld [vmem:[%s3640_s29 + $0x10] sm:$0xff]  ;;  %v3031_v46 = vld [vmem:[%s3600_s30 + $0x70] sm:$0xff] }
  0xa8   : > { %1178 = vmatpush.bf16.msra.mxu1 %v2998_v25  ;;  %v3023_v45 = vld [vmem:[%s3640_s29 + $0x70] sm:$0xff]  ;;  %v2986_v47 = vld [vmem:[%s3640_s29 + $0x8] sm:$0xff]  ;;  %v3030_v49 = vld [vmem:[%s3600_s30 + $0x68] sm:$0xff] }
  0xa9   : > { %1260 = vmatpush.bf16.msra.mxu2 %v3006_v26  ;;  %v3022_v48 = vld [vmem:[%s3640_s29 + $0x68] sm:$0xff]  ;;  %v2985_v52 = vld [vmem:[%s3640_s29] sm:$0xff]  ;;  %v3029_v54 = vld [vmem:[%s3600_s30 + $0x60] sm:$0xff] }
  0xaa   : > { %1096 = vmatpush.bf16.msra.mxu0 %v2990_v35  ;;  %v3021_v53 = vld [vmem:[%s3640_s29 + $0x60] sm:$0xff]  ;;  %v3020_v56 = vld [vmem:[%s3640_s29 + $0x58] sm:$0xff]  ;;  %v3028_v57 = vld [vmem:[%s3600_s30 + $0x58] sm:$0xff] }
  0xab   : > { %v3019_v60 = vld [vmem:[%s3640_s29 + $0x50] sm:$0xff]  ;;  %v3027_v61 = vld [vmem:[%s3600_s30 + $0x50] sm:$0xff]  ;;  %v3018_v1 = vld [vmem:[%s3640_s29 + $0x48] sm:$0xff] }
  0xac   : > { %1179 = vmatpush.bf16.msra.mxu1 %v2997_v27  ;;  %v3026_v2 = vld [vmem:[%s3600_s30 + $0x48] sm:$0xff]  ;;  %v3017_v7 = vld [vmem:[%s3640_s29 + $0x40] sm:$0xff]  ;;  %v3025_v8 = vld [vmem:[%s3600_s30 + $0x40] sm:$0xff]  ;;  %s4006_s29 = sld [smem:[#allocation19_spill]] }
  0xad   : > { %975 = vadd.xlane.f32.xlu0 %v3695_v10  ;;  %1261 = vmatpush.bf16.msra.mxu2 %v3005_v28  ;;  %v3131_v25 = vld [vmem:[%s4009_s18] ss:$0 sm:$0xff] }
  0xae   : > { %1097 = vmatpush.bf16.msra.mxu0 %v2989_v38 }
  0xb0   : > { %1180 = vmatpush.bf16.msra.mxu1 %v2996_v30 }
  0xb1   : > { %1262 = vmatpush.bf16.msra.mxu2 %v3004_v31 }
  0xb2   : > { %1098 = vmatpush.bf16.msra.mxu0 %v2988_v41  ;;  %s4007_s14 = scalar_lea.vmem %s4006_s29, %s3623_s25 }
  0xb4   : > { %1181 = vmatpush.bf16.msra.mxu1 %v2995_v33 }
  0xb5   : > { %1263 = vmatpush.bf16.msra.mxu2 %v3003_v34 }
  0xb6   : > { %1099 = vmatpush.bf16.msra.mxu0 %v2987_v44 }
  0xb8   : > { %1182 = vmatpush.bf16.msra.mxu1 %v2994_v36  ;;  %v3134_v36 = vld [vmem:[%s3657_s28] ss:$0 sm:$0xff] }
  0xb9   : > { %1264 = vmatpush.bf16.msra.mxu2 %v3002_v37 }
  0xba   : > { %1100 = vmatpush.bf16.msra.mxu0 %v2986_v47 }
  0xbc   : > { %1183 = vmatpush.bf16.msra.mxu1 %v2993_v39 }
  0xbd   : > { %1265 = vmatpush.bf16.msra.mxu2 %v3001_v40 }
  0xbe   : > { %1101 = vmatpush.bf16.msra.mxu0 %v2985_v52 }
  0xc0   : > { %1459 = vmatpush.bf16.msrb.mxu1 %v3024_v42 }
  0xc1   : > { %1543 = vmatpush.bf16.msrb.mxu2 %v3032_v43 }
  0xc4   : > { %1460 = vmatpush.bf16.msrb.mxu1 %v3023_v45 }
  0xc5   : > { %1544 = vmatpush.bf16.msrb.mxu2 %v3031_v46 }
  0xc8   : > { %1461 = vmatpush.bf16.msrb.mxu1 %v3022_v48 }
  0xc9   : > { %1545 = vmatpush.bf16.msrb.mxu2 %v3030_v49 }
  0xcc   : > { %1462 = vmatpush.bf16.msrb.mxu1 %v3021_v53 }
  0xcd   : > { %1546 = vmatpush.bf16.msrb.mxu2 %v3029_v54 }
  0xd0   : > { %1463 = vmatpush.bf16.msrb.mxu1 %v3020_v56 }
  0xd1   : > { %1547 = vmatpush.bf16.msrb.mxu2 %v3028_v57 }
  0xd4   : > { %1464 = vmatpush.bf16.msrb.mxu1 %v3019_v60 }
  0xd5   : > { %1548 = vmatpush.bf16.msrb.mxu2 %v3027_v61 }
  0xd8   : > { %1465 = vmatpush.bf16.msrb.mxu1 %v3018_v1 }
  0xd9   : > { %1549 = vmatpush.bf16.msrb.mxu2 %v3026_v2 }
  0xdc   : > { %1466 = vmatpush.bf16.msrb.mxu1 %v3017_v7 }
  0xdd   : > { %1550 = vmatpush.bf16.msrb.mxu2 %v3025_v8 }
 0x118   : > { %v974_v15 = vpop.xlane.xlu0 %973 }
 0x119   : > { %v977_v16 = vmul.f32 0.03125, %v974_v15 }
 0x11b   : > { %v979_v17 = vsub.f32 %v3692_v9, %v977_v16 }
 0x11d   : > { %v3704_v18 = vmul.f32 %v3635_v4, %v979_v17 }
 0x11f   : > { %v983_v19 = vmul.f32 %v3704_v18, %v3704_v18 }
 0x120   : > { %v976_v20 = vpop.xlane.xlu0 %975 }
 0x121   : > { %v978_v21 = vmul.f32 0.03125, %v976_v20  ;;  %985 = vadd.xlane.f32.xlu1 %v983_v19  ;;  %v3130_v20 = vld [vmem:[%s4007_s14] ss:$0 sm:$0xff] }
 0x123   : > { %v980_v22 = vsub.f32 %v3695_v10, %v978_v21 }
 0x125   : > { %v3710_v23 = vmul.f32 %v3635_v4, %v980_v22 }
 0x127   : > { %v984_v24 = vmul.f32 %v3710_v23, %v3710_v23 }
 0x129   : > { %987 = vadd.xlane.f32.xlu1 %v984_v24 }
 0x194   : > { %v986_v50 = vpop.xlane.xlu1 %985 }
 0x195   : > { %v989_v51 = vmul.f32 0.03125, %v986_v50 }
 0x197   : > { %v991_v55 = vadd.f32 1e-05, %v989_v51  ;;  %v3136_v51 = vld [vmem:[%s3652_s11 + $0x1] ss:$0 sm:$0xff] }
 0x199   : > { %3143 = vrsqrt.f32 %v991_v55  ;;  %vm999_vm4 = vweird.f32 %v991_v55 }
 0x19c   : > { %v988_v58 = vpop.xlane.xlu1 %987 }
 0x19d   : > { %v990_v59 = vmul.f32 0.03125, %v988_v58 }
 0x19f   : > { %v3144_v62 = vpop.eup %3143  ;;  %v992_v63 = vadd.f32 1e-05, %v990_v59 }
 0x1a0   : > { %v994_v0 = vmul.f32 %v3144_v62, %v991_v55  ;;  %vm1000_vm3 = vweird.f32 %v3144_v62 }
 0x1a1   : > { %3145 = vrsqrt.f32 %v992_v63  ;;  %vm1001_vm5 = vmor %vm999_vm4, %vm1000_vm3  ;;  %vm1009_vm7 = vweird.f32 %v992_v63 }
 0x1a2   : > { %v995_v3 = vmul.f32 %v3144_v62, %v994_v0 }
 0x1a4   : > { %v996_v5 = vmul.f32 0.5, %v995_v3  ;;  %v3040_v3 = vld [vmem:[%s3607_s16 + $0x78] sm:$0xff] }
 0x1a6   : > { %v997_v11 = vsub.f32 1.5, %v996_v5 }
 0x1a7   : > { %v3146_v12 = vpop.eup %3145 }
 0x1a8   : > { %v998_v13 = vmul.f32 %v3144_v62, %v997_v11  ;;  %v1004_v14 = vmul.f32 %v3146_v12, %v992_v63  ;;  %vm1010_vm6 = vweird.f32 %v3146_v12 }
 0x1a9   : > { %vm1011_vm8 = vmor %vm1009_vm7, %vm1010_vm6 }
 0x1aa   : > { %v1005_v15 = vmul.f32 %v3146_v12, %v1004_v14  ;;  %v1002_v16 = vsel %vm1001_vm5, %v3144_v62, %v998_v13 }
 0x1ab   : > { %v1013_v21 = vmul.f32 %v1002_v16, %v3704_v18  ;;  %v3133_v18 = vld [vmem:[%s3652_s11] ss:$0 sm:$0xff]  ;;  %s4010_s11 = scalar_lea.vmem %s3937_s10, %s3623_s25 }
 0x1ac   : > { %v1006_v17 = vmul.f32 0.5, %v1005_v15 }
 0x1ad   : > { %v1018_v26 = vmul.f32 %v3130_v20, %v1013_v21  ;;  %v3037_v21 = vld [vmem:[%s3607_s16 + $0x60] sm:$0xff] }
 0x1ae   : > { %v1007_v19 = vsub.f32 1.5, %v1006_v17 }
 0x1af   : > { %v1023_v29 = vadd.f32 %v3131_v25, %v1018_v26  ;;  %v3033_v26 = vld [vmem:[%s3607_s16 + $0x40] sm:$0xff] }
 0x1b0   : > { %v1008_v22 = vmul.f32 %v3146_v12, %v1007_v19  ;;  %v3039_v19 = vld [vmem:[%s3607_s16 + $0x70] sm:$0xff] }
 0x1b2   : > { %v1012_v24 = vsel %vm1011_vm8, %v3146_v12, %v1008_v22  ;;  %v3036_v22 = vld [vmem:[%s3607_s16 + $0x58] sm:$0xff] }
 0x1b3   : > { %v1014_v27 = vmul.f32 %v1012_v24, %v3710_v23  ;;  %v3132_v23 = vld [vmem:[%s3645_s17] ss:$0 sm:$0xff] }
 0x1b4   : > { %v3035_v24 = vld [vmem:[%s3607_s16 + $0x50] sm:$0xff] }
 0x1b5   : > { %v1019_v28 = vmul.f32 %v3130_v20, %v1014_v27  ;;  %v3038_v20 = vld [vmem:[%s3607_s16 + $0x68] sm:$0xff] }
 0x1b7   : > { %v1024_v30 = vadd.f32 %v3131_v25, %v1019_v28  ;;  %v3034_v25 = vld [vmem:[%s3607_s16 + $0x48] sm:$0xff] }
 0x1b9   : > { %v3762_v31 = vpack.c.bf16 %v1024_v30, %v1023_v29 }
 0x1bb   : > { %1102 = vmatmul.bf16.vlgmr.msra.gmra.mxu0 %v3762_v31  ;;  %1184 = vmatmul.bf16.vlgmr.msra.gmra.mxu1 %v3762_v31 }
 0x1bc   : > { %1266 = vmatmul.bf16.vlgmr.msra.gmra.mxu2 %v3762_v31 }
 0x1cb   : > { %1467 = vmatmul.bf16.vlgmr.msrb.gmra.mxu1 %v3762_v31 }
 0x1cc   : > { %1551 = vmatmul.bf16.vlgmr.msrb.gmra.mxu2 %v3762_v31 }
 0x238   : > { %v1185_v32 = vpop.f32.mrf.mxu1  ;;  %v1103_v34 = vpop.f32.mrf.mxu0 }
 0x239   : > { %v1186_v33 = vadd.f32 %v3133_v18, %v1185_v32  ;;  %v1104_v37 = vadd.f32 %v3132_v23, %v1103_v34 }
 0x23b   : > { %v1274_v35 = vpack.c.bf16 %v1186_v33, %v1186_v33  ;;  %v1272_v42 = vpack.c.bf16 %v1104_v37, %v1104_v37  ;;  %v3135_v37 = vld [vmem:[%s3645_s17 + $0x1] ss:$0 sm:$0xff] }
 0x23d   : > { %1285 = vmatpush.bf16.xpose.msra.mxu3 %v1274_v35 }
 0x23f   : > { %v1267_v38 = vpop.f32.mrf.mxu2 }
 0x240   : > { %v1268_v39 = vadd.f32 %v3134_v36, %v1267_v38  ;;  %v1187_v40 = vpop.f32.mrf.mxu1  ;;  %v1105_v49 = vpop.f32.mrf.mxu0 }
 0x241   : > { %v1188_v41 = vadd.f32 %v3133_v18, %v1187_v40  ;;  %v1106_v52 = vadd.f32 %v3132_v23, %v1105_v49  ;;  %v3016_v40 = vld [vmem:[%s3613_s5 + $0x38] sm:$0xff]  ;;  %v3010_v49 = vld [vmem:[%s3613_s5 + $0x8] sm:$0xff] }
 0x242   : > { %v1276_v43 = vpack.c.bf16 %v1268_v39, %v1268_v39 }
 0x243   : > { %v1275_v44 = vpack.c.bf16 %v1188_v41, %v1188_v41  ;;  %v1273_v55 = vpack.c.bf16 %v1106_v52, %v1106_v52 }
 0x244   : > { %1286 = vmatmul.bf16.vlgmr.msra.gmra.mxu3 %v1272_v42  ;;  %v1338_v45 = vsel %vm1336_vm9, %v1276_v43, 0  ;;  %v3015_v42 = vld [vmem:[%s3613_s5 + $0x30] sm:$0xff]  ;;  %v3014_v43 = vld [vmem:[%s3613_s5 + $0x28] sm:$0xff] }
 0x245   : > { %1298 = vmatpush.bf16.xpose.msrb.mxu3 %v1275_v44 }
 0x247   : > { %v1269_v46 = vpop.f32.mrf.mxu2 }
 0x248   : > { %v1270_v47 = vadd.f32 %v3134_v36, %v1269_v46  ;;  %v1468_v38 = vpop.f32.mrf.mxu1 }
 0x249   : > { %v1469_v39 = vadd.f32 %v3135_v37, %v1468_v38  ;;  %v3043_v38 = vld [vmem:[%s3613_s5 + $0x50] sm:$0xff] }
 0x24a   : > { %v1277_v48 = vpack.c.bf16 %v1270_v47, %v1270_v47 }
 0x24b   : > { %v1641_v41 = vpack.c.bf16 %v1469_v39, %v1469_v39  ;;  %v3042_v39 = vld [vmem:[%s3613_s5 + $0x48] sm:$0xff] }
 0x24c   : > { %v1357_v50 = vsel %vm1336_vm9, %v1277_v48, 0  ;;  %v3011_v48 = vld [vmem:[%s3613_s5 + $0x10] sm:$0xff] }
 0x24d   : > { %1347 = vmatpush.bf16.msra.mxu3 %v1338_v45  ;;  %1366 = vmatpush.bf16.msrb.mxu0 %v1357_v50  ;;  %v3013_v45 = vld [vmem:[%s3613_s5 + $0x20] sm:$0xff] }
 0x24e   : > { %v3009_v50 = vld [vmem:[%s3613_s5] sm:$0xff] }
 0x24f   : > { %v1552_v53 = vpop.f32.mrf.mxu2 }
 0x250   : > { %v1553_v54 = vadd.f32 %v3136_v51, %v1552_v53  ;;  %v1470_v44 = vpop.f32.mrf.mxu1 }
 0x251   : > { %v1471_v46 = vadd.f32 %v3135_v37, %v1470_v44  ;;  %v3044_v37 = vld [vmem:[%s3613_s5 + $0x58] sm:$0xff] }
 0x252   : > { %v1643_v56 = vpack.c.bf16 %v1553_v54, %v1553_v54 }
 0x253   : > { %v1642_v47 = vpack.c.bf16 %v1471_v46, %v1471_v46 }
 0x254   : > { %1654 = vmatpush.bf16.xpose.msra.mxu0 %v1643_v56  ;;  %1299 = vmatmul.bf16.vlgmr.msrb.gmra.mxu3 %v1273_v55  ;;  %v3137_v55 = vld [vmem:[%s3657_s28 + $0x1] ss:$0 sm:$0xff] }
 0x255   : > { %1627 = vmatpush.bf16.msrb.mxu3 %v3040_v3 }
 0x257   : > { %v1554_v32 = vpop.f32.mrf.mxu2 }
 0x258   : > { %v1555_v23 = vadd.f32 %v3136_v51, %v1554_v32 }
 0x259   : > { %1628 = vmatpush.bf16.msrb.mxu3 %v3039_v19 }
 0x25a   : > { %v1644_v36 = vpack.c.bf16 %v1555_v23, %v1555_v23 }
 0x25d   : > { %1629 = vmatpush.bf16.msrb.mxu3 %v3038_v20 }
 0x261   : > { %1630 = vmatpush.bf16.msrb.mxu3 %v3037_v21 }
 0x265   : > { %1631 = vmatpush.bf16.msrb.mxu3 %v3036_v22 }
 0x269   : > { %1632 = vmatpush.bf16.msrb.mxu3 %v3035_v24 }
 0x26d   : > { %1633 = vmatpush.bf16.msrb.mxu3 %v3034_v25 }
 0x271   : > { %1634 = vmatpush.bf16.msrb.mxu3 %v3033_v26  ;;  %v3048_v26 = vld [vmem:[%s3613_s5 + $0x78] sm:$0xff] }
 0x2c7   : > { %v1287_v57 = vpop.f32.mrf.mxu3 }
 0x2c8   : > { %v1304_v58 = vmul.f32 0.25, %v1287_v57 }
 0x2ca   : > { %v1306_v59 = vadd.f32 %v1304_v58, %v3647_v6 }
 0x2cc   : > { %v1309_v60 = vsel %vm1308_vm10, %v1306_v59, -inf }
 0x2cd   : > { %1310 = vmax.xlane.f32.xlu0 %v1309_v60 }
 0x2cf   : > { %v1289_v61 = vpop.f32.mrf.mxu3 }
 0x2d7   : > { %v1300_v62 = vpop.f32.mrf.mxu3 }
 0x2d8   : > { %v1305_v63 = vmul.f32 0.25, %v1300_v62 }
 0x2da   : > { %v1307_v0 = vadd.f32 %v1305_v63, %v3647_v6 }
 0x2dc   : > { %v1312_v1 = vsel %vm1308_vm10, %v1307_v0, -inf }
 0x2dd   : > { %1313 = vmax.xlane.f32.xlu2 %v1312_v1 }
 0x2df   : > { %v1302_v2 = vpop.f32.mrf.mxu3 }
 0x340   : > { %v1311_v5 = vpop.xlane.xlu0 %1310 }
 0x341   : > { %v1315_v7 = vsub.f32 %v1306_v59, %v1311_v5 }
 0x343   : > { %v1317_v8 = vmul.f32 1.442695, %v1315_v7 }
 0x345   : > { %3147 = vpow2.f32 %v1317_v8 }
 0x34b   : > { %v3148_v11 = vpop.eup %3147 }
 0x34c   : > { %v1321_v12 = vsel %vm1308_vm10, %v3148_v11, 0.0 }
 0x34d   : > { %1322 = vadd.xlane.f32.xlu1 %v1321_v12 }
 0x350   : > { %v1314_v13 = vpop.xlane.xlu2 %1313 }
 0x351   : > { %v1316_v14 = vsub.f32 %v1307_v0, %v1314_v13 }
 0x353   : > { %v1319_v15 = vmul.f32 1.442695, %v1316_v14 }
 0x355   : > { %3149 = vpow2.f32 %v1319_v15 }
 0x35b   : > { %v3150_v16 = vpop.eup %3149 }
 0x35c   : > { %v1324_v17 = vsel %vm1308_vm10, %v3150_v16, 0.0 }
 0x35d   : > { %1325 = vadd.xlane.f32.xlu2 %v1324_v17 }
 0x3c0   : > { %v1323_v27 = vpop.xlane.xlu1 %1322 }
 0x3c1   : > { %3151 = vrcp.f32 %v1323_v27  ;;  %v3047_v27 = vld [vmem:[%s3613_s5 + $0x70] sm:$0xff] }
 0x3c7   : > { %v3152_v28 = vpop.eup %3151 }
 0x3c8   : > { %v1329_v29 = vmul.f32 %v3152_v28, %v3148_v11 }
 0x3ca   : > { %v1331_v30 = vpack.c.bf16 %v1329_v29, %v1329_v29 }
 0x3cc   : > { %2647 = vmatmul.msk.bf16.vlgmr.msra.gmra.mxu3 %vm1308_vm10, %v1331_v30 }
 0x3cd   : > { %1805 = vmatpush.bf16.msra.mxu3 %v3048_v26 }
 0x3d0   : > { %v1326_v18 = vpop.xlane.xlu2 %1325 }
 0x3d1   : > { %3153 = vrcp.f32 %v1326_v18  ;;  %1806 = vmatpush.bf16.msra.mxu3 %v3047_v27 }
 0x3d7   : > { %v3154_v33 = vpop.eup %3153 }
 0x3d8   : > { %v1330_v34 = vmul.f32 %v3154_v33, %v3150_v16 }
 0x3da   : > { %v1332_v35 = vpack.c.bf16 %v1330_v34, %v1330_v34 }
 0x3dc   : > { %2648 = vmatmul.msk.bf16.vlgmr.msrb.gmra.mxu0 %vm1308_vm10, %v1332_v35  ;;  %1635 = vmatmul.bf16.vlgmr.msrb.gmra.mxu3 %v3762_v31  ;;  %v3012_v31 = vld [vmem:[%s3613_s5 + $0x18] sm:$0xff]  ;;  %v3046_v35 = vld [vmem:[%s3613_s5 + $0x68] sm:$0xff] }
 0x3dd   : > { %1667 = vmatpush.bf16.xpose.msrb.mxu0 %v1644_v36  ;;  %1807 = vmatpush.bf16.msra.mxu3 %v3046_v35  ;;  %v3045_v36 = vld [vmem:[%s3613_s5 + $0x60] sm:$0xff] }
 0x3e1   : > { %1808 = vmatpush.bf16.msra.mxu3 %v3045_v36  ;;  %v3140_v36 = vld [vmem:[%s937_s9] ss:$0 sm:$0xff] }
 0x3e5   : > { %1809 = vmatpush.bf16.msra.mxu3 %v3044_v37 }
 0x3e9   : > { %1810 = vmatpush.bf16.msra.mxu3 %v3043_v38 }
 0x3ec   : > { %1655 = vmatmul.bf16.vlgmr.msra.gmra.mxu0 %v1641_v41 }
 0x3ed   : > { %1867 = vmatpush.bf16.msra.mxu0 %v3016_v40  ;;  %1811 = vmatpush.bf16.msra.mxu3 %v3042_v39  ;;  %v3041_v40 = vld [vmem:[%s3613_s5 + $0x40] sm:$0xff] }
 0x3f1   : > { %1868 = vmatpush.bf16.msra.mxu0 %v3015_v42  ;;  %1812 = vmatpush.bf16.msra.mxu3 %v3041_v40 }
 0x3f5   : > { %1869 = vmatpush.bf16.msra.mxu0 %v3014_v43 }
 0x3f9   : > { %1870 = vmatpush.bf16.msra.mxu0 %v3013_v45 }
 0x3fc   : > { %1668 = vmatmul.bf16.vlgmr.msrb.gmra.mxu0 %v1642_v47 }
 0x3fd   : > { %1871 = vmatpush.bf16.msra.mxu0 %v3012_v31 }
 0x401   : > { %1872 = vmatpush.bf16.msra.mxu0 %v3011_v48  ;;  %v3138_v48 = vld [vmem:[%s4010_s11] ss:$0 sm:$0xff] }
 0x405   : > { %1873 = vmatpush.bf16.msra.mxu0 %v3010_v49 }
 0x409   : > { %1874 = vmatpush.bf16.msra.mxu0 %v3009_v50 }
 0x44f   : > { %v1349_v51 = vpop.f32.mrf.mxu3 }
 0x457   : > { %v1351_v52 = vpop.f32.mrf.mxu3 }
 0x459   : > { %v1368_v53 = vpop.f32.mrf.mxu0 }
 0x45a   : > { %v1372_v54 = vpack.c.bf16 %v1368_v53, %v1349_v51 }
 0x45c   : > { %1875 = vmatmul.bf16.vlgmr.msra.gmra.mxu0 %v1372_v54 }
 0x45f   : > { %v1636_v56 = vpop.f32.mrf.mxu3 }
 0x460   : > { %v1637_v57 = vadd.f32 %v3137_v55, %v1636_v56 }
 0x461   : > { %v1370_v58 = vpop.f32.mrf.mxu0 }
 0x462   : > { %v1645_v59 = vpack.c.bf16 %v1637_v57, %v1637_v57 }
 0x464   : > { %v1705_v60 = vsel %vm1336_vm9, %v1645_v59, 0 }
 0x465   : > { %1714 = vmatpush.bf16.msra.mxu1 %v1705_v60 }
 0x467   : > { %v1638_v61 = vpop.f32.mrf.mxu3 }
 0x468   : > { %v1639_v62 = vadd.f32 %v3137_v55, %v1638_v61 }
 0x469   : > { %v1656_v63 = vpop.f32.mrf.mxu0 }
 0x46a   : > { %v1646_v0 = vpack.c.bf16 %v1639_v62, %v1639_v62  ;;  %v1673_v1 = vmul.f32 0.25, %v1656_v63 }
 0x46c   : > { %v1724_v2 = vsel %vm1336_vm9, %v1646_v0, 0  ;;  %v1675_v3 = vadd.f32 %v1673_v1, %v3647_v6  ;;  %v3056_v0 = vld [vmem:[%s3675_s22 + $0x38] sm:$0xff]  ;;  %v3055_v1 = vld [vmem:[%s3675_s22 + $0x30] sm:$0xff] }
 0x46d   : > { %1733 = vmatpush.bf16.msra.mxu2 %v1724_v2  ;;  %2012 = vmatpush.bf16.msrb.mxu1 %v3056_v0  ;;  %v3054_v2 = vld [vmem:[%s3675_s22 + $0x28] sm:$0xff] }
 0x46e   : > { %v1677_v5 = vsel %vm1308_vm10, %v1675_v3, -inf }
 0x46f   : > { %1678 = vmax.xlane.f32.xlu0 %v1677_v5  ;;  %v3052_v5 = vld [vmem:[%s3675_s22 + $0x18] sm:$0xff] }
 0x471   : > { %v1658_v7 = vpop.f32.mrf.mxu0  ;;  %2013 = vmatpush.bf16.msrb.mxu1 %v3055_v1 }
 0x472   : > { %v3051_v7 = vld [vmem:[%s3675_s22 + $0x10] sm:$0xff] }
 0x475   : > { %2014 = vmatpush.bf16.msrb.mxu1 %v3054_v2 }
 0x479   : > { %v1669_v8 = vpop.f32.mrf.mxu0 }
 0x47a   : > { %v1674_v11 = vmul.f32 0.25, %v1669_v8  ;;  %v3050_v8 = vld [vmem:[%s3675_s22 + $0x8] sm:$0xff] }
 0x47c   : > { %v1676_v12 = vadd.f32 %v1674_v11, %v3647_v6 }
 0x47e   : > { %v1680_v13 = vsel %vm1308_vm10, %v1676_v12, -inf }
 0x47f   : > { %1681 = vmax.xlane.f32.xlu2 %v1680_v13  ;;  %v3049_v13 = vld [vmem:[%s3675_s22] sm:$0xff] }
 0x481   : > { %v1671_v14 = vpop.f32.mrf.mxu0 }
 0x4d9   : > { %v1876_v46 = vpop.f32.mrf.mxu0 }
 0x4e1   : > { %v1878_v51 = vpop.f32.mrf.mxu0 }
 0x4e2   : > { %v1679_v15 = vpop.xlane.xlu0 %1678 }
 0x4e3   : > { %v1683_v16 = vsub.f32 %v1675_v3, %v1679_v15  ;;  %v3053_v3 = vld [vmem:[%s3675_s22 + $0x20] sm:$0xff]  ;;  %s4011_s22 = sld [smem:[#allocation17_spill]] }
 0x4e4   : > { %2015 = vmatpush.bf16.msrb.mxu1 %v3053_v3 }
 0x4e5   : > { %v1685_v17 = vmul.f32 1.442695, %v1683_v16 }
 0x4e7   : > { %3155 = vpow2.f32 %v1685_v17 }
 0x4e8   : > { %2016 = vmatpush.bf16.msrb.mxu1 %v3052_v5 }
 0x4ec   : > { %2017 = vmatpush.bf16.msrb.mxu1 %v3051_v7 }
 0x4ed   : > { %v3156_v19 = vpop.eup %3155 }
 0x4ee   : > { %v1689_v20 = vsel %vm1308_vm10, %v3156_v19, 0.0 }
 0x4ef   : > { %1690 = vadd.xlane.f32.xlu2 %v1689_v20 }
 0x4f0   : > { %2018 = vmatpush.bf16.msrb.mxu1 %v3050_v8 }
 0x4f2   : > { %v1682_v21 = vpop.xlane.xlu2 %1681 }
 0x4f3   : > { %v1684_v22 = vsub.f32 %v1676_v12, %v1682_v21 }
 0x4f4   : > { %2019 = vmatpush.bf16.msrb.mxu1 %v3049_v13 }
 0x4f5   : > { %v1687_v24 = vmul.f32 1.442695, %v1684_v22 }
 0x4f7   : > { %3157 = vpow2.f32 %v1687_v24 }
 0x4fd   : > { %v3158_v25 = vpop.eup %3157 }
 0x4fe   : > { %v1692_v6 = vsel %vm1308_vm10, %v3158_v25, 0.0 }
 0x4ff   : > { %1693 = vadd.xlane.f32.xlu1 %v1692_v6 }
 0x562   : > { %v1691_v28 = vpop.xlane.xlu2 %1690 }
 0x563   : > { %3159 = vrcp.f32 %v1691_v28 }
 0x569   : > { %v3160_v29 = vpop.eup %3159 }
 0x56a   : > { %v1697_v30 = vmul.f32 %v3160_v29, %v3156_v19 }
 0x56c   : > { %v1699_v18 = vpack.c.bf16 %v1697_v30, %v1697_v30 }
 0x56e   : > { %2796 = vmatmul.msk.bf16.vlgmr.msra.gmra.mxu1 %vm1308_vm10, %v1699_v18  ;;  %v3139_v18 = vld [vmem:[%s934_s3] ss:$0 sm:$0xff] }
 0x572   : > { %v1694_v32 = vpop.xlane.xlu1 %1693 }
 0x573   : > { %3161 = vrcp.f32 %v1694_v32 }
 0x579   : > { %v3162_v33 = vpop.eup %3161 }
 0x57a   : > { %v1698_v23 = vmul.f32 %v3162_v33, %v3158_v25 }
 0x57c   : > { %v1700_v34 = vpack.c.bf16 %v1698_v23, %v1698_v23 }
 0x57e   : > { %2797 = vmatmul.msk.bf16.vlgmr.msra.gmra.mxu2 %vm1308_vm10, %v1700_v34 }
 0x5eb   : > { %v1716_v41 = vpop.f32.mrf.mxu1 }
 0x5f3   : > { %v1718_v42 = vpop.f32.mrf.mxu1 }
 0x5f4   : > { %v3063_v42 = vld [vmem:[%s4011_s22 + $0x30] sm:$0xff] }
 0x601   : > { %v1735_v43 = vpop.f32.mrf.mxu2 }
 0x602   : > { %v1739_v44 = vpack.c.bf16 %v1735_v43, %v1716_v41  ;;  %v3064_v41 = vld [vmem:[%s4011_s22 + $0x38] sm:$0xff]  ;;  %v3062_v43 = vld [vmem:[%s4011_s22 + $0x28] sm:$0xff] }
 0x603   : > { %2137 = vmatpush.bf16.msrb.mxu2 %v3064_v41 }
 0x604   : > { %1813 = vmatmul.bf16.vlgmr.msra.gmra.mxu3 %v1739_v44  ;;  %v3061_v44 = vld [vmem:[%s4011_s22 + $0x20] sm:$0xff] }
 0x607   : > { %2138 = vmatpush.bf16.msrb.mxu2 %v3063_v42 }
 0x609   : > { %v1737_v45 = vpop.f32.mrf.mxu2 }
 0x60a   : > { %v3141_v45 = vld [vmem:[%s945_s8] ss:$0 sm:$0xff] }
 0x60b   : > { %2139 = vmatpush.bf16.msrb.mxu2 %v3062_v43 }
 0x60f   : > { %2140 = vmatpush.bf16.msrb.mxu2 %v3061_v44 }
 0x687   : > { %v1814_v31 = vpop.f32.mrf.mxu3 }
 0x688   : > { %v1877_v47 = vadd.f32 %v1876_v46, %v1814_v31  ;;  %v3060_v46 = vld [vmem:[%s4011_s22 + $0x18] sm:$0xff] }
 0x689   : > { %2141 = vmatpush.bf16.msrb.mxu2 %v3060_v46 }
 0x68a   : > { %v1881_v49 = vadd.f32 %v1877_v47, %v3692_v9 }
 0x68c   : > { %v3826_v50 = vadd.f32 %v3138_v48, %v1881_v49 }
 0x68e   : > { %1891 = vadd.xlane.f32.xlu0 %v3826_v50 }
 0x68f   : > { %v1816_v52 = vpop.f32.mrf.mxu3 }
 0x690   : > { %v1879_v53 = vadd.f32 %v1878_v51, %v1816_v52  ;;  %v3058_v52 = vld [vmem:[%s4011_s22 + $0x8] sm:$0xff] }
 0x692   : > { %v1882_v54 = vadd.f32 %v1879_v53, %v3695_v10 }
 0x694   : > { %v3830_v55 = vadd.f32 %v3138_v48, %v1882_v54  ;;  %v3059_v48 = vld [vmem:[%s4011_s22 + $0x10] sm:$0xff] }
 0x695   : > { %2142 = vmatpush.bf16.msrb.mxu2 %v3059_v48 }
 0x696   : > { %1893 = vadd.xlane.f32.xlu1 %v3830_v55 }
 0x699   : > { %2143 = vmatpush.bf16.msrb.mxu2 %v3058_v52 }
 0x701   : > { %v1892_v56 = vpop.xlane.xlu0 %1891 }
 0x702   : > { %v1895_v57 = vmul.f32 0.03125, %v1892_v56  ;;  %v3057_v56 = vld [vmem:[%s4011_s22] sm:$0xff] }
 0x703   : > { %2144 = vmatpush.bf16.msrb.mxu2 %v3057_v56 }
 0x704   : > { %v1897_v9 = vsub.f32 %v3826_v50, %v1895_v57 }
 0x706   : > { %v1899_v58 = vmul.f32 %v3635_v4, %v1897_v9 }
 0x708   : > { %v1901_v59 = vmul.f32 %v1899_v58, %v1899_v58 }
 0x709   : > { %v1894_v60 = vpop.xlane.xlu1 %1893 }
 0x70a   : > { %v1896_v61 = vmul.f32 0.03125, %v1894_v60  ;;  %1903 = vadd.xlane.f32.xlu2 %v1901_v59 }
 0x70c   : > { %v1898_v10 = vsub.f32 %v3830_v55, %v1896_v61 }
 0x70e   : > { %v1900_v62 = vmul.f32 %v3635_v4, %v1898_v10 }
 0x710   : > { %v1902_v63 = vmul.f32 %v1900_v62, %v1900_v62 }
 0x712   : > { %1905 = vadd.xlane.f32.xlu0 %v1902_v63 }
 0x77d   : > { %v1904_v11 = vpop.xlane.xlu2 %1903 }
 0x77e   : > { %v1907_v12 = vmul.f32 0.03125, %v1904_v11 }
 0x780   : > { %v1909_v14 = vadd.f32 1e-05, %v1907_v12 }
 0x782   : > { %3163 = vrsqrt.f32 %v1909_v14  ;;  %vm1917_vm12 = vweird.f32 %v1909_v14 }
 0x785   : > { %v1906_v15 = vpop.xlane.xlu0 %1905 }
 0x786   : > { %v1908_v16 = vmul.f32 0.03125, %v1906_v15 }
 0x788   : > { %v3164_v17 = vpop.eup %3163  ;;  %v1910_v19 = vadd.f32 1e-05, %v1908_v16 }
 0x789   : > { %v1912_v20 = vmul.f32 %v3164_v17, %v1909_v14  ;;  %vm1918_vm11 = vweird.f32 %v3164_v17 }
 0x78a   : > { %3165 = vrsqrt.f32 %v1910_v19  ;;  %vm1919_vm13 = vmor %vm1917_vm12, %vm1918_vm11  ;;  %vm1927_vm15 = vweird.f32 %v1910_v19 }
 0x78b   : > { %v1913_v21 = vmul.f32 %v3164_v17, %v1912_v20 }
 0x78d   : > { %v1914_v22 = vmul.f32 0.5, %v1913_v21 }
 0x78f   : > { %v1915_v24 = vsub.f32 1.5, %v1914_v22 }
 0x790   : > { %v3166_v25 = vpop.eup %3165 }
 0x791   : > { %v1916_v6 = vmul.f32 %v3164_v17, %v1915_v24  ;;  %v1922_v26 = vmul.f32 %v3166_v25, %v1910_v19  ;;  %vm1928_vm14 = vweird.f32 %v3166_v25 }
 0x792   : > { %vm1929_vm0 = vmor %vm1927_vm15, %vm1928_vm14 }
 0x793   : > { %v1923_v27 = vmul.f32 %v3166_v25, %v1922_v26  ;;  %v1920_v28 = vsel %vm1919_vm13, %v3164_v17, %v1916_v6  ;;  %v3142_v6 = vld [vmem:[%s948_s26] ss:$0 sm:$0xff] }
 0x794   : > { %v1931_v32 = vmul.f32 %v1920_v28, %v1899_v58 }
 0x795   : > { %v1924_v29 = vmul.f32 0.5, %v1923_v27 }
 0x796   : > { %v1936_v34 = vmul.f32 %v3139_v18, %v1931_v32 }
 0x797   : > { %v1925_v30 = vsub.f32 1.5, %v1924_v29 }
 0x798   : > { %v1941_v38 = vadd.f32 %v3140_v36, %v1936_v34 }
 0x799   : > { %v1926_v33 = vmul.f32 %v3166_v25, %v1925_v30 }
 0x79b   : > { %v1930_v23 = vsel %vm1929_vm0, %v3166_v25, %v1926_v33 }
 0x79c   : > { %v1932_v35 = vmul.f32 %v1930_v23, %v1900_v62 }
 0x79e   : > { %v1937_v37 = vmul.f32 %v3139_v18, %v1932_v35 }
 0x7a0   : > { %v1942_v39 = vadd.f32 %v3140_v36, %v1937_v37 }
 0x7a2   : > { %v1943_v40 = vpack.c.bf16 %v1942_v39, %v1941_v38 }
 0x7a4   : > { %2020 = vmatmul.bf16.vlgmr.msrb.gmra.mxu1 %v1943_v40 }
 0x821   : > { %v2021_v31 = vpop.f32.mrf.mxu1 }
 0x822   : > { %v2022_v47 = vadd.f32 %v3141_v45, %v2021_v31 }
 0x824   : > { %v2910_v49 = vmul.f32 -1.702, %v2022_v47 }
 0x826   : > { %v2030_v51 = vmul.f32 1.442695, %v2910_v49 }
 0x828   : > { %3167 = vpow2.f32 %v2030_v51 }
 0x829   : > { %v2023_v53 = vpop.f32.mrf.mxu1 }
 0x82a   : > { %v2024_v54 = vadd.f32 %v3141_v45, %v2023_v53 }
 0x82c   : > { %v2911_v57 = vmul.f32 -1.702, %v2024_v54 }
 0x82e   : > { %v3168_v9 = vpop.eup %3167  ;;  %v2032_v58 = vmul.f32 1.442695, %v2911_v57 }
 0x82f   : > { %v2034_v59 = vadd.f32 1.0, %v3168_v9 }
 0x830   : > { %3169 = vpow2.f32 %v2032_v58 }
 0x831   : > { %3171 = vrcp.f32 %v2034_v59  ;;  %v2047_v5 = vand.u32 2147483648, %v2034_v59  ;;  %vm2041_vm2 = vweird.f32 %v2034_v59  ;;  %v2045_v7 = vand.u32 2147483647, %v2034_v59 }
 0x833   : > { %v2048_v15 = vor.u32 1.1754944e-38, %v2047_v5  ;;  %vm2046_vm5 = vcmp.eq.f32.partialorder %v2045_v7, 8.507059e+37 }
 0x836   : > { %v3170_v60 = vpop.eup %3169 }
 0x837   : > { %v3172_v61 = vpop.eup %3171  ;;  %v2035_v10 = vadd.f32 1.0, %v3170_v60 }
 0x838   : > { %v2037_v62 = vmul.f32 %v3172_v61, %v2034_v59  ;;  %vm2042_vm1 = vweird.f32 %v3172_v61 }
 0x839   : > { %3173 = vrcp.f32 %v2035_v10  ;;  %vm2043_vm3 = vmor %vm2041_vm2, %vm2042_vm1  ;;  %v2062_v11 = vand.u32 2147483648, %v2035_v10  ;;  %v2060_v14 = vand.u32 2147483647, %v2035_v10  ;;  %vm2056_vm6 = vweird.f32 %v2035_v10 }
 0x83a   : > { %v2038_v63 = vsub.f32 1.0, %v2037_v62 }
 0x83b   : > { %v2063_v19 = vor.u32 1.1754944e-38, %v2062_v11  ;;  %vm2061_vm8 = vcmp.eq.f32.partialorder %v2060_v14, 8.507059e+37 }
 0x83c   : > { %v2039_v0 = vmul.f32 %v3172_v61, %v2038_v63 }
 0x83e   : > { %v2040_v2 = vadd.f32 %v3172_v61, %v2039_v0 }
 0x83f   : > { %v3174_v1 = vpop.eup %3173 }
 0x840   : > { %v2052_v3 = vmul.f32 %v3174_v1, %v2035_v10  ;;  %v2044_v12 = vsel %vm2043_vm3, %v3172_v61, %v2040_v2  ;;  %vm2057_vm4 = vweird.f32 %v3174_v1 }
 0x841   : > { %v2049_v17 = vsel %vm2046_vm5, %v2048_v15, %v2044_v12  ;;  %vm2058_vm7 = vmor %vm2056_vm6, %vm2057_vm4 }
 0x842   : > { %v2053_v8 = vsub.f32 1.0, %v2052_v3  ;;  %v2066_v22 = vmul.f32 %v2049_v17, %v2022_v47 }
 0x844   : > { %v2054_v13 = vmul.f32 %v3174_v1, %v2053_v8 }
 0x846   : > { %v2055_v16 = vadd.f32 %v3174_v1, %v2054_v13 }
 0x848   : > { %v2059_v20 = vsel %vm2058_vm7, %v3174_v1, %v2055_v16 }
 0x849   : > { %v2064_v21 = vsel %vm2061_vm8, %v2063_v19, %v2059_v20 }
 0x84a   : > { %v2067_v24 = vmul.f32 %v2064_v21, %v2024_v54 }
 0x84c   : > { %v2068_v25 = vpack.c.bf16 %v2067_v24, %v2066_v22 }
 0x84e   : > { %2145 = vmatmul.bf16.vlgmr.msrb.gmra.mxu2 %v2068_v25 }
 0x8d1   : > { %v2146_v26 = vpop.f32.mrf.mxu2 }
 0x8d2   : > { %v2147_v27 = vadd.f32 %v3142_v6, %v2146_v26 }
 0x8d4   : > { %v2151_v28 = vadd.f32 %v2147_v27, %v3826_v50 }
 0x8d6   : > { %2153 = vst [vmem:[#allocation2] sm:$0xff] %v2151_v28 }
 0x8d9   : > { %v2148_v29 = vpop.f32.mrf.mxu2 }
 0x8da   : > { %v2149_v30 = vadd.f32 %v3142_v6, %v2148_v29  ;;  %2158 = sbr.rel (%p2944_p10) target bundleno = 2684 (0xa7c), region = 124 }
 0x8dc   : > { %v2152_v18 = vadd.f32 %v2149_v30, %v3830_v55 }
 0x8de   : > { %2154 = vst [vmem:[#allocation2 + $0x8] sm:$0xff] %v2152_v18 }
 0x8df   : > { %2161 = vadd.xlane.f32.xlu0 %v2151_v28  ;;  %v3072_v55 = vld [vmem:[%s4016_s2 + $0x38] sm:$0xff]  ;;  %v3071_v40 = vld [vmem:[%s4016_s2 + $0x30] sm:$0xff]  ;;  %v3070_v41 = vld [vmem:[%s4016_s2 + $0x28] sm:$0xff] }
 0x8e0   : > { %2278 = vmatpush.bf16.msra.mxu0 %v3072_v55  ;;  %v3068_v42 = vld [vmem:[%s4016_s2 + $0x18] sm:$0xff]  ;;  %v3067_v43 = vld [vmem:[%s4016_s2 + $0x10] sm:$0xff]  ;;  %v3066_v44 = vld [vmem:[%s4016_s2 + $0x8] sm:$0xff] }
 0x8e1   : > { %v3065_v46 = vld [vmem:[%s4016_s2] sm:$0xff] }
 0x8e2   : > { %v3175_v0 = vld [vmem:[%s4017_s12] ss:$0 sm:$0xff] }
 0x8e3   : > { %v3176_v7 = vld [vmem:[%s4018_s20] ss:$0 sm:$0xff] }
 0x8e4   : > { %2279 = vmatpush.bf16.msra.mxu0 %v3071_v40 }
 0x8e7   : > { %2163 = vadd.xlane.f32.xlu0 %v2152_v18 }
 0x8e8   : > { %2280 = vmatpush.bf16.msra.mxu0 %v3070_v41 }
 0x952   : > { %v2162_v32 = vpop.xlane.xlu0 %2161 }
 0x953   : > { %v2165_v33 = vmul.f32 0.03125, %v2162_v32 }
 0x955   : > { %v2167_v23 = vsub.f32 %v2151_v28, %v2165_v33 }
 0x957   : > { %v2169_v34 = vmul.f32 %v3635_v4, %v2167_v23 }
 0x959   : > { %v2171_v35 = vmul.f32 %v2169_v34, %v2169_v34 }
 0x95a   : > { %v2164_v36 = vpop.xlane.xlu0 %2163 }
 0x95b   : > { %v2166_v37 = vmul.f32 0.03125, %v2164_v36  ;;  %2173 = vadd.xlane.f32.xlu1 %v2171_v35 }
 0x95d   : > { %v2168_v50 = vsub.f32 %v2152_v18, %v2166_v37 }
 0x95f   : > { %v2170_v38 = vmul.f32 %v3635_v4, %v2168_v50  ;;  %v3069_v4 = vld [vmem:[%s4016_s2 + $0x20] sm:$0xff] }
 0x960   : > { %2281 = vmatpush.bf16.msra.mxu0 %v3069_v4 }
 0x961   : > { %v2172_v39 = vmul.f32 %v2170_v38, %v2170_v38 }
 0x963   : > { %2175 = vadd.xlane.f32.xlu1 %v2172_v39 }
 0x964   : > { %2282 = vmatpush.bf16.msra.mxu0 %v3068_v42 }
 0x968   : > { %2283 = vmatpush.bf16.msra.mxu0 %v3067_v43 }
 0x96c   : > { %2284 = vmatpush.bf16.msra.mxu0 %v3066_v44 }
 0x970   : > { %2285 = vmatpush.bf16.msra.mxu0 %v3065_v46 }
 0x9ce   : > { %v2174_v45 = vpop.xlane.xlu1 %2173 }
 0x9cf   : > { %v2177_v31 = vmul.f32 0.03125, %v2174_v45 }
 0x9d1   : > { %v2179_v47 = vadd.f32 1e-05, %v2177_v31 }
 0x9d3   : > { %3177 = vrsqrt.f32 %v2179_v47  ;;  %vm2187_vm10 = vweird.f32 %v2179_v47 }
 0x9d6   : > { %v2176_v48 = vpop.xlane.xlu1 %2175 }
 0x9d7   : > { %v2178_v49 = vmul.f32 0.03125, %v2176_v48 }
 0x9d9   : > { %v3178_v51 = vpop.eup %3177  ;;  %v2180_v52 = vadd.f32 1e-05, %v2178_v49 }
 0x9da   : > { %v2182_v53 = vmul.f32 %v3178_v51, %v2179_v47  ;;  %vm2188_vm9 = vweird.f32 %v3178_v51 }
 0x9db   : > { %3179 = vrsqrt.f32 %v2180_v52  ;;  %vm2189_vm11 = vmor %vm2187_vm10, %vm2188_vm9  ;;  %vm2197_vm13 = vweird.f32 %v2180_v52 }
 0x9dc   : > { %v2183_v54 = vmul.f32 %v3178_v51, %v2182_v53 }
 0x9de   : > { %v2184_v56 = vmul.f32 0.5, %v2183_v54 }
 0x9e0   : > { %v2185_v57 = vsub.f32 1.5, %v2184_v56 }
 0x9e1   : > { %v3180_v9 = vpop.eup %3179 }
 0x9e2   : > { %v2186_v58 = vmul.f32 %v3178_v51, %v2185_v57  ;;  %v2192_v59 = vmul.f32 %v3180_v9, %v2180_v52  ;;  %vm2198_vm12 = vweird.f32 %v3180_v9 }
 0x9e3   : > { %vm2199_vm14 = vmor %vm2197_vm13, %vm2198_vm12 }
 0x9e4   : > { %v2193_v60 = vmul.f32 %v3180_v9, %v2192_v59  ;;  %v2190_v10 = vsel %vm2189_vm11, %v3178_v51, %v2186_v58 }
 0x9e5   : > { %v2201_v63 = vmul.f32 %v2190_v10, %v2169_v34 }
 0x9e6   : > { %v2194_v61 = vmul.f32 0.5, %v2193_v60 }
 0x9e7   : > { %v2206_v5 = vmul.f32 %v3175_v0, %v2201_v63 }
 0x9e8   : > { %v2195_v62 = vsub.f32 1.5, %v2194_v61 }
 0x9e9   : > { %v2211_v11 = vadd.f32 %v3176_v7, %v2206_v5 }
 0x9ea   : > { %v2196_v1 = vmul.f32 %v3180_v9, %v2195_v62 }
 0x9ec   : > { %v2200_v2 = vsel %vm2199_vm14, %v3180_v9, %v2196_v1 }
 0x9ed   : > { %v2202_v3 = vmul.f32 %v2200_v2, %v2170_v38 }
 0x9ef   : > { %v2207_v8 = vmul.f32 %v3175_v0, %v2202_v3 }
 0x9f1   : > { %v2212_v12 = vadd.f32 %v3176_v7, %v2207_v8 }
 0x9f3   : > { %v2213_v13 = vpack.c.bf16 %v2212_v12, %v2211_v11 }
 0x9f5   : > { %2286 = vmatmul.bf16.vlgmr.msra.gmra.mxu0 %v2213_v13 }
 0xa72   : > { %v2287_v14 = vpop.f32.mrf.mxu0 }
 0xa73   : > { %2292 = vst [vmem:[%s4019_s4] sm:$0xff] %v2287_v14 }
 0xa7a   : > { %v2289_v15 = vpop.f32.mrf.mxu0 }
 0xa7b   : > { %2293 = vst [vmem:[%s4019_s4 + $0x8] sm:$0xff] %v2289_v15 }
 0xa7c PF: > { %s4020_s24 = sld [smem:[#allocation15_spill]] }
 0xa7d   : > { %s4021_s1 = sld [smem:[#allocation13_spill]] }
 0xa7e   : > { %s4022_s22 = sld [smem:[#allocation14_spill]] }
 0xa7f   : > { %s4023_s23 = sld [smem:[#allocation16_spill]] }
 0xa82   : > { %p36_p5 = scmp.ge.s32.totalorder %s4020_s24, 4  }
 0xa84   :  { %38 = sbr.rel (!%p36_p5) target bundleno = 28 (0x1c), region = 224 }
 0xa89   :  { %2305 = vsyncpa [#allocation4], 1 }
 0xa8a   :  { %2307 = vsyncpa [#allocation4 + $0x1], 1 }
 0xa8b   :  { %2308 = vsyncpa [#allocation6], 1 }
 0xa8c   :  { %2310 = vsyncpa [#allocation6 + $0x1], 1 }
 0xa8d   :  { %2311 = vsyncpa [#allocation9], 1 }
 0xa8e   :  { %2313 = vsyncpa [#allocation9 + $0x1], 1 }

</bundles_post_ra>
